<compile_context>
chip_gen: v6e
topology: v6e:2x2x1
jax: 0.10.0
libtpu: 0.0.40
codegen_flags: <defaults>
</compile_context>

<pallas_src>
import functools
import math

import jax
import jax.numpy as jnp
from jax import lax
from jax.experimental import pallas as pl
from jax.experimental.pallas import tpu as pltpu

EPS = 1e-5  # nn.GroupNorm default eps


# ----------------------------- in-kernel helpers -----------------------------

def _erf(x, approx_recip):
    # Abramowitz & Stegun 7.1.26 rational approximation (max abs err ~1.5e-7).
    a1, a2, a3, a4, a5 = 0.254829592, -0.284496736, 1.421413741, -1.453152027, 1.061405429
    p = 0.3275911
    ax = jnp.abs(x)
    den = 1.0 + p * ax
    # Fast path: approx reciprocal runs on the otherwise-idle EUP slot.
    # Verification path keeps the exact divide so the f32 check holds to 1e-4.
    t = pl.reciprocal(den, approx=True) if approx_recip else 1.0 / den
    poly = ((((a5 * t + a4) * t + a3) * t + a2) * t + a1) * t
    y = 1.0 - poly * jnp.exp(-ax * ax)
    return jnp.where(x >= 0, y, -y)


def _gelu_exact(x, approx_recip):
    # torch nn.GELU() default is the exact (erf-based) GELU.
    return 0.5 * x * (1.0 + _erf(x * (1.0 / math.sqrt(2.0)), approx_recip))


def _groupnorm(h, w, b, inv_n):
    """GroupNorm(num_groups=1): per-sample stats over (C, L), two-pass.

    h: (B, C, L) f32 with L lane-dense; w, b: (C, 1), broadcast over batch
    and lanes.  inv_n = 1 / (C * L) with the REAL (un-padded) element count.
    """
    mean = jnp.sum(h, axis=(1, 2), keepdims=True) * inv_n
    hc = h - mean
    var = jnp.sum(hc * hc, axis=(1, 2), keepdims=True) * inv_n
    return hc * lax.rsqrt(var + EPS) * w[None] + b[None]


def _conv1x1(h, w_sm, b_sm, c_in, c_out):
    """Pointwise conv as unrolled scalar-broadcast FMAs (no MXU, no padding).

    h: (B, c_in, L); w_sm: flat (c_out*c_in,) SMEM ref, row-major (out, in);
    b_sm: (c_out,) SMEM ref.  Returns (B, c_out, L).
    """
    rows = [h[:, i, :] for i in range(c_in)]          # hoisted channel rows
    outs = []
    for o in range(c_out):
        acc = rows[0] * w_sm[o * c_in]
        for i in range(1, c_in):
            acc = acc + rows[i] * w_sm[o * c_in + i]
        outs.append(acc + b_sm[o])
    return jnp.stack(outs, axis=1)


def _dilated_conv_valid(h, w_sm, b_sm, c, k, d, out_len):
    """VALID dilated conv (C -> C) as FMAs over lane-shifted in-register taps.

    h: (B, c, L); w_sm: flat (c*c*k,) SMEM ref, row-major (out, in, tap);
    b_sm: (c,) SMEM ref.  Returns (B, c, out_len) — only valid positions are
    computed, so no tail masking is needed afterwards.
    """
    taps = [[h[:, i, j * d: j * d + out_len] for i in range(c)] for j in range(k)]
    outs = []
    for o in range(c):
        acc = None
        for j in range(k):
            base = o * c * k + j
            for i in range(c):
                term = taps[j][i] * w_sm[base + i * k]
                acc = term if acc is None else acc + term
        outs.append(acc + b_sm[o])
    return jnp.stack(outs, axis=1)


# --------------------------------- the kernel --------------------------------

def rce_bytenet_kernel(x_ref,
                       gn1_w_ref, gn1_b_ref, gn2_w_ref, gn2_b_ref,
                       gn3_w_ref, gn3_b_ref,
                       w1_ref, b1_ref, w2_ref, b2_ref, w3_ref, b3_ref,
                       o_ref,
                       *, c_outer, c_inner, kernel_size, dilation,
                       out_len, crop, approx_recip):
    L = x_ref.shape[2]
    x = x_ref[...]                                    # (B, Co, L) f32, L on lanes

    # ---- GroupNorm(1, outer) -> GELU -> Conv1d(outer -> inner, k=1) ----
    h = _groupnorm(x, gn1_w_ref[...], gn1_b_ref[...], 1.0 / (c_outer * L))
    h = _gelu_exact(h, approx_recip)
    h = _conv1x1(h, w1_ref, b1_ref, c_outer, c_inner)             # (B, Ci, L)

    # ---- GroupNorm(1, inner) -> GELU -> dilated Conv1d(inner -> inner, k) ----
    h = _groupnorm(h, gn2_w_ref[...], gn2_b_ref[...], 1.0 / (c_inner * L))
    h = _gelu_exact(h, approx_recip)
    h = _dilated_conv_valid(h, w2_ref, b2_ref, c_inner,
                            kernel_size, dilation, out_len)       # (B, Ci, L_out)

    # ---- GroupNorm(1, inner) -> GELU -> Conv1d(inner -> outer, k=1) ----
    h = _groupnorm(h, gn3_w_ref[...], gn3_b_ref[...], 1.0 / (c_inner * out_len))
    h = _gelu_exact(h, approx_recip)
    y = _conv1x1(h, w3_ref, b3_ref, c_inner, c_outer)             # (B, Co, L_out)

    # Residual: centered crop of the already-loaded input tile (one lane shift).
    o_ref[...] = y + x[:, :, crop:crop + out_len]


# --------------------------------- wrapper ------------------------------------

def _round_up(n, m):
    return ((n + m - 1) // m) * m


def rce_bytenet_block(x_ncl, params, kernel_size, dilation, *,
                      b_tile=1, approx_recip=True):
    """x_ncl: (N, C_outer, L) float32, same layout as the PyTorch module."""
    (gn1_w, gn1_b, w1, b1, gn2_w, gn2_b, w2, b2, gn3_w, gn3_b, w3, b3) = params
    N, Co, L = x_ncl.shape
    Ci = w1.shape[0]                                   # conv1 weight: (inner, outer, 1)
    K = kernel_size
    L_out = L - dilation * (K - 1)
    crop = (L - L_out) // 2

    # b_tile defaults to 1 so small batches still give >= 2 "parallel" grid
    # steps (both v7x TensorCores engaged); raise it only to amortize the
    # ~0.35us per-step overhead when N is large and L is short.
    b_tile = max(1, min(b_tile, N))
    N_p = _round_up(N, b_tile)
    x_f32 = x_ncl.astype(jnp.float32)
    if N_p != N:
        x_f32 = jnp.pad(x_f32, ((0, N_p - N), (0, 0), (0, 0)))

    f32 = jnp.float32
    # GroupNorm params as (C, 1) VMEM tiles (channel on sublanes, broadcast over lanes).
    gn1_w_k, gn1_b_k = gn1_w.reshape(Co, 1).astype(f32), gn1_b.reshape(Co, 1).astype(f32)
    gn2_w_k, gn2_b_k = gn2_w.reshape(Ci, 1).astype(f32), gn2_b.reshape(Ci, 1).astype(f32)
    gn3_w_k, gn3_b_k = gn3_w.reshape(Ci, 1).astype(f32), gn3_b.reshape(Ci, 1).astype(f32)
    # Conv weights / biases flattened row-major for cheap static SMEM scalar reads.
    w1_k = w1.reshape(Ci, Co).reshape(-1).astype(f32)              # (out, in)
    w2_k = w2.reshape(-1).astype(f32)                              # (out, in, k)
    w3_k = w3.reshape(Co, Ci).reshape(-1).astype(f32)
    b1_k, b2_k, b3_k = b1.astype(f32), b2.astype(f32), b3.astype(f32)

    kernel = functools.partial(
        rce_bytenet_kernel,
        c_outer=Co, c_inner=Ci, kernel_size=K, dilation=dilation,
        out_len=L_out, crop=crop, approx_recip=approx_recip)

    smem = pl.BlockSpec(memory_space=pltpu.MemorySpace.SMEM)
    gn_co = pl.BlockSpec((Co, 1), lambda n: (0, 0))
    gn_ci = pl.BlockSpec((Ci, 1), lambda n: (0, 0))

    # VMEM budget: double-buffered in/out blocks + a handful of live f32
    # intermediates; sized with headroom under v7x's 64 MiB physical VMEM.
    blk_in = b_tile * Co * L * 4
    blk_out = b_tile * Co * L_out * 4
    live = 8 * b_tile * Ci * L * 4
    vmem_limit = int(min(56 * 2**20,
                         max(16 * 2**20, 2 * (2 * blk_in + 2 * blk_out + live) + 2**20)))

    out = pl.pallas_call(
        kernel,
        out_shape=jax.ShapeDtypeStruct((N_p, Co, L_out), jnp.float32),
        grid=(N_p // b_tile,),
        in_specs=[
            pl.BlockSpec((b_tile, Co, L), lambda n: (n, 0, 0)),    # x, native NCL, no padding
            gn_co, gn_co,                                          # gn1 scale/shift
            gn_ci, gn_ci,                                          # gn2
            gn_ci, gn_ci,                                          # gn3
            smem, smem,                                            # w1, b1
            smem, smem,                                            # w2, b2
            smem, smem,                                            # w3, b3
        ],
        out_specs=pl.BlockSpec((b_tile, Co, L_out), lambda n: (n, 0, 0)),
        compiler_params=pltpu.CompilerParams(
            dimension_semantics=("parallel",),
            vmem_limit_bytes=vmem_limit),
    )(x_f32,
      gn1_w_k, gn1_b_k, gn2_w_k, gn2_b_k, gn3_w_k, gn3_b_k,
      w1_k, b1_k, w2_k, b2_k, w3_k, b3_k)

    return out[:N]                                     # drop batch padding; already NCL


# ------------------------- parameter construction -----------------------------

def check_if_involution(indices):
    return all(indices[indices[idx]] == idx for idx in range(len(indices)))


def get_involution_indices(size):
    return list(reversed(range(size)))


def ie_weight_2d(w, dim0_involution, dim1_involution):
    # IEWeight.forward (the spec module): (x + x[inv0][:, inv1]) / 2
    assert check_if_involution(dim0_involution) and check_if_involution(dim1_involution)
    i0 = jnp.array(dim0_involution, jnp.int32)
    i1 = jnp.array(dim1_involution, jnp.int32)
    return (w + w[i0][:, i1]) / 2.0


def rce_weight(w, out_involution, in_involution):
    # RCEWeight: IEWeight on the channel dims + kernel-axis flip (reverse complement)
    assert check_if_involution(out_involution) and check_if_involution(in_involution)
    i0 = jnp.array(out_involution, jnp.int32)
    i1 = jnp.array(in_involution, jnp.int32)
    return (w + w[i0][:, i1][:, :, ::-1]) / 2.0


def ie_bias(b, involution):
    # IEBias: (b + b[inv]) / 2
    return (b + b[jnp.array(involution, jnp.int32)]) / 2.0


def make_params(key, outer_dim, inner_dim, kernel_size):
    outer_inv = get_involution_indices(outer_dim)
    inner_inv = get_involution_indices(inner_dim)
    ks = jax.random.split(key, 12)
    f32 = jnp.float32

    gn1_w = 1.0 + 0.1 * jax.random.normal(ks[0], (outer_dim,), f32)
    gn1_b = 0.1 * jax.random.normal(ks[1], (outer_dim,), f32)
    w1 = ie_weight_2d(0.2 * jax.random.normal(ks[2], (inner_dim, outer_dim), f32),
                      inner_inv, outer_inv)[:, :, None]            # (inner, outer, 1)
    b1 = ie_bias(0.1 * jax.random.normal(ks[3], (inner_dim,), f32), inner_inv)

    gn2_w = 1.0 + 0.1 * jax.random.normal(ks[4], (inner_dim,), f32)
    gn2_b = 0.1 * jax.random.normal(ks[5], (inner_dim,), f32)
    w2 = rce_weight(0.2 * jax.random.normal(ks[6], (inner_dim, inner_dim, kernel_size), f32),
                    inner_inv, inner_inv)
    b2 = ie_bias(0.1 * jax.random.normal(ks[7], (inner_dim,), f32), inner_inv)

    gn3_w = 1.0 + 0.1 * jax.random.normal(ks[8], (inner_dim,), f32)
    gn3_b = 0.1 * jax.random.normal(ks[9], (inner_dim,), f32)
    w3 = ie_weight_2d(0.2 * jax.random.normal(ks[10], (outer_dim, inner_dim), f32),
                      outer_inv, inner_inv)[:, :, None]            # (outer, inner, 1)
    b3 = ie_bias(0.1 * jax.random.normal(ks[11], (outer_dim,), f32), outer_inv)

    # PyTorch layout: conv weights (out_ch, in_ch, k), GN params / biases (C,).
    return (gn1_w, gn1_b, w1, b1, gn2_w, gn2_b, w2, b2, gn3_w, gn3_b, w3, b3)


# ----------------------------- pure-JAX reference ------------------------------

def reference_forward(x, params, kernel_size, dilation):
    (gn1_w, gn1_b, w1, b1, gn2_w, gn2_b, w2, b2, gn3_w, gn3_b, w3, b3) = params

    def gn(h, w, b):
        mu = jnp.mean(h, axis=(1, 2), keepdims=True)
        var = jnp.mean((h - mu) ** 2, axis=(1, 2), keepdims=True)
        return (h - mu) / jnp.sqrt(var + EPS) * w[None, :, None] + b[None, :, None]

    def conv1d(h, w, b, dil=1):
        y = lax.conv_general_dilated(h, w, window_strides=(1,), padding="VALID",
                                     rhs_dilation=(dil,),
                                     dimension_numbers=("NCH", "OIH", "NCH"),
                                     precision=lax.Precision.HIGHEST)
        return y + b[None, :, None]

    h = jax.nn.gelu(gn(x, gn1_w, gn1_b), approximate=False)
    h = conv1d(h, w1, b1)
    h = jax.nn.gelu(gn(h, gn2_w, gn2_b), approximate=False)
    h = conv1d(h, w2, b2, dil=dilation)
    h = jax.nn.gelu(gn(h, gn3_w, gn3_b), approximate=False)
    y = conv1d(h, w3, b3)

    L, L_out = x.shape[2], y.shape[2]
    crop = (L - L_out) // 2
    return y + x[:, :, crop:crop + L_out]


# ------------------------------------ main -------------------------------------

if __name__ == "__main__":
    N, OUTER, INNER, L = 2, 4, 8, 16
    KERNEL_SIZE, DILATION = 3, 2

    key = jax.random.PRNGKey(0)
    k_x, k_p = jax.random.split(key)
    x = jax.random.normal(k_x, (N, OUTER, L), jnp.float32)   # NCL, like PyTorch

    params = make_params(k_p, OUTER, INNER, KERNEL_SIZE)
    ref = jax.block_until_ready(reference_forward(x, params, KERNEL_SIZE, DILATION))

    # (1) Verification path: exact divide inside erf -> tight functional check.
    out_exact = jax.block_until_ready(
        rce_bytenet_block(x, params, KERNEL_SIZE, DILATION, approx_recip=False))
    assert out_exact.shape == ref.shape, (out_exact.shape, ref.shape)
    err_exact = float(jnp.max(jnp.abs(out_exact - ref)))
    assert err_exact < 1e-4, f"exact-path max abs error {err_exact}"

    # (2) Fast path: EUP approx reciprocal inside erf (looser tolerance; the
    #     tight functional check above is the correctness gate).
    out_fast = jax.block_until_ready(
        rce_bytenet_block(x, params, KERNEL_SIZE, DILATION, approx_recip=True))
    assert out_fast.shape == ref.shape, (out_fast.shape, ref.shape)
    err_fast = float(jnp.max(jnp.abs(out_fast - ref)))
    assert err_fast < 5e-2, f"approx-reciprocal max abs error {err_fast}"

    print("KERNEL_OK")
</pallas_src>

<mosaic_0001>
module attributes {stable_mosaic.version = 11 : i64} {
  func.func @rce_bytenet_kernel(%arg0: i32, %arg1: memref<1x4x16xf32, #tpu.memory_space<vmem>>, %arg2: memref<4x1xf32, #tpu.memory_space<vmem>>, %arg3: memref<4x1xf32, #tpu.memory_space<vmem>>, %arg4: memref<8x1xf32, #tpu.memory_space<vmem>>, %arg5: memref<8x1xf32, #tpu.memory_space<vmem>>, %arg6: memref<8x1xf32, #tpu.memory_space<vmem>>, %arg7: memref<8x1xf32, #tpu.memory_space<vmem>>, %arg8: memref<32xf32, #tpu.memory_space<smem>>, %arg9: memref<8xf32, #tpu.memory_space<smem>>, %arg10: memref<192xf32, #tpu.memory_space<smem>>, %arg11: memref<8xf32, #tpu.memory_space<smem>>, %arg12: memref<32xf32, #tpu.memory_space<smem>>, %arg13: memref<4xf32, #tpu.memory_space<smem>>, %arg14: memref<1x4x12xf32, #tpu.memory_space<vmem>>) attributes {dimension_semantics = [#tpu.dimension_semantics<parallel>], iteration_bounds = array<i64: 2>, scalar_prefetch = 0 : i64, scratch_operands = 0 : i64, tpu.core_type = #tpu.core_type<tc>, window_params = [{transform_indices = @transform_0, window_bounds = array<i64: 1, 4, 16>}, {pipeline_mode = #tpu.pipeline_mode<synchronous>, transform_indices = @transform_1, window_bounds = array<i64: 4, 1>}, {pipeline_mode = #tpu.pipeline_mode<synchronous>, transform_indices = @transform_2, window_bounds = array<i64: 4, 1>}, {pipeline_mode = #tpu.pipeline_mode<synchronous>, transform_indices = @transform_3, window_bounds = array<i64: 8, 1>}, {pipeline_mode = #tpu.pipeline_mode<synchronous>, transform_indices = @transform_4, window_bounds = array<i64: 8, 1>}, {pipeline_mode = #tpu.pipeline_mode<synchronous>, transform_indices = @transform_5, window_bounds = array<i64: 8, 1>}, {pipeline_mode = #tpu.pipeline_mode<synchronous>, transform_indices = @transform_6, window_bounds = array<i64: 8, 1>}, {transform_indices = @transform_7, window_bounds = array<i64: 32>}, {transform_indices = @transform_8, window_bounds = array<i64: 8>}, {transform_indices = @transform_9, window_bounds = array<i64: 192>}, {transform_indices = @transform_10, window_bounds = array<i64: 8>}, {transform_indices = @transform_11, window_bounds = array<i64: 32>}, {transform_indices = @transform_12, window_bounds = array<i64: 4>}, {transform_indices = @transform_13, window_bounds = array<i64: 1, 4, 12>}]} {
    %c0 = arith.constant 0 : index
    %c0_0 = arith.constant 0 : index
    %c0_1 = arith.constant 0 : index
    %0 = vector.load %arg1[%c0, %c0_0, %c0_1] : memref<1x4x16xf32, #tpu.memory_space<vmem>>, vector<1x4x16xf32>
    %c0_2 = arith.constant 0 : index
    %c0_3 = arith.constant 0 : index
    %1 = vector.load %arg2[%c0_2, %c0_3] : memref<4x1xf32, #tpu.memory_space<vmem>>, vector<4x1xf32>
    %c0_4 = arith.constant 0 : index
    %c0_5 = arith.constant 0 : index
    %2 = vector.load %arg3[%c0_4, %c0_5] : memref<4x1xf32, #tpu.memory_space<vmem>>, vector<4x1xf32>
    %cst = arith.constant dense<0.000000e+00> : vector<1xf32>
    %3 = vector.multi_reduction <add>, %0, %cst [1, 2] : vector<1x4x16xf32> to vector<1xf32>
    %4 = vector.shape_cast %3 : vector<1xf32> to vector<1x1x1xf32>
    %cst_6 = arith.constant 1.562500e-02 : f32
    %5 = vector.broadcast %cst_6 : f32 to vector<1x1x1xf32>
    %6 = arith.mulf %4, %5 : vector<1x1x1xf32>
    %7 = vector.broadcast %6 : vector<1x1x1xf32> to vector<1x4x16xf32>
    %8 = arith.subf %0, %7 : vector<1x4x16xf32>
    %9 = arith.mulf %8, %8 : vector<1x4x16xf32>
    %cst_7 = arith.constant dense<0.000000e+00> : vector<1xf32>
    %10 = vector.multi_reduction <add>, %9, %cst_7 [1, 2] : vector<1x4x16xf32> to vector<1xf32>
    %11 = vector.shape_cast %10 : vector<1xf32> to vector<1x1x1xf32>
    %cst_8 = arith.constant 1.562500e-02 : f32
    %12 = vector.broadcast %cst_8 : f32 to vector<1x1x1xf32>
    %13 = arith.mulf %11, %12 : vector<1x1x1xf32>
    %cst_9 = arith.constant 9.99999974E-6 : f32
    %14 = vector.broadcast %cst_9 : f32 to vector<1x1x1xf32>
    %15 = arith.addf %13, %14 : vector<1x1x1xf32>
    %16 = math.rsqrt %15 : vector<1x1x1xf32>
    %17 = vector.broadcast %16 : vector<1x1x1xf32> to vector<1x4x16xf32>
    %18 = arith.mulf %8, %17 : vector<1x4x16xf32>
    %19 = vector.shape_cast %1 : vector<4x1xf32> to vector<1x4x1xf32>
    %20 = vector.broadcast %19 : vector<1x4x1xf32> to vector<1x4x16xf32>
    %21 = arith.mulf %18, %20 : vector<1x4x16xf32>
    %22 = vector.shape_cast %2 : vector<4x1xf32> to vector<1x4x1xf32>
    %23 = vector.broadcast %22 : vector<1x4x1xf32> to vector<1x4x16xf32>
    %24 = arith.addf %21, %23 : vector<1x4x16xf32>
    %cst_10 = arith.constant 5.000000e-01 : f32
    %25 = vector.broadcast %cst_10 : f32 to vector<1x4x16xf32>
    %26 = arith.mulf %25, %24 : vector<1x4x16xf32>
    %cst_11 = arith.constant 0.707106769 : f32
    %27 = vector.broadcast %cst_11 : f32 to vector<1x4x16xf32>
    %28 = arith.mulf %24, %27 : vector<1x4x16xf32>
    %29 = math.absf %28 : vector<1x4x16xf32>
    %cst_12 = arith.constant 0.327591091 : f32
    %30 = vector.broadcast %cst_12 : f32 to vector<1x4x16xf32>
    %31 = arith.mulf %30, %29 : vector<1x4x16xf32>
    %cst_13 = arith.constant 1.000000e+00 : f32
    %32 = vector.broadcast %cst_13 : f32 to vector<1x4x16xf32>
    %33 = arith.addf %32, %31 : vector<1x4x16xf32>
    %cst_14 = arith.constant 1.000000e+00 : f32
    %34 = vector.broadcast %cst_14 : f32 to vector<1x4x16xf32>
    %35 = arith.divf %34, %33 : vector<1x4x16xf32>
    %cst_15 = arith.constant 1.06140542 : f32
    %36 = vector.broadcast %cst_15 : f32 to vector<1x4x16xf32>
    %37 = arith.mulf %36, %35 : vector<1x4x16xf32>
    %cst_16 = arith.constant -1.45315206 : f32
    %38 = vector.broadcast %cst_16 : f32 to vector<1x4x16xf32>
    %39 = arith.addf %37, %38 : vector<1x4x16xf32>
    %40 = arith.mulf %39, %35 : vector<1x4x16xf32>
    %cst_17 = arith.constant 1.42141378 : f32
    %41 = vector.broadcast %cst_17 : f32 to vector<1x4x16xf32>
    %42 = arith.addf %40, %41 : vector<1x4x16xf32>
    %43 = arith.mulf %42, %35 : vector<1x4x16xf32>
    %cst_18 = arith.constant -0.284496725 : f32
    %44 = vector.broadcast %cst_18 : f32 to vector<1x4x16xf32>
    %45 = arith.addf %43, %44 : vector<1x4x16xf32>
    %46 = arith.mulf %45, %35 : vector<1x4x16xf32>
    %cst_19 = arith.constant 0.254829586 : f32
    %47 = vector.broadcast %cst_19 : f32 to vector<1x4x16xf32>
    %48 = arith.addf %46, %47 : vector<1x4x16xf32>
    %49 = arith.mulf %48, %35 : vector<1x4x16xf32>
    %cst_20 = arith.constant 0.000000e+00 : f32
    %50 = vector.broadcast %cst_20 : f32 to vector<1x4x16xf32>
    %51 = arith.subf %50, %29 : vector<1x4x16xf32>
    %52 = arith.mulf %51, %29 : vector<1x4x16xf32>
    %53 = math.exp %52 : vector<1x4x16xf32>
    %54 = arith.mulf %49, %53 : vector<1x4x16xf32>
    %cst_21 = arith.constant 1.000000e+00 : f32
    %55 = vector.broadcast %cst_21 : f32 to vector<1x4x16xf32>
    %56 = arith.subf %55, %54 : vector<1x4x16xf32>
    %cst_22 = arith.constant 0.000000e+00 : f32
    %57 = vector.broadcast %cst_22 : f32 to vector<1x4x16xf32>
    %58 = arith.cmpf oge, %28, %57 : vector<1x4x16xf32>
    %cst_23 = arith.constant 0.000000e+00 : f32
    %59 = vector.broadcast %cst_23 : f32 to vector<1x4x16xf32>
    %60 = arith.subf %59, %56 : vector<1x4x16xf32>
    %61 = arith.select %58, %56, %60 : vector<1x4x16xi1>, vector<1x4x16xf32>
    %cst_24 = arith.constant 1.000000e+00 : f32
    %62 = vector.broadcast %cst_24 : f32 to vector<1x4x16xf32>
    %63 = arith.addf %62, %61 : vector<1x4x16xf32>
    %64 = arith.mulf %26, %63 : vector<1x4x16xf32>
    %65 = vector.extract_strided_slice %64 {offsets = [0, 0, 0], sizes = [1, 1, 16], strides = [1, 1, 1]} : vector<1x4x16xf32> to vector<1x1x16xf32>
    %66 = vector.shape_cast %65 : vector<1x1x16xf32> to vector<1x16xf32>
    %67 = vector.extract_strided_slice %64 {offsets = [0, 1, 0], sizes = [1, 1, 16], strides = [1, 1, 1]} : vector<1x4x16xf32> to vector<1x1x16xf32>
    %68 = vector.shape_cast %67 : vector<1x1x16xf32> to vector<1x16xf32>
    %69 = vector.extract_strided_slice %64 {offsets = [0, 2, 0], sizes = [1, 1, 16], strides = [1, 1, 1]} : vector<1x4x16xf32> to vector<1x1x16xf32>
    %70 = vector.shape_cast %69 : vector<1x1x16xf32> to vector<1x16xf32>
    %71 = vector.extract_strided_slice %64 {offsets = [0, 3, 0], sizes = [1, 1, 16], strides = [1, 1, 1]} : vector<1x4x16xf32> to vector<1x1x16xf32>
    %72 = vector.shape_cast %71 : vector<1x1x16xf32> to vector<1x16xf32>
    %c0_25 = arith.constant 0 : index
    %73 = memref.load %arg8[%c0_25] : memref<32xf32, #tpu.memory_space<smem>>
    %74 = vector.broadcast %73 : f32 to vector<1x16xf32>
    %75 = arith.mulf %66, %74 : vector<1x16xf32>
    %c1 = arith.constant 1 : index
    %76 = memref.load %arg8[%c1] : memref<32xf32, #tpu.memory_space<smem>>
    %77 = vector.broadcast %76 : f32 to vector<1x16xf32>
    %78 = arith.mulf %68, %77 : vector<1x16xf32>
    %79 = arith.addf %75, %78 : vector<1x16xf32>
    %c2 = arith.constant 2 : index
    %80 = memref.load %arg8[%c2] : memref<32xf32, #tpu.memory_space<smem>>
    %81 = vector.broadcast %80 : f32 to vector<1x16xf32>
    %82 = arith.mulf %70, %81 : vector<1x16xf32>
    %83 = arith.addf %79, %82 : vector<1x16xf32>
    %c3 = arith.constant 3 : index
    %84 = memref.load %arg8[%c3] : memref<32xf32, #tpu.memory_space<smem>>
    %85 = vector.broadcast %84 : f32 to vector<1x16xf32>
    %86 = arith.mulf %72, %85 : vector<1x16xf32>
    %87 = arith.addf %83, %86 : vector<1x16xf32>
    %c0_26 = arith.constant 0 : index
    %88 = memref.load %arg9[%c0_26] : memref<8xf32, #tpu.memory_space<smem>>
    %89 = vector.broadcast %88 : f32 to vector<1x16xf32>
    %90 = arith.addf %87, %89 : vector<1x16xf32>
    %c4 = arith.constant 4 : index
    %91 = memref.load %arg8[%c4] : memref<32xf32, #tpu.memory_space<smem>>
    %92 = vector.broadcast %91 : f32 to vector<1x16xf32>
    %93 = arith.mulf %66, %92 : vector<1x16xf32>
    %c5 = arith.constant 5 : index
    %94 = memref.load %arg8[%c5] : memref<32xf32, #tpu.memory_space<smem>>
    %95 = vector.broadcast %94 : f32 to vector<1x16xf32>
    %96 = arith.mulf %68, %95 : vector<1x16xf32>
    %97 = arith.addf %93, %96 : vector<1x16xf32>
    %c6 = arith.constant 6 : index
    %98 = memref.load %arg8[%c6] : memref<32xf32, #tpu.memory_space<smem>>
    %99 = vector.broadcast %98 : f32 to vector<1x16xf32>
    %100 = arith.mulf %70, %99 : vector<1x16xf32>
    %101 = arith.addf %97, %100 : vector<1x16xf32>
    %c7 = arith.constant 7 : index
    %102 = memref.load %arg8[%c7] : memref<32xf32, #tpu.memory_space<smem>>
    %103 = vector.broadcast %102 : f32 to vector<1x16xf32>
    %104 = arith.mulf %72, %103 : vector<1x16xf32>
    %105 = arith.addf %101, %104 : vector<1x16xf32>
    %c1_27 = arith.constant 1 : index
    %106 = memref.load %arg9[%c1_27] : memref<8xf32, #tpu.memory_space<smem>>
    %107 = vector.broadcast %106 : f32 to vector<1x16xf32>
    %108 = arith.addf %105, %107 : vector<1x16xf32>
    %c8 = arith.constant 8 : index
    %109 = memref.load %arg8[%c8] : memref<32xf32, #tpu.memory_space<smem>>
    %110 = vector.broadcast %109 : f32 to vector<1x16xf32>
    %111 = arith.mulf %66, %110 : vector<1x16xf32>
    %c9 = arith.constant 9 : index
    %112 = memref.load %arg8[%c9] : memref<32xf32, #tpu.memory_space<smem>>
    %113 = vector.broadcast %112 : f32 to vector<1x16xf32>
    %114 = arith.mulf %68, %113 : vector<1x16xf32>
    %115 = arith.addf %111, %114 : vector<1x16xf32>
    %c10 = arith.constant 10 : index
    %116 = memref.load %arg8[%c10] : memref<32xf32, #tpu.memory_space<smem>>
    %117 = vector.broadcast %116 : f32 to vector<1x16xf32>
    %118 = arith.mulf %70, %117 : vector<1x16xf32>
    %119 = arith.addf %115, %118 : vector<1x16xf32>
    %c11 = arith.constant 11 : index
    %120 = memref.load %arg8[%c11] : memref<32xf32, #tpu.memory_space<smem>>
    %121 = vector.broadcast %120 : f32 to vector<1x16xf32>
    %122 = arith.mulf %72, %121 : vector<1x16xf32>
    %123 = arith.addf %119, %122 : vector<1x16xf32>
    %c2_28 = arith.constant 2 : index
    %124 = memref.load %arg9[%c2_28] : memref<8xf32, #tpu.memory_space<smem>>
    %125 = vector.broadcast %124 : f32 to vector<1x16xf32>
    %126 = arith.addf %123, %125 : vector<1x16xf32>
    %c12 = arith.constant 12 : index
    %127 = memref.load %arg8[%c12] : memref<32xf32, #tpu.memory_space<smem>>
    %128 = vector.broadcast %127 : f32 to vector<1x16xf32>
    %129 = arith.mulf %66, %128 : vector<1x16xf32>
    %c13 = arith.constant 13 : index
    %130 = memref.load %arg8[%c13] : memref<32xf32, #tpu.memory_space<smem>>
    %131 = vector.broadcast %130 : f32 to vector<1x16xf32>
    %132 = arith.mulf %68, %131 : vector<1x16xf32>
    %133 = arith.addf %129, %132 : vector<1x16xf32>
    %c14 = arith.constant 14 : index
    %134 = memref.load %arg8[%c14] : memref<32xf32, #tpu.memory_space<smem>>
    %135 = vector.broadcast %134 : f32 to vector<1x16xf32>
    %136 = arith.mulf %70, %135 : vector<1x16xf32>
    %137 = arith.addf %133, %136 : vector<1x16xf32>
    %c15 = arith.constant 15 : index
    %138 = memref.load %arg8[%c15] : memref<32xf32, #tpu.memory_space<smem>>
    %139 = vector.broadcast %138 : f32 to vector<1x16xf32>
    %140 = arith.mulf %72, %139 : vector<1x16xf32>
    %141 = arith.addf %137, %140 : vector<1x16xf32>
    %c3_29 = arith.constant 3 : index
    %142 = memref.load %arg9[%c3_29] : memref<8xf32, #tpu.memory_space<smem>>
    %143 = vector.broadcast %142 : f32 to vector<1x16xf32>
    %144 = arith.addf %141, %143 : vector<1x16xf32>
    %c16 = arith.constant 16 : index
    %145 = memref.load %arg8[%c16] : memref<32xf32, #tpu.memory_space<smem>>
    %146 = vector.broadcast %145 : f32 to vector<1x16xf32>
    %147 = arith.mulf %66, %146 : vector<1x16xf32>
    %c17 = arith.constant 17 : index
    %148 = memref.load %arg8[%c17] : memref<32xf32, #tpu.memory_space<smem>>
    %149 = vector.broadcast %148 : f32 to vector<1x16xf32>
    %150 = arith.mulf %68, %149 : vector<1x16xf32>
    %151 = arith.addf %147, %150 : vector<1x16xf32>
    %c18 = arith.constant 18 : index
    %152 = memref.load %arg8[%c18] : memref<32xf32, #tpu.memory_space<smem>>
    %153 = vector.broadcast %152 : f32 to vector<1x16xf32>
    %154 = arith.mulf %70, %153 : vector<1x16xf32>
    %155 = arith.addf %151, %154 : vector<1x16xf32>
    %c19 = arith.constant 19 : index
    %156 = memref.load %arg8[%c19] : memref<32xf32, #tpu.memory_space<smem>>
    %157 = vector.broadcast %156 : f32 to vector<1x16xf32>
    %158 = arith.mulf %72, %157 : vector<1x16xf32>
    %159 = arith.addf %155, %158 : vector<1x16xf32>
    %c4_30 = arith.constant 4 : index
    %160 = memref.load %arg9[%c4_30] : memref<8xf32, #tpu.memory_space<smem>>
    %161 = vector.broadcast %160 : f32 to vector<1x16xf32>
    %162 = arith.addf %159, %161 : vector<1x16xf32>
    %c20 = arith.constant 20 : index
    %163 = memref.load %arg8[%c20] : memref<32xf32, #tpu.memory_space<smem>>
    %164 = vector.broadcast %163 : f32 to vector<1x16xf32>
    %165 = arith.mulf %66, %164 : vector<1x16xf32>
    %c21 = arith.constant 21 : index
    %166 = memref.load %arg8[%c21] : memref<32xf32, #tpu.memory_space<smem>>
    %167 = vector.broadcast %166 : f32 to vector<1x16xf32>
    %168 = arith.mulf %68, %167 : vector<1x16xf32>
    %169 = arith.addf %165, %168 : vector<1x16xf32>
    %c22 = arith.constant 22 : index
    %170 = memref.load %arg8[%c22] : memref<32xf32, #tpu.memory_space<smem>>
    %171 = vector.broadcast %170 : f32 to vector<1x16xf32>
    %172 = arith.mulf %70, %171 : vector<1x16xf32>
    %173 = arith.addf %169, %172 : vector<1x16xf32>
    %c23 = arith.constant 23 : index
    %174 = memref.load %arg8[%c23] : memref<32xf32, #tpu.memory_space<smem>>
    %175 = vector.broadcast %174 : f32 to vector<1x16xf32>
    %176 = arith.mulf %72, %175 : vector<1x16xf32>
    %177 = arith.addf %173, %176 : vector<1x16xf32>
    %c5_31 = arith.constant 5 : index
    %178 = memref.load %arg9[%c5_31] : memref<8xf32, #tpu.memory_space<smem>>
    %179 = vector.broadcast %178 : f32 to vector<1x16xf32>
    %180 = arith.addf %177, %179 : vector<1x16xf32>
    %c24 = arith.constant 24 : index
    %181 = memref.load %arg8[%c24] : memref<32xf32, #tpu.memory_space<smem>>
    %182 = vector.broadcast %181 : f32 to vector<1x16xf32>
    %183 = arith.mulf %66, %182 : vector<1x16xf32>
    %c25 = arith.constant 25 : index
    %184 = memref.load %arg8[%c25] : memref<32xf32, #tpu.memory_space<smem>>
    %185 = vector.broadcast %184 : f32 to vector<1x16xf32>
    %186 = arith.mulf %68, %185 : vector<1x16xf32>
    %187 = arith.addf %183, %186 : vector<1x16xf32>
    %c26 = arith.constant 26 : index
    %188 = memref.load %arg8[%c26] : memref<32xf32, #tpu.memory_space<smem>>
    %189 = vector.broadcast %188 : f32 to vector<1x16xf32>
    %190 = arith.mulf %70, %189 : vector<1x16xf32>
    %191 = arith.addf %187, %190 : vector<1x16xf32>
    %c27 = arith.constant 27 : index
    %192 = memref.load %arg8[%c27] : memref<32xf32, #tpu.memory_space<smem>>
    %193 = vector.broadcast %192 : f32 to vector<1x16xf32>
    %194 = arith.mulf %72, %193 : vector<1x16xf32>
    %195 = arith.addf %191, %194 : vector<1x16xf32>
    %c6_32 = arith.constant 6 : index
    %196 = memref.load %arg9[%c6_32] : memref<8xf32, #tpu.memory_space<smem>>
    %197 = vector.broadcast %196 : f32 to vector<1x16xf32>
    %198 = arith.addf %195, %197 : vector<1x16xf32>
    %c28 = arith.constant 28 : index
    %199 = memref.load %arg8[%c28] : memref<32xf32, #tpu.memory_space<smem>>
    %200 = vector.broadcast %199 : f32 to vector<1x16xf32>
    %201 = arith.mulf %66, %200 : vector<1x16xf32>
    %c29 = arith.constant 29 : index
    %202 = memref.load %arg8[%c29] : memref<32xf32, #tpu.memory_space<smem>>
    %203 = vector.broadcast %202 : f32 to vector<1x16xf32>
    %204 = arith.mulf %68, %203 : vector<1x16xf32>
    %205 = arith.addf %201, %204 : vector<1x16xf32>
    %c30 = arith.constant 30 : index
    %206 = memref.load %arg8[%c30] : memref<32xf32, #tpu.memory_space<smem>>
    %207 = vector.broadcast %206 : f32 to vector<1x16xf32>
    %208 = arith.mulf %70, %207 : vector<1x16xf32>
    %209 = arith.addf %205, %208 : vector<1x16xf32>
    %c31 = arith.constant 31 : index
    %210 = memref.load %arg8[%c31] : memref<32xf32, #tpu.memory_space<smem>>
    %211 = vector.broadcast %210 : f32 to vector<1x16xf32>
    %212 = arith.mulf %72, %211 : vector<1x16xf32>
    %213 = arith.addf %209, %212 : vector<1x16xf32>
    %c7_33 = arith.constant 7 : index
    %214 = memref.load %arg9[%c7_33] : memref<8xf32, #tpu.memory_space<smem>>
    %215 = vector.broadcast %214 : f32 to vector<1x16xf32>
    %216 = arith.addf %213, %215 : vector<1x16xf32>
    %217 = vector.shape_cast %90 : vector<1x16xf32> to vector<1x1x16xf32>
    %218 = vector.shape_cast %108 : vector<1x16xf32> to vector<1x1x16xf32>
    %219 = vector.shape_cast %126 : vector<1x16xf32> to vector<1x1x16xf32>
    %220 = vector.shape_cast %144 : vector<1x16xf32> to vector<1x1x16xf32>
    %221 = vector.shape_cast %162 : vector<1x16xf32> to vector<1x1x16xf32>
    %222 = vector.shape_cast %180 : vector<1x16xf32> to vector<1x1x16xf32>
    %223 = vector.shape_cast %198 : vector<1x16xf32> to vector<1x1x16xf32>
    %224 = vector.shape_cast %216 : vector<1x16xf32> to vector<1x1x16xf32>
    %225 = tpu.concatenate %217, %218, %219, %220, %221, %222, %223, %224 in 1 : vector<1x1x16xf32>, vector<1x1x16xf32>, vector<1x1x16xf32>, vector<1x1x16xf32>, vector<1x1x16xf32>, vector<1x1x16xf32>, vector<1x1x16xf32>, vector<1x1x16xf32> -> vector<1x8x16xf32>
    %c0_34 = arith.constant 0 : index
    %c0_35 = arith.constant 0 : index
    %226 = vector.load %arg4[%c0_34, %c0_35] : memref<8x1xf32, #tpu.memory_space<vmem>>, vector<8x1xf32>
    %c0_36 = arith.constant 0 : index
    %c0_37 = arith.constant 0 : index
    %227 = vector.load %arg5[%c0_36, %c0_37] : memref<8x1xf32, #tpu.memory_space<vmem>>, vector<8x1xf32>
    %cst_38 = arith.constant dense<0.000000e+00> : vector<1xf32>
    %228 = vector.multi_reduction <add>, %225, %cst_38 [1, 2] : vector<1x8x16xf32> to vector<1xf32>
    %229 = vector.shape_cast %228 : vector<1xf32> to vector<1x1x1xf32>
    %cst_39 = arith.constant 7.812500e-03 : f32
    %230 = vector.broadcast %cst_39 : f32 to vector<1x1x1xf32>
    %231 = arith.mulf %229, %230 : vector<1x1x1xf32>
    %232 = vector.broadcast %231 : vector<1x1x1xf32> to vector<1x8x16xf32>
    %233 = arith.subf %225, %232 : vector<1x8x16xf32>
    %234 = arith.mulf %233, %233 : vector<1x8x16xf32>
    %cst_40 = arith.constant dense<0.000000e+00> : vector<1xf32>
    %235 = vector.multi_reduction <add>, %234, %cst_40 [1, 2] : vector<1x8x16xf32> to vector<1xf32>
    %236 = vector.shape_cast %235 : vector<1xf32> to vector<1x1x1xf32>
    %cst_41 = arith.constant 7.812500e-03 : f32
    %237 = vector.broadcast %cst_41 : f32 to vector<1x1x1xf32>
    %238 = arith.mulf %236, %237 : vector<1x1x1xf32>
    %cst_42 = arith.constant 9.99999974E-6 : f32
    %239 = vector.broadcast %cst_42 : f32 to vector<1x1x1xf32>
    %240 = arith.addf %238, %239 : vector<1x1x1xf32>
    %241 = math.rsqrt %240 : vector<1x1x1xf32>
    %242 = vector.broadcast %241 : vector<1x1x1xf32> to vector<1x8x16xf32>
    %243 = arith.mulf %233, %242 : vector<1x8x16xf32>
    %244 = vector.shape_cast %226 : vector<8x1xf32> to vector<1x8x1xf32>
    %245 = vector.broadcast %244 : vector<1x8x1xf32> to vector<1x8x16xf32>
    %246 = arith.mulf %243, %245 : vector<1x8x16xf32>
    %247 = vector.shape_cast %227 : vector<8x1xf32> to vector<1x8x1xf32>
    %248 = vector.broadcast %247 : vector<1x8x1xf32> to vector<1x8x16xf32>
    %249 = arith.addf %246, %248 : vector<1x8x16xf32>
    %cst_43 = arith.constant 5.000000e-01 : f32
    %250 = vector.broadcast %cst_43 : f32 to vector<1x8x16xf32>
    %251 = arith.mulf %250, %249 : vector<1x8x16xf32>
    %cst_44 = arith.constant 0.707106769 : f32
    %252 = vector.broadcast %cst_44 : f32 to vector<1x8x16xf32>
    %253 = arith.mulf %249, %252 : vector<1x8x16xf32>
    %254 = math.absf %253 : vector<1x8x16xf32>
    %cst_45 = arith.constant 0.327591091 : f32
    %255 = vector.broadcast %cst_45 : f32 to vector<1x8x16xf32>
    %256 = arith.mulf %255, %254 : vector<1x8x16xf32>
    %cst_46 = arith.constant 1.000000e+00 : f32
    %257 = vector.broadcast %cst_46 : f32 to vector<1x8x16xf32>
    %258 = arith.addf %257, %256 : vector<1x8x16xf32>
    %cst_47 = arith.constant 1.000000e+00 : f32
    %259 = vector.broadcast %cst_47 : f32 to vector<1x8x16xf32>
    %260 = arith.divf %259, %258 : vector<1x8x16xf32>
    %cst_48 = arith.constant 1.06140542 : f32
    %261 = vector.broadcast %cst_48 : f32 to vector<1x8x16xf32>
    %262 = arith.mulf %261, %260 : vector<1x8x16xf32>
    %cst_49 = arith.constant -1.45315206 : f32
    %263 = vector.broadcast %cst_49 : f32 to vector<1x8x16xf32>
    %264 = arith.addf %262, %263 : vector<1x8x16xf32>
    %265 = arith.mulf %264, %260 : vector<1x8x16xf32>
    %cst_50 = arith.constant 1.42141378 : f32
    %266 = vector.broadcast %cst_50 : f32 to vector<1x8x16xf32>
    %267 = arith.addf %265, %266 : vector<1x8x16xf32>
    %268 = arith.mulf %267, %260 : vector<1x8x16xf32>
    %cst_51 = arith.constant -0.284496725 : f32
    %269 = vector.broadcast %cst_51 : f32 to vector<1x8x16xf32>
    %270 = arith.addf %268, %269 : vector<1x8x16xf32>
    %271 = arith.mulf %270, %260 : vector<1x8x16xf32>
    %cst_52 = arith.constant 0.254829586 : f32
    %272 = vector.broadcast %cst_52 : f32 to vector<1x8x16xf32>
    %273 = arith.addf %271, %272 : vector<1x8x16xf32>
    %274 = arith.mulf %273, %260 : vector<1x8x16xf32>
    %cst_53 = arith.constant 0.000000e+00 : f32
    %275 = vector.broadcast %cst_53 : f32 to vector<1x8x16xf32>
    %276 = arith.subf %275, %254 : vector<1x8x16xf32>
    %277 = arith.mulf %276, %254 : vector<1x8x16xf32>
    %278 = math.exp %277 : vector<1x8x16xf32>
    %279 = arith.mulf %274, %278 : vector<1x8x16xf32>
    %cst_54 = arith.constant 1.000000e+00 : f32
    %280 = vector.broadcast %cst_54 : f32 to vector<1x8x16xf32>
    %281 = arith.subf %280, %279 : vector<1x8x16xf32>
    %cst_55 = arith.constant 0.000000e+00 : f32
    %282 = vector.broadcast %cst_55 : f32 to vector<1x8x16xf32>
    %283 = arith.cmpf oge, %253, %282 : vector<1x8x16xf32>
    %cst_56 = arith.constant 0.000000e+00 : f32
    %284 = vector.broadcast %cst_56 : f32 to vector<1x8x16xf32>
    %285 = arith.subf %284, %281 : vector<1x8x16xf32>
    %286 = arith.select %283, %281, %285 : vector<1x8x16xi1>, vector<1x8x16xf32>
    %cst_57 = arith.constant 1.000000e+00 : f32
    %287 = vector.broadcast %cst_57 : f32 to vector<1x8x16xf32>
    %288 = arith.addf %287, %286 : vector<1x8x16xf32>
    %289 = arith.mulf %251, %288 : vector<1x8x16xf32>
    %290 = vector.extract_strided_slice %289 {offsets = [0, 0, 0], sizes = [1, 1, 12], strides = [1, 1, 1]} : vector<1x8x16xf32> to vector<1x1x12xf32>
    %291 = vector.shape_cast %290 : vector<1x1x12xf32> to vector<1x12xf32>
    %292 = vector.extract_strided_slice %289 {offsets = [0, 1, 0], sizes = [1, 1, 12], strides = [1, 1, 1]} : vector<1x8x16xf32> to vector<1x1x12xf32>
    %293 = vector.shape_cast %292 : vector<1x1x12xf32> to vector<1x12xf32>
    %294 = vector.extract_strided_slice %289 {offsets = [0, 2, 0], sizes = [1, 1, 12], strides = [1, 1, 1]} : vector<1x8x16xf32> to vector<1x1x12xf32>
    %295 = vector.shape_cast %294 : vector<1x1x12xf32> to vector<1x12xf32>
    %296 = vector.extract_strided_slice %289 {offsets = [0, 3, 0], sizes = [1, 1, 12], strides = [1, 1, 1]} : vector<1x8x16xf32> to vector<1x1x12xf32>
    %297 = vector.shape_cast %296 : vector<1x1x12xf32> to vector<1x12xf32>
    %298 = vector.extract_strided_slice %289 {offsets = [0, 4, 0], sizes = [1, 1, 12], strides = [1, 1, 1]} : vector<1x8x16xf32> to vector<1x1x12xf32>
    %299 = vector.shape_cast %298 : vector<1x1x12xf32> to vector<1x12xf32>
    %300 = vector.extract_strided_slice %289 {offsets = [0, 5, 0], sizes = [1, 1, 12], strides = [1, 1, 1]} : vector<1x8x16xf32> to vector<1x1x12xf32>
    %301 = vector.shape_cast %300 : vector<1x1x12xf32> to vector<1x12xf32>
    %302 = vector.extract_strided_slice %289 {offsets = [0, 6, 0], sizes = [1, 1, 12], strides = [1, 1, 1]} : vector<1x8x16xf32> to vector<1x1x12xf32>
    %303 = vector.shape_cast %302 : vector<1x1x12xf32> to vector<1x12xf32>
    %304 = vector.extract_strided_slice %289 {offsets = [0, 7, 0], sizes = [1, 1, 12], strides = [1, 1, 1]} : vector<1x8x16xf32> to vector<1x1x12xf32>
    %305 = vector.shape_cast %304 : vector<1x1x12xf32> to vector<1x12xf32>
    %306 = vector.extract_strided_slice %289 {offsets = [0, 0, 2], sizes = [1, 1, 12], strides = [1, 1, 1]} : vector<1x8x16xf32> to vector<1x1x12xf32>
    %307 = vector.shape_cast %306 : vector<1x1x12xf32> to vector<1x12xf32>
    %308 = vector.extract_strided_slice %289 {offsets = [0, 1, 2], sizes = [1, 1, 12], strides = [1, 1, 1]} : vector<1x8x16xf32> to vector<1x1x12xf32>
    %309 = vector.shape_cast %308 : vector<1x1x12xf32> to vector<1x12xf32>
    %310 = vector.extract_strided_slice %289 {offsets = [0, 2, 2], sizes = [1, 1, 12], strides = [1, 1, 1]} : vector<1x8x16xf32> to vector<1x1x12xf32>
    %311 = vector.shape_cast %310 : vector<1x1x12xf32> to vector<1x12xf32>
    %312 = vector.extract_strided_slice %289 {offsets = [0, 3, 2], sizes = [1, 1, 12], strides = [1, 1, 1]} : vector<1x8x16xf32> to vector<1x1x12xf32>
    %313 = vector.shape_cast %312 : vector<1x1x12xf32> to vector<1x12xf32>
    %314 = vector.extract_strided_slice %289 {offsets = [0, 4, 2], sizes = [1, 1, 12], strides = [1, 1, 1]} : vector<1x8x16xf32> to vector<1x1x12xf32>
    %315 = vector.shape_cast %314 : vector<1x1x12xf32> to vector<1x12xf32>
    %316 = vector.extract_strided_slice %289 {offsets = [0, 5, 2], sizes = [1, 1, 12], strides = [1, 1, 1]} : vector<1x8x16xf32> to vector<1x1x12xf32>
    %317 = vector.shape_cast %316 : vector<1x1x12xf32> to vector<1x12xf32>
    %318 = vector.extract_strided_slice %289 {offsets = [0, 6, 2], sizes = [1, 1, 12], strides = [1, 1, 1]} : vector<1x8x16xf32> to vector<1x1x12xf32>
    %319 = vector.shape_cast %318 : vector<1x1x12xf32> to vector<1x12xf32>
    %320 = vector.extract_strided_slice %289 {offsets = [0, 7, 2], sizes = [1, 1, 12], strides = [1, 1, 1]} : vector<1x8x16xf32> to vector<1x1x12xf32>
    %321 = vector.shape_cast %320 : vector<1x1x12xf32> to vector<1x12xf32>
    %322 = vector.extract_strided_slice %289 {offsets = [0, 0, 4], sizes = [1, 1, 12], strides = [1, 1, 1]} : vector<1x8x16xf32> to vector<1x1x12xf32>
    %323 = vector.shape_cast %322 : vector<1x1x12xf32> to vector<1x12xf32>
    %324 = vector.extract_strided_slice %289 {offsets = [0, 1, 4], sizes = [1, 1, 12], strides = [1, 1, 1]} : vector<1x8x16xf32> to vector<1x1x12xf32>
    %325 = vector.shape_cast %324 : vector<1x1x12xf32> to vector<1x12xf32>
    %326 = vector.extract_strided_slice %289 {offsets = [0, 2, 4], sizes = [1, 1, 12], strides = [1, 1, 1]} : vector<1x8x16xf32> to vector<1x1x12xf32>
    %327 = vector.shape_cast %326 : vector<1x1x12xf32> to vector<1x12xf32>
    %328 = vector.extract_strided_slice %289 {offsets = [0, 3, 4], sizes = [1, 1, 12], strides = [1, 1, 1]} : vector<1x8x16xf32> to vector<1x1x12xf32>
    %329 = vector.shape_cast %328 : vector<1x1x12xf32> to vector<1x12xf32>
    %330 = vector.extract_strided_slice %289 {offsets = [0, 4, 4], sizes = [1, 1, 12], strides = [1, 1, 1]} : vector<1x8x16xf32> to vector<1x1x12xf32>
    %331 = vector.shape_cast %330 : vector<1x1x12xf32> to vector<1x12xf32>
    %332 = vector.extract_strided_slice %289 {offsets = [0, 5, 4], sizes = [1, 1, 12], strides = [1, 1, 1]} : vector<1x8x16xf32> to vector<1x1x12xf32>
    %333 = vector.shape_cast %332 : vector<1x1x12xf32> to vector<1x12xf32>
    %334 = vector.extract_strided_slice %289 {offsets = [0, 6, 4], sizes = [1, 1, 12], strides = [1, 1, 1]} : vector<1x8x16xf32> to vector<1x1x12xf32>
    %335 = vector.shape_cast %334 : vector<1x1x12xf32> to vector<1x12xf32>
    %336 = vector.extract_strided_slice %289 {offsets = [0, 7, 4], sizes = [1, 1, 12], strides = [1, 1, 1]} : vector<1x8x16xf32> to vector<1x1x12xf32>
    %337 = vector.shape_cast %336 : vector<1x1x12xf32> to vector<1x12xf32>
    %c0_58 = arith.constant 0 : index
    %338 = memref.load %arg10[%c0_58] : memref<192xf32, #tpu.memory_space<smem>>
    %339 = vector.broadcast %338 : f32 to vector<1x12xf32>
    %340 = arith.mulf %291, %339 : vector<1x12xf32>
    %c3_59 = arith.constant 3 : index
    %341 = memref.load %arg10[%c3_59] : memref<192xf32, #tpu.memory_space<smem>>
    %342 = vector.broadcast %341 : f32 to vector<1x12xf32>
    %343 = arith.mulf %293, %342 : vector<1x12xf32>
    %344 = arith.addf %340, %343 : vector<1x12xf32>
    %c6_60 = arith.constant 6 : index
    %345 = memref.load %arg10[%c6_60] : memref<192xf32, #tpu.memory_space<smem>>
    %346 = vector.broadcast %345 : f32 to vector<1x12xf32>
    %347 = arith.mulf %295, %346 : vector<1x12xf32>
    %348 = arith.addf %344, %347 : vector<1x12xf32>
    %c9_61 = arith.constant 9 : index
    %349 = memref.load %arg10[%c9_61] : memref<192xf32, #tpu.memory_space<smem>>
    %350 = vector.broadcast %349 : f32 to vector<1x12xf32>
    %351 = arith.mulf %297, %350 : vector<1x12xf32>
    %352 = arith.addf %348, %351 : vector<1x12xf32>
    %c12_62 = arith.constant 12 : index
    %353 = memref.load %arg10[%c12_62] : memref<192xf32, #tpu.memory_space<smem>>
    %354 = vector.broadcast %353 : f32 to vector<1x12xf32>
    %355 = arith.mulf %299, %354 : vector<1x12xf32>
    %356 = arith.addf %352, %355 : vector<1x12xf32>
    %c15_63 = arith.constant 15 : index
    %357 = memref.load %arg10[%c15_63] : memref<192xf32, #tpu.memory_space<smem>>
    %358 = vector.broadcast %357 : f32 to vector<1x12xf32>
    %359 = arith.mulf %301, %358 : vector<1x12xf32>
    %360 = arith.addf %356, %359 : vector<1x12xf32>
    %c18_64 = arith.constant 18 : index
    %361 = memref.load %arg10[%c18_64] : memref<192xf32, #tpu.memory_space<smem>>
    %362 = vector.broadcast %361 : f32 to vector<1x12xf32>
    %363 = arith.mulf %303, %362 : vector<1x12xf32>
    %364 = arith.addf %360, %363 : vector<1x12xf32>
    %c21_65 = arith.constant 21 : index
    %365 = memref.load %arg10[%c21_65] : memref<192xf32, #tpu.memory_space<smem>>
    %366 = vector.broadcast %365 : f32 to vector<1x12xf32>
    %367 = arith.mulf %305, %366 : vector<1x12xf32>
    %368 = arith.addf %364, %367 : vector<1x12xf32>
    %c1_66 = arith.constant 1 : index
    %369 = memref.load %arg10[%c1_66] : memref<192xf32, #tpu.memory_space<smem>>
    %370 = vector.broadcast %369 : f32 to vector<1x12xf32>
    %371 = arith.mulf %307, %370 : vector<1x12xf32>
    %372 = arith.addf %368, %371 : vector<1x12xf32>
    %c4_67 = arith.constant 4 : index
    %373 = memref.load %arg10[%c4_67] : memref<192xf32, #tpu.memory_space<smem>>
    %374 = vector.broadcast %373 : f32 to vector<1x12xf32>
    %375 = arith.mulf %309, %374 : vector<1x12xf32>
    %376 = arith.addf %372, %375 : vector<1x12xf32>
    %c7_68 = arith.constant 7 : index
    %377 = memref.load %arg10[%c7_68] : memref<192xf32, #tpu.memory_space<smem>>
    %378 = vector.broadcast %377 : f32 to vector<1x12xf32>
    %379 = arith.mulf %311, %378 : vector<1x12xf32>
    %380 = arith.addf %376, %379 : vector<1x12xf32>
    %c10_69 = arith.constant 10 : index
    %381 = memref.load %arg10[%c10_69] : memref<192xf32, #tpu.memory_space<smem>>
    %382 = vector.broadcast %381 : f32 to vector<1x12xf32>
    %383 = arith.mulf %313, %382 : vector<1x12xf32>
    %384 = arith.addf %380, %383 : vector<1x12xf32>
    %c13_70 = arith.constant 13 : index
    %385 = memref.load %arg10[%c13_70] : memref<192xf32, #tpu.memory_space<smem>>
    %386 = vector.broadcast %385 : f32 to vector<1x12xf32>
    %387 = arith.mulf %315, %386 : vector<1x12xf32>
    %388 = arith.addf %384, %387 : vector<1x12xf32>
    %c16_71 = arith.constant 16 : index
    %389 = memref.load %arg10[%c16_71] : memref<192xf32, #tpu.memory_space<smem>>
    %390 = vector.broadcast %389 : f32 to vector<1x12xf32>
    %391 = arith.mulf %317, %390 : vector<1x12xf32>
    %392 = arith.addf %388, %391 : vector<1x12xf32>
    %c19_72 = arith.constant 19 : index
    %393 = memref.load %arg10[%c19_72] : memref<192xf32, #tpu.memory_space<smem>>
    %394 = vector.broadcast %393 : f32 to vector<1x12xf32>
    %395 = arith.mulf %319, %394 : vector<1x12xf32>
    %396 = arith.addf %392, %395 : vector<1x12xf32>
    %c22_73 = arith.constant 22 : index
    %397 = memref.load %arg10[%c22_73] : memref<192xf32, #tpu.memory_space<smem>>
    %398 = vector.broadcast %397 : f32 to vector<1x12xf32>
    %399 = arith.mulf %321, %398 : vector<1x12xf32>
    %400 = arith.addf %396, %399 : vector<1x12xf32>
    %c2_74 = arith.constant 2 : index
    %401 = memref.load %arg10[%c2_74] : memref<192xf32, #tpu.memory_space<smem>>
    %402 = vector.broadcast %401 : f32 to vector<1x12xf32>
    %403 = arith.mulf %323, %402 : vector<1x12xf32>
    %404 = arith.addf %400, %403 : vector<1x12xf32>
    %c5_75 = arith.constant 5 : index
    %405 = memref.load %arg10[%c5_75] : memref<192xf32, #tpu.memory_space<smem>>
    %406 = vector.broadcast %405 : f32 to vector<1x12xf32>
    %407 = arith.mulf %325, %406 : vector<1x12xf32>
    %408 = arith.addf %404, %407 : vector<1x12xf32>
    %c8_76 = arith.constant 8 : index
    %409 = memref.load %arg10[%c8_76] : memref<192xf32, #tpu.memory_space<smem>>
    %410 = vector.broadcast %409 : f32 to vector<1x12xf32>
    %411 = arith.mulf %327, %410 : vector<1x12xf32>
    %412 = arith.addf %408, %411 : vector<1x12xf32>
    %c11_77 = arith.constant 11 : index
    %413 = memref.load %arg10[%c11_77] : memref<192xf32, #tpu.memory_space<smem>>
    %414 = vector.broadcast %413 : f32 to vector<1x12xf32>
    %415 = arith.mulf %329, %414 : vector<1x12xf32>
    %416 = arith.addf %412, %415 : vector<1x12xf32>
    %c14_78 = arith.constant 14 : index
    %417 = memref.load %arg10[%c14_78] : memref<192xf32, #tpu.memory_space<smem>>
    %418 = vector.broadcast %417 : f32 to vector<1x12xf32>
    %419 = arith.mulf %331, %418 : vector<1x12xf32>
    %420 = arith.addf %416, %419 : vector<1x12xf32>
    %c17_79 = arith.constant 17 : index
    %421 = memref.load %arg10[%c17_79] : memref<192xf32, #tpu.memory_space<smem>>
    %422 = vector.broadcast %421 : f32 to vector<1x12xf32>
    %423 = arith.mulf %333, %422 : vector<1x12xf32>
    %424 = arith.addf %420, %423 : vector<1x12xf32>
    %c20_80 = arith.constant 20 : index
    %425 = memref.load %arg10[%c20_80] : memref<192xf32, #tpu.memory_space<smem>>
    %426 = vector.broadcast %425 : f32 to vector<1x12xf32>
    %427 = arith.mulf %335, %426 : vector<1x12xf32>
    %428 = arith.addf %424, %427 : vector<1x12xf32>
    %c23_81 = arith.constant 23 : index
    %429 = memref.load %arg10[%c23_81] : memref<192xf32, #tpu.memory_space<smem>>
    %430 = vector.broadcast %429 : f32 to vector<1x12xf32>
    %431 = arith.mulf %337, %430 : vector<1x12xf32>
    %432 = arith.addf %428, %431 : vector<1x12xf32>
    %c0_82 = arith.constant 0 : index
    %433 = memref.load %arg11[%c0_82] : memref<8xf32, #tpu.memory_space<smem>>
    %434 = vector.broadcast %433 : f32 to vector<1x12xf32>
    %435 = arith.addf %432, %434 : vector<1x12xf32>
    %c24_83 = arith.constant 24 : index
    %436 = memref.load %arg10[%c24_83] : memref<192xf32, #tpu.memory_space<smem>>
    %437 = vector.broadcast %436 : f32 to vector<1x12xf32>
    %438 = arith.mulf %291, %437 : vector<1x12xf32>
    %c27_84 = arith.constant 27 : index
    %439 = memref.load %arg10[%c27_84] : memref<192xf32, #tpu.memory_space<smem>>
    %440 = vector.broadcast %439 : f32 to vector<1x12xf32>
    %441 = arith.mulf %293, %440 : vector<1x12xf32>
    %442 = arith.addf %438, %441 : vector<1x12xf32>
    %c30_85 = arith.constant 30 : index
    %443 = memref.load %arg10[%c30_85] : memref<192xf32, #tpu.memory_space<smem>>
    %444 = vector.broadcast %443 : f32 to vector<1x12xf32>
    %445 = arith.mulf %295, %444 : vector<1x12xf32>
    %446 = arith.addf %442, %445 : vector<1x12xf32>
    %c33 = arith.constant 33 : index
    %447 = memref.load %arg10[%c33] : memref<192xf32, #tpu.memory_space<smem>>
    %448 = vector.broadcast %447 : f32 to vector<1x12xf32>
    %449 = arith.mulf %297, %448 : vector<1x12xf32>
    %450 = arith.addf %446, %449 : vector<1x12xf32>
    %c36 = arith.constant 36 : index
    %451 = memref.load %arg10[%c36] : memref<192xf32, #tpu.memory_space<smem>>
    %452 = vector.broadcast %451 : f32 to vector<1x12xf32>
    %453 = arith.mulf %299, %452 : vector<1x12xf32>
    %454 = arith.addf %450, %453 : vector<1x12xf32>
    %c39 = arith.constant 39 : index
    %455 = memref.load %arg10[%c39] : memref<192xf32, #tpu.memory_space<smem>>
    %456 = vector.broadcast %455 : f32 to vector<1x12xf32>
    %457 = arith.mulf %301, %456 : vector<1x12xf32>
    %458 = arith.addf %454, %457 : vector<1x12xf32>
    %c42 = arith.constant 42 : index
    %459 = memref.load %arg10[%c42] : memref<192xf32, #tpu.memory_space<smem>>
    %460 = vector.broadcast %459 : f32 to vector<1x12xf32>
    %461 = arith.mulf %303, %460 : vector<1x12xf32>
    %462 = arith.addf %458, %461 : vector<1x12xf32>
    %c45 = arith.constant 45 : index
    %463 = memref.load %arg10[%c45] : memref<192xf32, #tpu.memory_space<smem>>
    %464 = vector.broadcast %463 : f32 to vector<1x12xf32>
    %465 = arith.mulf %305, %464 : vector<1x12xf32>
    %466 = arith.addf %462, %465 : vector<1x12xf32>
    %c25_86 = arith.constant 25 : index
    %467 = memref.load %arg10[%c25_86] : memref<192xf32, #tpu.memory_space<smem>>
    %468 = vector.broadcast %467 : f32 to vector<1x12xf32>
    %469 = arith.mulf %307, %468 : vector<1x12xf32>
    %470 = arith.addf %466, %469 : vector<1x12xf32>
    %c28_87 = arith.constant 28 : index
    %471 = memref.load %arg10[%c28_87] : memref<192xf32, #tpu.memory_space<smem>>
    %472 = vector.broadcast %471 : f32 to vector<1x12xf32>
    %473 = arith.mulf %309, %472 : vector<1x12xf32>
    %474 = arith.addf %470, %473 : vector<1x12xf32>
    %c31_88 = arith.constant 31 : index
    %475 = memref.load %arg10[%c31_88] : memref<192xf32, #tpu.memory_space<smem>>
    %476 = vector.broadcast %475 : f32 to vector<1x12xf32>
    %477 = arith.mulf %311, %476 : vector<1x12xf32>
    %478 = arith.addf %474, %477 : vector<1x12xf32>
    %c34 = arith.constant 34 : index
    %479 = memref.load %arg10[%c34] : memref<192xf32, #tpu.memory_space<smem>>
    %480 = vector.broadcast %479 : f32 to vector<1x12xf32>
    %481 = arith.mulf %313, %480 : vector<1x12xf32>
    %482 = arith.addf %478, %481 : vector<1x12xf32>
    %c37 = arith.constant 37 : index
    %483 = memref.load %arg10[%c37] : memref<192xf32, #tpu.memory_space<smem>>
    %484 = vector.broadcast %483 : f32 to vector<1x12xf32>
    %485 = arith.mulf %315, %484 : vector<1x12xf32>
    %486 = arith.addf %482, %485 : vector<1x12xf32>
    %c40 = arith.constant 40 : index
    %487 = memref.load %arg10[%c40] : memref<192xf32, #tpu.memory_space<smem>>
    %488 = vector.broadcast %487 : f32 to vector<1x12xf32>
    %489 = arith.mulf %317, %488 : vector<1x12xf32>
    %490 = arith.addf %486, %489 : vector<1x12xf32>
    %c43 = arith.constant 43 : index
    %491 = memref.load %arg10[%c43] : memref<192xf32, #tpu.memory_space<smem>>
    %492 = vector.broadcast %491 : f32 to vector<1x12xf32>
    %493 = arith.mulf %319, %492 : vector<1x12xf32>
    %494 = arith.addf %490, %493 : vector<1x12xf32>
    %c46 = arith.constant 46 : index
    %495 = memref.load %arg10[%c46] : memref<192xf32, #tpu.memory_space<smem>>
    %496 = vector.broadcast %495 : f32 to vector<1x12xf32>
    %497 = arith.mulf %321, %496 : vector<1x12xf32>
    %498 = arith.addf %494, %497 : vector<1x12xf32>
    %c26_89 = arith.constant 26 : index
    %499 = memref.load %arg10[%c26_89] : memref<192xf32, #tpu.memory_space<smem>>
    %500 = vector.broadcast %499 : f32 to vector<1x12xf32>
    %501 = arith.mulf %323, %500 : vector<1x12xf32>
    %502 = arith.addf %498, %501 : vector<1x12xf32>
    %c29_90 = arith.constant 29 : index
    %503 = memref.load %arg10[%c29_90] : memref<192xf32, #tpu.memory_space<smem>>
    %504 = vector.broadcast %503 : f32 to vector<1x12xf32>
    %505 = arith.mulf %325, %504 : vector<1x12xf32>
    %506 = arith.addf %502, %505 : vector<1x12xf32>
    %c32 = arith.constant 32 : index
    %507 = memref.load %arg10[%c32] : memref<192xf32, #tpu.memory_space<smem>>
    %508 = vector.broadcast %507 : f32 to vector<1x12xf32>
    %509 = arith.mulf %327, %508 : vector<1x12xf32>
    %510 = arith.addf %506, %509 : vector<1x12xf32>
    %c35 = arith.constant 35 : index
    %511 = memref.load %arg10[%c35] : memref<192xf32, #tpu.memory_space<smem>>
    %512 = vector.broadcast %511 : f32 to vector<1x12xf32>
    %513 = arith.mulf %329, %512 : vector<1x12xf32>
    %514 = arith.addf %510, %513 : vector<1x12xf32>
    %c38 = arith.constant 38 : index
    %515 = memref.load %arg10[%c38] : memref<192xf32, #tpu.memory_space<smem>>
    %516 = vector.broadcast %515 : f32 to vector<1x12xf32>
    %517 = arith.mulf %331, %516 : vector<1x12xf32>
    %518 = arith.addf %514, %517 : vector<1x12xf32>
    %c41 = arith.constant 41 : index
    %519 = memref.load %arg10[%c41] : memref<192xf32, #tpu.memory_space<smem>>
    %520 = vector.broadcast %519 : f32 to vector<1x12xf32>
    %521 = arith.mulf %333, %520 : vector<1x12xf32>
    %522 = arith.addf %518, %521 : vector<1x12xf32>
    %c44 = arith.constant 44 : index
    %523 = memref.load %arg10[%c44] : memref<192xf32, #tpu.memory_space<smem>>
    %524 = vector.broadcast %523 : f32 to vector<1x12xf32>
    %525 = arith.mulf %335, %524 : vector<1x12xf32>
    %526 = arith.addf %522, %525 : vector<1x12xf32>
    %c47 = arith.constant 47 : index
    %527 = memref.load %arg10[%c47] : memref<192xf32, #tpu.memory_space<smem>>
    %528 = vector.broadcast %527 : f32 to vector<1x12xf32>
    %529 = arith.mulf %337, %528 : vector<1x12xf32>
    %530 = arith.addf %526, %529 : vector<1x12xf32>
    %c1_91 = arith.constant 1 : index
    %531 = memref.load %arg11[%c1_91] : memref<8xf32, #tpu.memory_space<smem>>
    %532 = vector.broadcast %531 : f32 to vector<1x12xf32>
    %533 = arith.addf %530, %532 : vector<1x12xf32>
    %c48 = arith.constant 48 : index
    %534 = memref.load %arg10[%c48] : memref<192xf32, #tpu.memory_space<smem>>
    %535 = vector.broadcast %534 : f32 to vector<1x12xf32>
    %536 = arith.mulf %291, %535 : vector<1x12xf32>
    %c51 = arith.constant 51 : index
    %537 = memref.load %arg10[%c51] : memref<192xf32, #tpu.memory_space<smem>>
    %538 = vector.broadcast %537 : f32 to vector<1x12xf32>
    %539 = arith.mulf %293, %538 : vector<1x12xf32>
    %540 = arith.addf %536, %539 : vector<1x12xf32>
    %c54 = arith.constant 54 : index
    %541 = memref.load %arg10[%c54] : memref<192xf32, #tpu.memory_space<smem>>
    %542 = vector.broadcast %541 : f32 to vector<1x12xf32>
    %543 = arith.mulf %295, %542 : vector<1x12xf32>
    %544 = arith.addf %540, %543 : vector<1x12xf32>
    %c57 = arith.constant 57 : index
    %545 = memref.load %arg10[%c57] : memref<192xf32, #tpu.memory_space<smem>>
    %546 = vector.broadcast %545 : f32 to vector<1x12xf32>
    %547 = arith.mulf %297, %546 : vector<1x12xf32>
    %548 = arith.addf %544, %547 : vector<1x12xf32>
    %c60 = arith.constant 60 : index
    %549 = memref.load %arg10[%c60] : memref<192xf32, #tpu.memory_space<smem>>
    %550 = vector.broadcast %549 : f32 to vector<1x12xf32>
    %551 = arith.mulf %299, %550 : vector<1x12xf32>
    %552 = arith.addf %548, %551 : vector<1x12xf32>
    %c63 = arith.constant 63 : index
    %553 = memref.load %arg10[%c63] : memref<192xf32, #tpu.memory_space<smem>>
    %554 = vector.broadcast %553 : f32 to vector<1x12xf32>
    %555 = arith.mulf %301, %554 : vector<1x12xf32>
    %556 = arith.addf %552, %555 : vector<1x12xf32>
    %c66 = arith.constant 66 : index
    %557 = memref.load %arg10[%c66] : memref<192xf32, #tpu.memory_space<smem>>
    %558 = vector.broadcast %557 : f32 to vector<1x12xf32>
    %559 = arith.mulf %303, %558 : vector<1x12xf32>
    %560 = arith.addf %556, %559 : vector<1x12xf32>
    %c69 = arith.constant 69 : index
    %561 = memref.load %arg10[%c69] : memref<192xf32, #tpu.memory_space<smem>>
    %562 = vector.broadcast %561 : f32 to vector<1x12xf32>
    %563 = arith.mulf %305, %562 : vector<1x12xf32>
    %564 = arith.addf %560, %563 : vector<1x12xf32>
    %c49 = arith.constant 49 : index
    %565 = memref.load %arg10[%c49] : memref<192xf32, #tpu.memory_space<smem>>
    %566 = vector.broadcast %565 : f32 to vector<1x12xf32>
    %567 = arith.mulf %307, %566 : vector<1x12xf32>
    %568 = arith.addf %564, %567 : vector<1x12xf32>
    %c52 = arith.constant 52 : index
    %569 = memref.load %arg10[%c52] : memref<192xf32, #tpu.memory_space<smem>>
    %570 = vector.broadcast %569 : f32 to vector<1x12xf32>
    %571 = arith.mulf %309, %570 : vector<1x12xf32>
    %572 = arith.addf %568, %571 : vector<1x12xf32>
    %c55 = arith.constant 55 : index
    %573 = memref.load %arg10[%c55] : memref<192xf32, #tpu.memory_space<smem>>
    %574 = vector.broadcast %573 : f32 to vector<1x12xf32>
    %575 = arith.mulf %311, %574 : vector<1x12xf32>
    %576 = arith.addf %572, %575 : vector<1x12xf32>
    %c58 = arith.constant 58 : index
    %577 = memref.load %arg10[%c58] : memref<192xf32, #tpu.memory_space<smem>>
    %578 = vector.broadcast %577 : f32 to vector<1x12xf32>
    %579 = arith.mulf %313, %578 : vector<1x12xf32>
    %580 = arith.addf %576, %579 : vector<1x12xf32>
    %c61 = arith.constant 61 : index
    %581 = memref.load %arg10[%c61] : memref<192xf32, #tpu.memory_space<smem>>
    %582 = vector.broadcast %581 : f32 to vector<1x12xf32>
    %583 = arith.mulf %315, %582 : vector<1x12xf32>
    %584 = arith.addf %580, %583 : vector<1x12xf32>
    %c64 = arith.constant 64 : index
    %585 = memref.load %arg10[%c64] : memref<192xf32, #tpu.memory_space<smem>>
    %586 = vector.broadcast %585 : f32 to vector<1x12xf32>
    %587 = arith.mulf %317, %586 : vector<1x12xf32>
    %588 = arith.addf %584, %587 : vector<1x12xf32>
    %c67 = arith.constant 67 : index
    %589 = memref.load %arg10[%c67] : memref<192xf32, #tpu.memory_space<smem>>
    %590 = vector.broadcast %589 : f32 to vector<1x12xf32>
    %591 = arith.mulf %319, %590 : vector<1x12xf32>
    %592 = arith.addf %588, %591 : vector<1x12xf32>
    %c70 = arith.constant 70 : index
    %593 = memref.load %arg10[%c70] : memref<192xf32, #tpu.memory_space<smem>>
    %594 = vector.broadcast %593 : f32 to vector<1x12xf32>
    %595 = arith.mulf %321, %594 : vector<1x12xf32>
    %596 = arith.addf %592, %595 : vector<1x12xf32>
    %c50 = arith.constant 50 : index
    %597 = memref.load %arg10[%c50] : memref<192xf32, #tpu.memory_space<smem>>
    %598 = vector.broadcast %597 : f32 to vector<1x12xf32>
    %599 = arith.mulf %323, %598 : vector<1x12xf32>
    %600 = arith.addf %596, %599 : vector<1x12xf32>
    %c53 = arith.constant 53 : index
    %601 = memref.load %arg10[%c53] : memref<192xf32, #tpu.memory_space<smem>>
    %602 = vector.broadcast %601 : f32 to vector<1x12xf32>
    %603 = arith.mulf %325, %602 : vector<1x12xf32>
    %604 = arith.addf %600, %603 : vector<1x12xf32>
    %c56 = arith.constant 56 : index
    %605 = memref.load %arg10[%c56] : memref<192xf32, #tpu.memory_space<smem>>
    %606 = vector.broadcast %605 : f32 to vector<1x12xf32>
    %607 = arith.mulf %327, %606 : vector<1x12xf32>
    %608 = arith.addf %604, %607 : vector<1x12xf32>
    %c59 = arith.constant 59 : index
    %609 = memref.load %arg10[%c59] : memref<192xf32, #tpu.memory_space<smem>>
    %610 = vector.broadcast %609 : f32 to vector<1x12xf32>
    %611 = arith.mulf %329, %610 : vector<1x12xf32>
    %612 = arith.addf %608, %611 : vector<1x12xf32>
    %c62 = arith.constant 62 : index
    %613 = memref.load %arg10[%c62] : memref<192xf32, #tpu.memory_space<smem>>
    %614 = vector.broadcast %613 : f32 to vector<1x12xf32>
    %615 = arith.mulf %331, %614 : vector<1x12xf32>
    %616 = arith.addf %612, %615 : vector<1x12xf32>
    %c65 = arith.constant 65 : index
    %617 = memref.load %arg10[%c65] : memref<192xf32, #tpu.memory_space<smem>>
    %618 = vector.broadcast %617 : f32 to vector<1x12xf32>
    %619 = arith.mulf %333, %618 : vector<1x12xf32>
    %620 = arith.addf %616, %619 : vector<1x12xf32>
    %c68 = arith.constant 68 : index
    %621 = memref.load %arg10[%c68] : memref<192xf32, #tpu.memory_space<smem>>
    %622 = vector.broadcast %621 : f32 to vector<1x12xf32>
    %623 = arith.mulf %335, %622 : vector<1x12xf32>
    %624 = arith.addf %620, %623 : vector<1x12xf32>
    %c71 = arith.constant 71 : index
    %625 = memref.load %arg10[%c71] : memref<192xf32, #tpu.memory_space<smem>>
    %626 = vector.broadcast %625 : f32 to vector<1x12xf32>
    %627 = arith.mulf %337, %626 : vector<1x12xf32>
    %628 = arith.addf %624, %627 : vector<1x12xf32>
    %c2_92 = arith.constant 2 : index
    %629 = memref.load %arg11[%c2_92] : memref<8xf32, #tpu.memory_space<smem>>
    %630 = vector.broadcast %629 : f32 to vector<1x12xf32>
    %631 = arith.addf %628, %630 : vector<1x12xf32>
    %c72 = arith.constant 72 : index
    %632 = memref.load %arg10[%c72] : memref<192xf32, #tpu.memory_space<smem>>
    %633 = vector.broadcast %632 : f32 to vector<1x12xf32>
    %634 = arith.mulf %291, %633 : vector<1x12xf32>
    %c75 = arith.constant 75 : index
    %635 = memref.load %arg10[%c75] : memref<192xf32, #tpu.memory_space<smem>>
    %636 = vector.broadcast %635 : f32 to vector<1x12xf32>
    %637 = arith.mulf %293, %636 : vector<1x12xf32>
    %638 = arith.addf %634, %637 : vector<1x12xf32>
    %c78 = arith.constant 78 : index
    %639 = memref.load %arg10[%c78] : memref<192xf32, #tpu.memory_space<smem>>
    %640 = vector.broadcast %639 : f32 to vector<1x12xf32>
    %641 = arith.mulf %295, %640 : vector<1x12xf32>
    %642 = arith.addf %638, %641 : vector<1x12xf32>
    %c81 = arith.constant 81 : index
    %643 = memref.load %arg10[%c81] : memref<192xf32, #tpu.memory_space<smem>>
    %644 = vector.broadcast %643 : f32 to vector<1x12xf32>
    %645 = arith.mulf %297, %644 : vector<1x12xf32>
    %646 = arith.addf %642, %645 : vector<1x12xf32>
    %c84 = arith.constant 84 : index
    %647 = memref.load %arg10[%c84] : memref<192xf32, #tpu.memory_space<smem>>
    %648 = vector.broadcast %647 : f32 to vector<1x12xf32>
    %649 = arith.mulf %299, %648 : vector<1x12xf32>
    %650 = arith.addf %646, %649 : vector<1x12xf32>
    %c87 = arith.constant 87 : index
    %651 = memref.load %arg10[%c87] : memref<192xf32, #tpu.memory_space<smem>>
    %652 = vector.broadcast %651 : f32 to vector<1x12xf32>
    %653 = arith.mulf %301, %652 : vector<1x12xf32>
    %654 = arith.addf %650, %653 : vector<1x12xf32>
    %c90 = arith.constant 90 : index
    %655 = memref.load %arg10[%c90] : memref<192xf32, #tpu.memory_space<smem>>
    %656 = vector.broadcast %655 : f32 to vector<1x12xf32>
    %657 = arith.mulf %303, %656 : vector<1x12xf32>
    %658 = arith.addf %654, %657 : vector<1x12xf32>
    %c93 = arith.constant 93 : index
    %659 = memref.load %arg10[%c93] : memref<192xf32, #tpu.memory_space<smem>>
    %660 = vector.broadcast %659 : f32 to vector<1x12xf32>
    %661 = arith.mulf %305, %660 : vector<1x12xf32>
    %662 = arith.addf %658, %661 : vector<1x12xf32>
    %c73 = arith.constant 73 : index
    %663 = memref.load %arg10[%c73] : memref<192xf32, #tpu.memory_space<smem>>
    %664 = vector.broadcast %663 : f32 to vector<1x12xf32>
    %665 = arith.mulf %307, %664 : vector<1x12xf32>
    %666 = arith.addf %662, %665 : vector<1x12xf32>
    %c76 = arith.constant 76 : index
    %667 = memref.load %arg10[%c76] : memref<192xf32, #tpu.memory_space<smem>>
    %668 = vector.broadcast %667 : f32 to vector<1x12xf32>
    %669 = arith.mulf %309, %668 : vector<1x12xf32>
    %670 = arith.addf %666, %669 : vector<1x12xf32>
    %c79 = arith.constant 79 : index
    %671 = memref.load %arg10[%c79] : memref<192xf32, #tpu.memory_space<smem>>
    %672 = vector.broadcast %671 : f32 to vector<1x12xf32>
    %673 = arith.mulf %311, %672 : vector<1x12xf32>
    %674 = arith.addf %670, %673 : vector<1x12xf32>
    %c82 = arith.constant 82 : index
    %675 = memref.load %arg10[%c82] : memref<192xf32, #tpu.memory_space<smem>>
    %676 = vector.broadcast %675 : f32 to vector<1x12xf32>
    %677 = arith.mulf %313, %676 : vector<1x12xf32>
    %678 = arith.addf %674, %677 : vector<1x12xf32>
    %c85 = arith.constant 85 : index
    %679 = memref.load %arg10[%c85] : memref<192xf32, #tpu.memory_space<smem>>
    %680 = vector.broadcast %679 : f32 to vector<1x12xf32>
    %681 = arith.mulf %315, %680 : vector<1x12xf32>
    %682 = arith.addf %678, %681 : vector<1x12xf32>
    %c88 = arith.constant 88 : index
    %683 = memref.load %arg10[%c88] : memref<192xf32, #tpu.memory_space<smem>>
    %684 = vector.broadcast %683 : f32 to vector<1x12xf32>
    %685 = arith.mulf %317, %684 : vector<1x12xf32>
    %686 = arith.addf %682, %685 : vector<1x12xf32>
    %c91 = arith.constant 91 : index
    %687 = memref.load %arg10[%c91] : memref<192xf32, #tpu.memory_space<smem>>
    %688 = vector.broadcast %687 : f32 to vector<1x12xf32>
    %689 = arith.mulf %319, %688 : vector<1x12xf32>
    %690 = arith.addf %686, %689 : vector<1x12xf32>
    %c94 = arith.constant 94 : index
    %691 = memref.load %arg10[%c94] : memref<192xf32, #tpu.memory_space<smem>>
    %692 = vector.broadcast %691 : f32 to vector<1x12xf32>
    %693 = arith.mulf %321, %692 : vector<1x12xf32>
    %694 = arith.addf %690, %693 : vector<1x12xf32>
    %c74 = arith.constant 74 : index
    %695 = memref.load %arg10[%c74] : memref<192xf32, #tpu.memory_space<smem>>
    %696 = vector.broadcast %695 : f32 to vector<1x12xf32>
    %697 = arith.mulf %323, %696 : vector<1x12xf32>
    %698 = arith.addf %694, %697 : vector<1x12xf32>
    %c77 = arith.constant 77 : index
    %699 = memref.load %arg10[%c77] : memref<192xf32, #tpu.memory_space<smem>>
    %700 = vector.broadcast %699 : f32 to vector<1x12xf32>
    %701 = arith.mulf %325, %700 : vector<1x12xf32>
    %702 = arith.addf %698, %701 : vector<1x12xf32>
    %c80 = arith.constant 80 : index
    %703 = memref.load %arg10[%c80] : memref<192xf32, #tpu.memory_space<smem>>
    %704 = vector.broadcast %703 : f32 to vector<1x12xf32>
    %705 = arith.mulf %327, %704 : vector<1x12xf32>
    %706 = arith.addf %702, %705 : vector<1x12xf32>
    %c83 = arith.constant 83 : index
    %707 = memref.load %arg10[%c83] : memref<192xf32, #tpu.memory_space<smem>>
    %708 = vector.broadcast %707 : f32 to vector<1x12xf32>
    %709 = arith.mulf %329, %708 : vector<1x12xf32>
    %710 = arith.addf %706, %709 : vector<1x12xf32>
    %c86 = arith.constant 86 : index
    %711 = memref.load %arg10[%c86] : memref<192xf32, #tpu.memory_space<smem>>
    %712 = vector.broadcast %711 : f32 to vector<1x12xf32>
    %713 = arith.mulf %331, %712 : vector<1x12xf32>
    %714 = arith.addf %710, %713 : vector<1x12xf32>
    %c89 = arith.constant 89 : index
    %715 = memref.load %arg10[%c89] : memref<192xf32, #tpu.memory_space<smem>>
    %716 = vector.broadcast %715 : f32 to vector<1x12xf32>
    %717 = arith.mulf %333, %716 : vector<1x12xf32>
    %718 = arith.addf %714, %717 : vector<1x12xf32>
    %c92 = arith.constant 92 : index
    %719 = memref.load %arg10[%c92] : memref<192xf32, #tpu.memory_space<smem>>
    %720 = vector.broadcast %719 : f32 to vector<1x12xf32>
    %721 = arith.mulf %335, %720 : vector<1x12xf32>
    %722 = arith.addf %718, %721 : vector<1x12xf32>
    %c95 = arith.constant 95 : index
    %723 = memref.load %arg10[%c95] : memref<192xf32, #tpu.memory_space<smem>>
    %724 = vector.broadcast %723 : f32 to vector<1x12xf32>
    %725 = arith.mulf %337, %724 : vector<1x12xf32>
    %726 = arith.addf %722, %725 : vector<1x12xf32>
    %c3_93 = arith.constant 3 : index
    %727 = memref.load %arg11[%c3_93] : memref<8xf32, #tpu.memory_space<smem>>
    %728 = vector.broadcast %727 : f32 to vector<1x12xf32>
    %729 = arith.addf %726, %728 : vector<1x12xf32>
    %c96 = arith.constant 96 : index
    %730 = memref.load %arg10[%c96] : memref<192xf32, #tpu.memory_space<smem>>
    %731 = vector.broadcast %730 : f32 to vector<1x12xf32>
    %732 = arith.mulf %291, %731 : vector<1x12xf32>
    %c99 = arith.constant 99 : index
    %733 = memref.load %arg10[%c99] : memref<192xf32, #tpu.memory_space<smem>>
    %734 = vector.broadcast %733 : f32 to vector<1x12xf32>
    %735 = arith.mulf %293, %734 : vector<1x12xf32>
    %736 = arith.addf %732, %735 : vector<1x12xf32>
    %c102 = arith.constant 102 : index
    %737 = memref.load %arg10[%c102] : memref<192xf32, #tpu.memory_space<smem>>
    %738 = vector.broadcast %737 : f32 to vector<1x12xf32>
    %739 = arith.mulf %295, %738 : vector<1x12xf32>
    %740 = arith.addf %736, %739 : vector<1x12xf32>
    %c105 = arith.constant 105 : index
    %741 = memref.load %arg10[%c105] : memref<192xf32, #tpu.memory_space<smem>>
    %742 = vector.broadcast %741 : f32 to vector<1x12xf32>
    %743 = arith.mulf %297, %742 : vector<1x12xf32>
    %744 = arith.addf %740, %743 : vector<1x12xf32>
    %c108 = arith.constant 108 : index
    %745 = memref.load %arg10[%c108] : memref<192xf32, #tpu.memory_space<smem>>
    %746 = vector.broadcast %745 : f32 to vector<1x12xf32>
    %747 = arith.mulf %299, %746 : vector<1x12xf32>
    %748 = arith.addf %744, %747 : vector<1x12xf32>
    %c111 = arith.constant 111 : index
    %749 = memref.load %arg10[%c111] : memref<192xf32, #tpu.memory_space<smem>>
    %750 = vector.broadcast %749 : f32 to vector<1x12xf32>
    %751 = arith.mulf %301, %750 : vector<1x12xf32>
    %752 = arith.addf %748, %751 : vector<1x12xf32>
    %c114 = arith.constant 114 : index
    %753 = memref.load %arg10[%c114] : memref<192xf32, #tpu.memory_space<smem>>
    %754 = vector.broadcast %753 : f32 to vector<1x12xf32>
    %755 = arith.mulf %303, %754 : vector<1x12xf32>
    %756 = arith.addf %752, %755 : vector<1x12xf32>
    %c117 = arith.constant 117 : index
    %757 = memref.load %arg10[%c117] : memref<192xf32, #tpu.memory_space<smem>>
    %758 = vector.broadcast %757 : f32 to vector<1x12xf32>
    %759 = arith.mulf %305, %758 : vector<1x12xf32>
    %760 = arith.addf %756, %759 : vector<1x12xf32>
    %c97 = arith.constant 97 : index
    %761 = memref.load %arg10[%c97] : memref<192xf32, #tpu.memory_space<smem>>
    %762 = vector.broadcast %761 : f32 to vector<1x12xf32>
    %763 = arith.mulf %307, %762 : vector<1x12xf32>
    %764 = arith.addf %760, %763 : vector<1x12xf32>
    %c100 = arith.constant 100 : index
    %765 = memref.load %arg10[%c100] : memref<192xf32, #tpu.memory_space<smem>>
    %766 = vector.broadcast %765 : f32 to vector<1x12xf32>
    %767 = arith.mulf %309, %766 : vector<1x12xf32>
    %768 = arith.addf %764, %767 : vector<1x12xf32>
    %c103 = arith.constant 103 : index
    %769 = memref.load %arg10[%c103] : memref<192xf32, #tpu.memory_space<smem>>
    %770 = vector.broadcast %769 : f32 to vector<1x12xf32>
    %771 = arith.mulf %311, %770 : vector<1x12xf32>
    %772 = arith.addf %768, %771 : vector<1x12xf32>
    %c106 = arith.constant 106 : index
    %773 = memref.load %arg10[%c106] : memref<192xf32, #tpu.memory_space<smem>>
    %774 = vector.broadcast %773 : f32 to vector<1x12xf32>
    %775 = arith.mulf %313, %774 : vector<1x12xf32>
    %776 = arith.addf %772, %775 : vector<1x12xf32>
    %c109 = arith.constant 109 : index
    %777 = memref.load %arg10[%c109] : memref<192xf32, #tpu.memory_space<smem>>
    %778 = vector.broadcast %777 : f32 to vector<1x12xf32>
    %779 = arith.mulf %315, %778 : vector<1x12xf32>
    %780 = arith.addf %776, %779 : vector<1x12xf32>
    %c112 = arith.constant 112 : index
    %781 = memref.load %arg10[%c112] : memref<192xf32, #tpu.memory_space<smem>>
    %782 = vector.broadcast %781 : f32 to vector<1x12xf32>
    %783 = arith.mulf %317, %782 : vector<1x12xf32>
    %784 = arith.addf %780, %783 : vector<1x12xf32>
    %c115 = arith.constant 115 : index
    %785 = memref.load %arg10[%c115] : memref<192xf32, #tpu.memory_space<smem>>
    %786 = vector.broadcast %785 : f32 to vector<1x12xf32>
    %787 = arith.mulf %319, %786 : vector<1x12xf32>
    %788 = arith.addf %784, %787 : vector<1x12xf32>
    %c118 = arith.constant 118 : index
    %789 = memref.load %arg10[%c118] : memref<192xf32, #tpu.memory_space<smem>>
    %790 = vector.broadcast %789 : f32 to vector<1x12xf32>
    %791 = arith.mulf %321, %790 : vector<1x12xf32>
    %792 = arith.addf %788, %791 : vector<1x12xf32>
    %c98 = arith.constant 98 : index
    %793 = memref.load %arg10[%c98] : memref<192xf32, #tpu.memory_space<smem>>
    %794 = vector.broadcast %793 : f32 to vector<1x12xf32>
    %795 = arith.mulf %323, %794 : vector<1x12xf32>
    %796 = arith.addf %792, %795 : vector<1x12xf32>
    %c101 = arith.constant 101 : index
    %797 = memref.load %arg10[%c101] : memref<192xf32, #tpu.memory_space<smem>>
    %798 = vector.broadcast %797 : f32 to vector<1x12xf32>
    %799 = arith.mulf %325, %798 : vector<1x12xf32>
    %800 = arith.addf %796, %799 : vector<1x12xf32>
    %c104 = arith.constant 104 : index
    %801 = memref.load %arg10[%c104] : memref<192xf32, #tpu.memory_space<smem>>
    %802 = vector.broadcast %801 : f32 to vector<1x12xf32>
    %803 = arith.mulf %327, %802 : vector<1x12xf32>
    %804 = arith.addf %800, %803 : vector<1x12xf32>
    %c107 = arith.constant 107 : index
    %805 = memref.load %arg10[%c107] : memref<192xf32, #tpu.memory_space<smem>>
    %806 = vector.broadcast %805 : f32 to vector<1x12xf32>
    %807 = arith.mulf %329, %806 : vector<1x12xf32>
    %808 = arith.addf %804, %807 : vector<1x12xf32>
    %c110 = arith.constant 110 : index
    %809 = memref.load %arg10[%c110] : memref<192xf32, #tpu.memory_space<smem>>
    %810 = vector.broadcast %809 : f32 to vector<1x12xf32>
    %811 = arith.mulf %331, %810 : vector<1x12xf32>
    %812 = arith.addf %808, %811 : vector<1x12xf32>
    %c113 = arith.constant 113 : index
    %813 = memref.load %arg10[%c113] : memref<192xf32, #tpu.memory_space<smem>>
    %814 = vector.broadcast %813 : f32 to vector<1x12xf32>
    %815 = arith.mulf %333, %814 : vector<1x12xf32>
    %816 = arith.addf %812, %815 : vector<1x12xf32>
    %c116 = arith.constant 116 : index
    %817 = memref.load %arg10[%c116] : memref<192xf32, #tpu.memory_space<smem>>
    %818 = vector.broadcast %817 : f32 to vector<1x12xf32>
    %819 = arith.mulf %335, %818 : vector<1x12xf32>
    %820 = arith.addf %816, %819 : vector<1x12xf32>
    %c119 = arith.constant 119 : index
    %821 = memref.load %arg10[%c119] : memref<192xf32, #tpu.memory_space<smem>>
    %822 = vector.broadcast %821 : f32 to vector<1x12xf32>
    %823 = arith.mulf %337, %822 : vector<1x12xf32>
    %824 = arith.addf %820, %823 : vector<1x12xf32>
    %c4_94 = arith.constant 4 : index
    %825 = memref.load %arg11[%c4_94] : memref<8xf32, #tpu.memory_space<smem>>
    %826 = vector.broadcast %825 : f32 to vector<1x12xf32>
    %827 = arith.addf %824, %826 : vector<1x12xf32>
    %c120 = arith.constant 120 : index
    %828 = memref.load %arg10[%c120] : memref<192xf32, #tpu.memory_space<smem>>
    %829 = vector.broadcast %828 : f32 to vector<1x12xf32>
    %830 = arith.mulf %291, %829 : vector<1x12xf32>
    %c123 = arith.constant 123 : index
    %831 = memref.load %arg10[%c123] : memref<192xf32, #tpu.memory_space<smem>>
    %832 = vector.broadcast %831 : f32 to vector<1x12xf32>
    %833 = arith.mulf %293, %832 : vector<1x12xf32>
    %834 = arith.addf %830, %833 : vector<1x12xf32>
    %c126 = arith.constant 126 : index
    %835 = memref.load %arg10[%c126] : memref<192xf32, #tpu.memory_space<smem>>
    %836 = vector.broadcast %835 : f32 to vector<1x12xf32>
    %837 = arith.mulf %295, %836 : vector<1x12xf32>
    %838 = arith.addf %834, %837 : vector<1x12xf32>
    %c129 = arith.constant 129 : index
    %839 = memref.load %arg10[%c129] : memref<192xf32, #tpu.memory_space<smem>>
    %840 = vector.broadcast %839 : f32 to vector<1x12xf32>
    %841 = arith.mulf %297, %840 : vector<1x12xf32>
    %842 = arith.addf %838, %841 : vector<1x12xf32>
    %c132 = arith.constant 132 : index
    %843 = memref.load %arg10[%c132] : memref<192xf32, #tpu.memory_space<smem>>
    %844 = vector.broadcast %843 : f32 to vector<1x12xf32>
    %845 = arith.mulf %299, %844 : vector<1x12xf32>
    %846 = arith.addf %842, %845 : vector<1x12xf32>
    %c135 = arith.constant 135 : index
    %847 = memref.load %arg10[%c135] : memref<192xf32, #tpu.memory_space<smem>>
    %848 = vector.broadcast %847 : f32 to vector<1x12xf32>
    %849 = arith.mulf %301, %848 : vector<1x12xf32>
    %850 = arith.addf %846, %849 : vector<1x12xf32>
    %c138 = arith.constant 138 : index
    %851 = memref.load %arg10[%c138] : memref<192xf32, #tpu.memory_space<smem>>
    %852 = vector.broadcast %851 : f32 to vector<1x12xf32>
    %853 = arith.mulf %303, %852 : vector<1x12xf32>
    %854 = arith.addf %850, %853 : vector<1x12xf32>
    %c141 = arith.constant 141 : index
    %855 = memref.load %arg10[%c141] : memref<192xf32, #tpu.memory_space<smem>>
    %856 = vector.broadcast %855 : f32 to vector<1x12xf32>
    %857 = arith.mulf %305, %856 : vector<1x12xf32>
    %858 = arith.addf %854, %857 : vector<1x12xf32>
    %c121 = arith.constant 121 : index
    %859 = memref.load %arg10[%c121] : memref<192xf32, #tpu.memory_space<smem>>
    %860 = vector.broadcast %859 : f32 to vector<1x12xf32>
    %861 = arith.mulf %307, %860 : vector<1x12xf32>
    %862 = arith.addf %858, %861 : vector<1x12xf32>
    %c124 = arith.constant 124 : index
    %863 = memref.load %arg10[%c124] : memref<192xf32, #tpu.memory_space<smem>>
    %864 = vector.broadcast %863 : f32 to vector<1x12xf32>
    %865 = arith.mulf %309, %864 : vector<1x12xf32>
    %866 = arith.addf %862, %865 : vector<1x12xf32>
    %c127 = arith.constant 127 : index
    %867 = memref.load %arg10[%c127] : memref<192xf32, #tpu.memory_space<smem>>
    %868 = vector.broadcast %867 : f32 to vector<1x12xf32>
    %869 = arith.mulf %311, %868 : vector<1x12xf32>
    %870 = arith.addf %866, %869 : vector<1x12xf32>
    %c130 = arith.constant 130 : index
    %871 = memref.load %arg10[%c130] : memref<192xf32, #tpu.memory_space<smem>>
    %872 = vector.broadcast %871 : f32 to vector<1x12xf32>
    %873 = arith.mulf %313, %872 : vector<1x12xf32>
    %874 = arith.addf %870, %873 : vector<1x12xf32>
    %c133 = arith.constant 133 : index
    %875 = memref.load %arg10[%c133] : memref<192xf32, #tpu.memory_space<smem>>
    %876 = vector.broadcast %875 : f32 to vector<1x12xf32>
    %877 = arith.mulf %315, %876 : vector<1x12xf32>
    %878 = arith.addf %874, %877 : vector<1x12xf32>
    %c136 = arith.constant 136 : index
    %879 = memref.load %arg10[%c136] : memref<192xf32, #tpu.memory_space<smem>>
    %880 = vector.broadcast %879 : f32 to vector<1x12xf32>
    %881 = arith.mulf %317, %880 : vector<1x12xf32>
    %882 = arith.addf %878, %881 : vector<1x12xf32>
    %c139 = arith.constant 139 : index
    %883 = memref.load %arg10[%c139] : memref<192xf32, #tpu.memory_space<smem>>
    %884 = vector.broadcast %883 : f32 to vector<1x12xf32>
    %885 = arith.mulf %319, %884 : vector<1x12xf32>
    %886 = arith.addf %882, %885 : vector<1x12xf32>
    %c142 = arith.constant 142 : index
    %887 = memref.load %arg10[%c142] : memref<192xf32, #tpu.memory_space<smem>>
    %888 = vector.broadcast %887 : f32 to vector<1x12xf32>
    %889 = arith.mulf %321, %888 : vector<1x12xf32>
    %890 = arith.addf %886, %889 : vector<1x12xf32>
    %c122 = arith.constant 122 : index
    %891 = memref.load %arg10[%c122] : memref<192xf32, #tpu.memory_space<smem>>
    %892 = vector.broadcast %891 : f32 to vector<1x12xf32>
    %893 = arith.mulf %323, %892 : vector<1x12xf32>
    %894 = arith.addf %890, %893 : vector<1x12xf32>
    %c125 = arith.constant 125 : index
    %895 = memref.load %arg10[%c125] : memref<192xf32, #tpu.memory_space<smem>>
    %896 = vector.broadcast %895 : f32 to vector<1x12xf32>
    %897 = arith.mulf %325, %896 : vector<1x12xf32>
    %898 = arith.addf %894, %897 : vector<1x12xf32>
    %c128 = arith.constant 128 : index
    %899 = memref.load %arg10[%c128] : memref<192xf32, #tpu.memory_space<smem>>
    %900 = vector.broadcast %899 : f32 to vector<1x12xf32>
    %901 = arith.mulf %327, %900 : vector<1x12xf32>
    %902 = arith.addf %898, %901 : vector<1x12xf32>
    %c131 = arith.constant 131 : index
    %903 = memref.load %arg10[%c131] : memref<192xf32, #tpu.memory_space<smem>>
    %904 = vector.broadcast %903 : f32 to vector<1x12xf32>
    %905 = arith.mulf %329, %904 : vector<1x12xf32>
    %906 = arith.addf %902, %905 : vector<1x12xf32>
    %c134 = arith.constant 134 : index
    %907 = memref.load %arg10[%c134] : memref<192xf32, #tpu.memory_space<smem>>
    %908 = vector.broadcast %907 : f32 to vector<1x12xf32>
    %909 = arith.mulf %331, %908 : vector<1x12xf32>
    %910 = arith.addf %906, %909 : vector<1x12xf32>
    %c137 = arith.constant 137 : index
    %911 = memref.load %arg10[%c137] : memref<192xf32, #tpu.memory_space<smem>>
    %912 = vector.broadcast %911 : f32 to vector<1x12xf32>
    %913 = arith.mulf %333, %912 : vector<1x12xf32>
    %914 = arith.addf %910, %913 : vector<1x12xf32>
    %c140 = arith.constant 140 : index
    %915 = memref.load %arg10[%c140] : memref<192xf32, #tpu.memory_space<smem>>
    %916 = vector.broadcast %915 : f32 to vector<1x12xf32>
    %917 = arith.mulf %335, %916 : vector<1x12xf32>
    %918 = arith.addf %914, %917 : vector<1x12xf32>
    %c143 = arith.constant 143 : index
    %919 = memref.load %arg10[%c143] : memref<192xf32, #tpu.memory_space<smem>>
    %920 = vector.broadcast %919 : f32 to vector<1x12xf32>
    %921 = arith.mulf %337, %920 : vector<1x12xf32>
    %922 = arith.addf %918, %921 : vector<1x12xf32>
    %c5_95 = arith.constant 5 : index
    %923 = memref.load %arg11[%c5_95] : memref<8xf32, #tpu.memory_space<smem>>
    %924 = vector.broadcast %923 : f32 to vector<1x12xf32>
    %925 = arith.addf %922, %924 : vector<1x12xf32>
    %c144 = arith.constant 144 : index
    %926 = memref.load %arg10[%c144] : memref<192xf32, #tpu.memory_space<smem>>
    %927 = vector.broadcast %926 : f32 to vector<1x12xf32>
    %928 = arith.mulf %291, %927 : vector<1x12xf32>
    %c147 = arith.constant 147 : index
    %929 = memref.load %arg10[%c147] : memref<192xf32, #tpu.memory_space<smem>>
    %930 = vector.broadcast %929 : f32 to vector<1x12xf32>
    %931 = arith.mulf %293, %930 : vector<1x12xf32>
    %932 = arith.addf %928, %931 : vector<1x12xf32>
    %c150 = arith.constant 150 : index
    %933 = memref.load %arg10[%c150] : memref<192xf32, #tpu.memory_space<smem>>
    %934 = vector.broadcast %933 : f32 to vector<1x12xf32>
    %935 = arith.mulf %295, %934 : vector<1x12xf32>
    %936 = arith.addf %932, %935 : vector<1x12xf32>
    %c153 = arith.constant 153 : index
    %937 = memref.load %arg10[%c153] : memref<192xf32, #tpu.memory_space<smem>>
    %938 = vector.broadcast %937 : f32 to vector<1x12xf32>
    %939 = arith.mulf %297, %938 : vector<1x12xf32>
    %940 = arith.addf %936, %939 : vector<1x12xf32>
    %c156 = arith.constant 156 : index
    %941 = memref.load %arg10[%c156] : memref<192xf32, #tpu.memory_space<smem>>
    %942 = vector.broadcast %941 : f32 to vector<1x12xf32>
    %943 = arith.mulf %299, %942 : vector<1x12xf32>
    %944 = arith.addf %940, %943 : vector<1x12xf32>
    %c159 = arith.constant 159 : index
    %945 = memref.load %arg10[%c159] : memref<192xf32, #tpu.memory_space<smem>>
    %946 = vector.broadcast %945 : f32 to vector<1x12xf32>
    %947 = arith.mulf %301, %946 : vector<1x12xf32>
    %948 = arith.addf %944, %947 : vector<1x12xf32>
    %c162 = arith.constant 162 : index
    %949 = memref.load %arg10[%c162] : memref<192xf32, #tpu.memory_space<smem>>
    %950 = vector.broadcast %949 : f32 to vector<1x12xf32>
    %951 = arith.mulf %303, %950 : vector<1x12xf32>
    %952 = arith.addf %948, %951 : vector<1x12xf32>
    %c165 = arith.constant 165 : index
    %953 = memref.load %arg10[%c165] : memref<192xf32, #tpu.memory_space<smem>>
    %954 = vector.broadcast %953 : f32 to vector<1x12xf32>
    %955 = arith.mulf %305, %954 : vector<1x12xf32>
    %956 = arith.addf %952, %955 : vector<1x12xf32>
    %c145 = arith.constant 145 : index
    %957 = memref.load %arg10[%c145] : memref<192xf32, #tpu.memory_space<smem>>
    %958 = vector.broadcast %957 : f32 to vector<1x12xf32>
    %959 = arith.mulf %307, %958 : vector<1x12xf32>
    %960 = arith.addf %956, %959 : vector<1x12xf32>
    %c148 = arith.constant 148 : index
    %961 = memref.load %arg10[%c148] : memref<192xf32, #tpu.memory_space<smem>>
    %962 = vector.broadcast %961 : f32 to vector<1x12xf32>
    %963 = arith.mulf %309, %962 : vector<1x12xf32>
    %964 = arith.addf %960, %963 : vector<1x12xf32>
    %c151 = arith.constant 151 : index
    %965 = memref.load %arg10[%c151] : memref<192xf32, #tpu.memory_space<smem>>
    %966 = vector.broadcast %965 : f32 to vector<1x12xf32>
    %967 = arith.mulf %311, %966 : vector<1x12xf32>
    %968 = arith.addf %964, %967 : vector<1x12xf32>
    %c154 = arith.constant 154 : index
    %969 = memref.load %arg10[%c154] : memref<192xf32, #tpu.memory_space<smem>>
    %970 = vector.broadcast %969 : f32 to vector<1x12xf32>
    %971 = arith.mulf %313, %970 : vector<1x12xf32>
    %972 = arith.addf %968, %971 : vector<1x12xf32>
    %c157 = arith.constant 157 : index
    %973 = memref.load %arg10[%c157] : memref<192xf32, #tpu.memory_space<smem>>
    %974 = vector.broadcast %973 : f32 to vector<1x12xf32>
    %975 = arith.mulf %315, %974 : vector<1x12xf32>
    %976 = arith.addf %972, %975 : vector<1x12xf32>
    %c160 = arith.constant 160 : index
    %977 = memref.load %arg10[%c160] : memref<192xf32, #tpu.memory_space<smem>>
    %978 = vector.broadcast %977 : f32 to vector<1x12xf32>
    %979 = arith.mulf %317, %978 : vector<1x12xf32>
    %980 = arith.addf %976, %979 : vector<1x12xf32>
    %c163 = arith.constant 163 : index
    %981 = memref.load %arg10[%c163] : memref<192xf32, #tpu.memory_space<smem>>
    %982 = vector.broadcast %981 : f32 to vector<1x12xf32>
    %983 = arith.mulf %319, %982 : vector<1x12xf32>
    %984 = arith.addf %980, %983 : vector<1x12xf32>
    %c166 = arith.constant 166 : index
    %985 = memref.load %arg10[%c166] : memref<192xf32, #tpu.memory_space<smem>>
    %986 = vector.broadcast %985 : f32 to vector<1x12xf32>
    %987 = arith.mulf %321, %986 : vector<1x12xf32>
    %988 = arith.addf %984, %987 : vector<1x12xf32>
    %c146 = arith.constant 146 : index
    %989 = memref.load %arg10[%c146] : memref<192xf32, #tpu.memory_space<smem>>
    %990 = vector.broadcast %989 : f32 to vector<1x12xf32>
    %991 = arith.mulf %323, %990 : vector<1x12xf32>
    %992 = arith.addf %988, %991 : vector<1x12xf32>
    %c149 = arith.constant 149 : index
    %993 = memref.load %arg10[%c149] : memref<192xf32, #tpu.memory_space<smem>>
    %994 = vector.broadcast %993 : f32 to vector<1x12xf32>
    %995 = arith.mulf %325, %994 : vector<1x12xf32>
    %996 = arith.addf %992, %995 : vector<1x12xf32>
    %c152 = arith.constant 152 : index
    %997 = memref.load %arg10[%c152] : memref<192xf32, #tpu.memory_space<smem>>
    %998 = vector.broadcast %997 : f32 to vector<1x12xf32>
    %999 = arith.mulf %327, %998 : vector<1x12xf32>
    %1000 = arith.addf %996, %999 : vector<1x12xf32>
    %c155 = arith.constant 155 : index
    %1001 = memref.load %arg10[%c155] : memref<192xf32, #tpu.memory_space<smem>>
    %1002 = vector.broadcast %1001 : f32 to vector<1x12xf32>
    %1003 = arith.mulf %329, %1002 : vector<1x12xf32>
    %1004 = arith.addf %1000, %1003 : vector<1x12xf32>
    %c158 = arith.constant 158 : index
    %1005 = memref.load %arg10[%c158] : memref<192xf32, #tpu.memory_space<smem>>
    %1006 = vector.broadcast %1005 : f32 to vector<1x12xf32>
    %1007 = arith.mulf %331, %1006 : vector<1x12xf32>
    %1008 = arith.addf %1004, %1007 : vector<1x12xf32>
    %c161 = arith.constant 161 : index
    %1009 = memref.load %arg10[%c161] : memref<192xf32, #tpu.memory_space<smem>>
    %1010 = vector.broadcast %1009 : f32 to vector<1x12xf32>
    %1011 = arith.mulf %333, %1010 : vector<1x12xf32>
    %1012 = arith.addf %1008, %1011 : vector<1x12xf32>
    %c164 = arith.constant 164 : index
    %1013 = memref.load %arg10[%c164] : memref<192xf32, #tpu.memory_space<smem>>
    %1014 = vector.broadcast %1013 : f32 to vector<1x12xf32>
    %1015 = arith.mulf %335, %1014 : vector<1x12xf32>
    %1016 = arith.addf %1012, %1015 : vector<1x12xf32>
    %c167 = arith.constant 167 : index
    %1017 = memref.load %arg10[%c167] : memref<192xf32, #tpu.memory_space<smem>>
    %1018 = vector.broadcast %1017 : f32 to vector<1x12xf32>
    %1019 = arith.mulf %337, %1018 : vector<1x12xf32>
    %1020 = arith.addf %1016, %1019 : vector<1x12xf32>
    %c6_96 = arith.constant 6 : index
    %1021 = memref.load %arg11[%c6_96] : memref<8xf32, #tpu.memory_space<smem>>
    %1022 = vector.broadcast %1021 : f32 to vector<1x12xf32>
    %1023 = arith.addf %1020, %1022 : vector<1x12xf32>
    %c168 = arith.constant 168 : index
    %1024 = memref.load %arg10[%c168] : memref<192xf32, #tpu.memory_space<smem>>
    %1025 = vector.broadcast %1024 : f32 to vector<1x12xf32>
    %1026 = arith.mulf %291, %1025 : vector<1x12xf32>
    %c171 = arith.constant 171 : index
    %1027 = memref.load %arg10[%c171] : memref<192xf32, #tpu.memory_space<smem>>
    %1028 = vector.broadcast %1027 : f32 to vector<1x12xf32>
    %1029 = arith.mulf %293, %1028 : vector<1x12xf32>
    %1030 = arith.addf %1026, %1029 : vector<1x12xf32>
    %c174 = arith.constant 174 : index
    %1031 = memref.load %arg10[%c174] : memref<192xf32, #tpu.memory_space<smem>>
    %1032 = vector.broadcast %1031 : f32 to vector<1x12xf32>
    %1033 = arith.mulf %295, %1032 : vector<1x12xf32>
    %1034 = arith.addf %1030, %1033 : vector<1x12xf32>
    %c177 = arith.constant 177 : index
    %1035 = memref.load %arg10[%c177] : memref<192xf32, #tpu.memory_space<smem>>
    %1036 = vector.broadcast %1035 : f32 to vector<1x12xf32>
    %1037 = arith.mulf %297, %1036 : vector<1x12xf32>
    %1038 = arith.addf %1034, %1037 : vector<1x12xf32>
    %c180 = arith.constant 180 : index
    %1039 = memref.load %arg10[%c180] : memref<192xf32, #tpu.memory_space<smem>>
    %1040 = vector.broadcast %1039 : f32 to vector<1x12xf32>
    %1041 = arith.mulf %299, %1040 : vector<1x12xf32>
    %1042 = arith.addf %1038, %1041 : vector<1x12xf32>
    %c183 = arith.constant 183 : index
    %1043 = memref.load %arg10[%c183] : memref<192xf32, #tpu.memory_space<smem>>
    %1044 = vector.broadcast %1043 : f32 to vector<1x12xf32>
    %1045 = arith.mulf %301, %1044 : vector<1x12xf32>
    %1046 = arith.addf %1042, %1045 : vector<1x12xf32>
    %c186 = arith.constant 186 : index
    %1047 = memref.load %arg10[%c186] : memref<192xf32, #tpu.memory_space<smem>>
    %1048 = vector.broadcast %1047 : f32 to vector<1x12xf32>
    %1049 = arith.mulf %303, %1048 : vector<1x12xf32>
    %1050 = arith.addf %1046, %1049 : vector<1x12xf32>
    %c189 = arith.constant 189 : index
    %1051 = memref.load %arg10[%c189] : memref<192xf32, #tpu.memory_space<smem>>
    %1052 = vector.broadcast %1051 : f32 to vector<1x12xf32>
    %1053 = arith.mulf %305, %1052 : vector<1x12xf32>
    %1054 = arith.addf %1050, %1053 : vector<1x12xf32>
    %c169 = arith.constant 169 : index
    %1055 = memref.load %arg10[%c169] : memref<192xf32, #tpu.memory_space<smem>>
    %1056 = vector.broadcast %1055 : f32 to vector<1x12xf32>
    %1057 = arith.mulf %307, %1056 : vector<1x12xf32>
    %1058 = arith.addf %1054, %1057 : vector<1x12xf32>
    %c172 = arith.constant 172 : index
    %1059 = memref.load %arg10[%c172] : memref<192xf32, #tpu.memory_space<smem>>
    %1060 = vector.broadcast %1059 : f32 to vector<1x12xf32>
    %1061 = arith.mulf %309, %1060 : vector<1x12xf32>
    %1062 = arith.addf %1058, %1061 : vector<1x12xf32>
    %c175 = arith.constant 175 : index
    %1063 = memref.load %arg10[%c175] : memref<192xf32, #tpu.memory_space<smem>>
    %1064 = vector.broadcast %1063 : f32 to vector<1x12xf32>
    %1065 = arith.mulf %311, %1064 : vector<1x12xf32>
    %1066 = arith.addf %1062, %1065 : vector<1x12xf32>
    %c178 = arith.constant 178 : index
    %1067 = memref.load %arg10[%c178] : memref<192xf32, #tpu.memory_space<smem>>
    %1068 = vector.broadcast %1067 : f32 to vector<1x12xf32>
    %1069 = arith.mulf %313, %1068 : vector<1x12xf32>
    %1070 = arith.addf %1066, %1069 : vector<1x12xf32>
    %c181 = arith.constant 181 : index
    %1071 = memref.load %arg10[%c181] : memref<192xf32, #tpu.memory_space<smem>>
    %1072 = vector.broadcast %1071 : f32 to vector<1x12xf32>
    %1073 = arith.mulf %315, %1072 : vector<1x12xf32>
    %1074 = arith.addf %1070, %1073 : vector<1x12xf32>
    %c184 = arith.constant 184 : index
    %1075 = memref.load %arg10[%c184] : memref<192xf32, #tpu.memory_space<smem>>
    %1076 = vector.broadcast %1075 : f32 to vector<1x12xf32>
    %1077 = arith.mulf %317, %1076 : vector<1x12xf32>
    %1078 = arith.addf %1074, %1077 : vector<1x12xf32>
    %c187 = arith.constant 187 : index
    %1079 = memref.load %arg10[%c187] : memref<192xf32, #tpu.memory_space<smem>>
    %1080 = vector.broadcast %1079 : f32 to vector<1x12xf32>
    %1081 = arith.mulf %319, %1080 : vector<1x12xf32>
    %1082 = arith.addf %1078, %1081 : vector<1x12xf32>
    %c190 = arith.constant 190 : index
    %1083 = memref.load %arg10[%c190] : memref<192xf32, #tpu.memory_space<smem>>
    %1084 = vector.broadcast %1083 : f32 to vector<1x12xf32>
    %1085 = arith.mulf %321, %1084 : vector<1x12xf32>
    %1086 = arith.addf %1082, %1085 : vector<1x12xf32>
    %c170 = arith.constant 170 : index
    %1087 = memref.load %arg10[%c170] : memref<192xf32, #tpu.memory_space<smem>>
    %1088 = vector.broadcast %1087 : f32 to vector<1x12xf32>
    %1089 = arith.mulf %323, %1088 : vector<1x12xf32>
    %1090 = arith.addf %1086, %1089 : vector<1x12xf32>
    %c173 = arith.constant 173 : index
    %1091 = memref.load %arg10[%c173] : memref<192xf32, #tpu.memory_space<smem>>
    %1092 = vector.broadcast %1091 : f32 to vector<1x12xf32>
    %1093 = arith.mulf %325, %1092 : vector<1x12xf32>
    %1094 = arith.addf %1090, %1093 : vector<1x12xf32>
    %c176 = arith.constant 176 : index
    %1095 = memref.load %arg10[%c176] : memref<192xf32, #tpu.memory_space<smem>>
    %1096 = vector.broadcast %1095 : f32 to vector<1x12xf32>
    %1097 = arith.mulf %327, %1096 : vector<1x12xf32>
    %1098 = arith.addf %1094, %1097 : vector<1x12xf32>
    %c179 = arith.constant 179 : index
    %1099 = memref.load %arg10[%c179] : memref<192xf32, #tpu.memory_space<smem>>
    %1100 = vector.broadcast %1099 : f32 to vector<1x12xf32>
    %1101 = arith.mulf %329, %1100 : vector<1x12xf32>
    %1102 = arith.addf %1098, %1101 : vector<1x12xf32>
    %c182 = arith.constant 182 : index
    %1103 = memref.load %arg10[%c182] : memref<192xf32, #tpu.memory_space<smem>>
    %1104 = vector.broadcast %1103 : f32 to vector<1x12xf32>
    %1105 = arith.mulf %331, %1104 : vector<1x12xf32>
    %1106 = arith.addf %1102, %1105 : vector<1x12xf32>
    %c185 = arith.constant 185 : index
    %1107 = memref.load %arg10[%c185] : memref<192xf32, #tpu.memory_space<smem>>
    %1108 = vector.broadcast %1107 : f32 to vector<1x12xf32>
    %1109 = arith.mulf %333, %1108 : vector<1x12xf32>
    %1110 = arith.addf %1106, %1109 : vector<1x12xf32>
    %c188 = arith.constant 188 : index
    %1111 = memref.load %arg10[%c188] : memref<192xf32, #tpu.memory_space<smem>>
    %1112 = vector.broadcast %1111 : f32 to vector<1x12xf32>
    %1113 = arith.mulf %335, %1112 : vector<1x12xf32>
    %1114 = arith.addf %1110, %1113 : vector<1x12xf32>
    %c191 = arith.constant 191 : index
    %1115 = memref.load %arg10[%c191] : memref<192xf32, #tpu.memory_space<smem>>
    %1116 = vector.broadcast %1115 : f32 to vector<1x12xf32>
    %1117 = arith.mulf %337, %1116 : vector<1x12xf32>
    %1118 = arith.addf %1114, %1117 : vector<1x12xf32>
    %c7_97 = arith.constant 7 : index
    %1119 = memref.load %arg11[%c7_97] : memref<8xf32, #tpu.memory_space<smem>>
    %1120 = vector.broadcast %1119 : f32 to vector<1x12xf32>
    %1121 = arith.addf %1118, %1120 : vector<1x12xf32>
    %1122 = vector.shape_cast %435 : vector<1x12xf32> to vector<1x1x12xf32>
    %1123 = vector.shape_cast %533 : vector<1x12xf32> to vector<1x1x12xf32>
    %1124 = vector.shape_cast %631 : vector<1x12xf32> to vector<1x1x12xf32>
    %1125 = vector.shape_cast %729 : vector<1x12xf32> to vector<1x1x12xf32>
    %1126 = vector.shape_cast %827 : vector<1x12xf32> to vector<1x1x12xf32>
    %1127 = vector.shape_cast %925 : vector<1x12xf32> to vector<1x1x12xf32>
    %1128 = vector.shape_cast %1023 : vector<1x12xf32> to vector<1x1x12xf32>
    %1129 = vector.shape_cast %1121 : vector<1x12xf32> to vector<1x1x12xf32>
    %1130 = tpu.concatenate %1122, %1123, %1124, %1125, %1126, %1127, %1128, %1129 in 1 : vector<1x1x12xf32>, vector<1x1x12xf32>, vector<1x1x12xf32>, vector<1x1x12xf32>, vector<1x1x12xf32>, vector<1x1x12xf32>, vector<1x1x12xf32>, vector<1x1x12xf32> -> vector<1x8x12xf32>
    %c0_98 = arith.constant 0 : index
    %c0_99 = arith.constant 0 : index
    %1131 = vector.load %arg6[%c0_98, %c0_99] : memref<8x1xf32, #tpu.memory_space<vmem>>, vector<8x1xf32>
    %c0_100 = arith.constant 0 : index
    %c0_101 = arith.constant 0 : index
    %1132 = vector.load %arg7[%c0_100, %c0_101] : memref<8x1xf32, #tpu.memory_space<vmem>>, vector<8x1xf32>
    %cst_102 = arith.constant dense<0.000000e+00> : vector<1xf32>
    %1133 = vector.multi_reduction <add>, %1130, %cst_102 [1, 2] : vector<1x8x12xf32> to vector<1xf32>
    %1134 = vector.shape_cast %1133 : vector<1xf32> to vector<1x1x1xf32>
    %cst_103 = arith.constant 0.010416667 : f32
    %1135 = vector.broadcast %cst_103 : f32 to vector<1x1x1xf32>
    %1136 = arith.mulf %1134, %1135 : vector<1x1x1xf32>
    %1137 = vector.broadcast %1136 : vector<1x1x1xf32> to vector<1x8x12xf32>
    %1138 = arith.subf %1130, %1137 : vector<1x8x12xf32>
    %1139 = arith.mulf %1138, %1138 : vector<1x8x12xf32>
    %cst_104 = arith.constant dense<0.000000e+00> : vector<1xf32>
    %1140 = vector.multi_reduction <add>, %1139, %cst_104 [1, 2] : vector<1x8x12xf32> to vector<1xf32>
    %1141 = vector.shape_cast %1140 : vector<1xf32> to vector<1x1x1xf32>
    %cst_105 = arith.constant 0.010416667 : f32
    %1142 = vector.broadcast %cst_105 : f32 to vector<1x1x1xf32>
    %1143 = arith.mulf %1141, %1142 : vector<1x1x1xf32>
    %cst_106 = arith.constant 9.99999974E-6 : f32
    %1144 = vector.broadcast %cst_106 : f32 to vector<1x1x1xf32>
    %1145 = arith.addf %1143, %1144 : vector<1x1x1xf32>
    %1146 = math.rsqrt %1145 : vector<1x1x1xf32>
    %1147 = vector.broadcast %1146 : vector<1x1x1xf32> to vector<1x8x12xf32>
    %1148 = arith.mulf %1138, %1147 : vector<1x8x12xf32>
    %1149 = vector.shape_cast %1131 : vector<8x1xf32> to vector<1x8x1xf32>
    %1150 = vector.broadcast %1149 : vector<1x8x1xf32> to vector<1x8x12xf32>
    %1151 = arith.mulf %1148, %1150 : vector<1x8x12xf32>
    %1152 = vector.shape_cast %1132 : vector<8x1xf32> to vector<1x8x1xf32>
    %1153 = vector.broadcast %1152 : vector<1x8x1xf32> to vector<1x8x12xf32>
    %1154 = arith.addf %1151, %1153 : vector<1x8x12xf32>
    %cst_107 = arith.constant 5.000000e-01 : f32
    %1155 = vector.broadcast %cst_107 : f32 to vector<1x8x12xf32>
    %1156 = arith.mulf %1155, %1154 : vector<1x8x12xf32>
    %cst_108 = arith.constant 0.707106769 : f32
    %1157 = vector.broadcast %cst_108 : f32 to vector<1x8x12xf32>
    %1158 = arith.mulf %1154, %1157 : vector<1x8x12xf32>
    %1159 = math.absf %1158 : vector<1x8x12xf32>
    %cst_109 = arith.constant 0.327591091 : f32
    %1160 = vector.broadcast %cst_109 : f32 to vector<1x8x12xf32>
    %1161 = arith.mulf %1160, %1159 : vector<1x8x12xf32>
    %cst_110 = arith.constant 1.000000e+00 : f32
    %1162 = vector.broadcast %cst_110 : f32 to vector<1x8x12xf32>
    %1163 = arith.addf %1162, %1161 : vector<1x8x12xf32>
    %cst_111 = arith.constant 1.000000e+00 : f32
    %1164 = vector.broadcast %cst_111 : f32 to vector<1x8x12xf32>
    %1165 = arith.divf %1164, %1163 : vector<1x8x12xf32>
    %cst_112 = arith.constant 1.06140542 : f32
    %1166 = vector.broadcast %cst_112 : f32 to vector<1x8x12xf32>
    %1167 = arith.mulf %1166, %1165 : vector<1x8x12xf32>
    %cst_113 = arith.constant -1.45315206 : f32
    %1168 = vector.broadcast %cst_113 : f32 to vector<1x8x12xf32>
    %1169 = arith.addf %1167, %1168 : vector<1x8x12xf32>
    %1170 = arith.mulf %1169, %1165 : vector<1x8x12xf32>
    %cst_114 = arith.constant 1.42141378 : f32
    %1171 = vector.broadcast %cst_114 : f32 to vector<1x8x12xf32>
    %1172 = arith.addf %1170, %1171 : vector<1x8x12xf32>
    %1173 = arith.mulf %1172, %1165 : vector<1x8x12xf32>
    %cst_115 = arith.constant -0.284496725 : f32
    %1174 = vector.broadcast %cst_115 : f32 to vector<1x8x12xf32>
    %1175 = arith.addf %1173, %1174 : vector<1x8x12xf32>
    %1176 = arith.mulf %1175, %1165 : vector<1x8x12xf32>
    %cst_116 = arith.constant 0.254829586 : f32
    %1177 = vector.broadcast %cst_116 : f32 to vector<1x8x12xf32>
    %1178 = arith.addf %1176, %1177 : vector<1x8x12xf32>
    %1179 = arith.mulf %1178, %1165 : vector<1x8x12xf32>
    %cst_117 = arith.constant 0.000000e+00 : f32
    %1180 = vector.broadcast %cst_117 : f32 to vector<1x8x12xf32>
    %1181 = arith.subf %1180, %1159 : vector<1x8x12xf32>
    %1182 = arith.mulf %1181, %1159 : vector<1x8x12xf32>
    %1183 = math.exp %1182 : vector<1x8x12xf32>
    %1184 = arith.mulf %1179, %1183 : vector<1x8x12xf32>
    %cst_118 = arith.constant 1.000000e+00 : f32
    %1185 = vector.broadcast %cst_118 : f32 to vector<1x8x12xf32>
    %1186 = arith.subf %1185, %1184 : vector<1x8x12xf32>
    %cst_119 = arith.constant 0.000000e+00 : f32
    %1187 = vector.broadcast %cst_119 : f32 to vector<1x8x12xf32>
    %1188 = arith.cmpf oge, %1158, %1187 : vector<1x8x12xf32>
    %cst_120 = arith.constant 0.000000e+00 : f32
    %1189 = vector.broadcast %cst_120 : f32 to vector<1x8x12xf32>
    %1190 = arith.subf %1189, %1186 : vector<1x8x12xf32>
    %1191 = arith.select %1188, %1186, %1190 : vector<1x8x12xi1>, vector<1x8x12xf32>
    %cst_121 = arith.constant 1.000000e+00 : f32
    %1192 = vector.broadcast %cst_121 : f32 to vector<1x8x12xf32>
    %1193 = arith.addf %1192, %1191 : vector<1x8x12xf32>
    %1194 = arith.mulf %1156, %1193 : vector<1x8x12xf32>
    %1195 = vector.extract_strided_slice %1194 {offsets = [0, 0, 0], sizes = [1, 1, 12], strides = [1, 1, 1]} : vector<1x8x12xf32> to vector<1x1x12xf32>
    %1196 = vector.shape_cast %1195 : vector<1x1x12xf32> to vector<1x12xf32>
    %1197 = vector.extract_strided_slice %1194 {offsets = [0, 1, 0], sizes = [1, 1, 12], strides = [1, 1, 1]} : vector<1x8x12xf32> to vector<1x1x12xf32>
    %1198 = vector.shape_cast %1197 : vector<1x1x12xf32> to vector<1x12xf32>
    %1199 = vector.extract_strided_slice %1194 {offsets = [0, 2, 0], sizes = [1, 1, 12], strides = [1, 1, 1]} : vector<1x8x12xf32> to vector<1x1x12xf32>
    %1200 = vector.shape_cast %1199 : vector<1x1x12xf32> to vector<1x12xf32>
    %1201 = vector.extract_strided_slice %1194 {offsets = [0, 3, 0], sizes = [1, 1, 12], strides = [1, 1, 1]} : vector<1x8x12xf32> to vector<1x1x12xf32>
    %1202 = vector.shape_cast %1201 : vector<1x1x12xf32> to vector<1x12xf32>
    %1203 = vector.extract_strided_slice %1194 {offsets = [0, 4, 0], sizes = [1, 1, 12], strides = [1, 1, 1]} : vector<1x8x12xf32> to vector<1x1x12xf32>
    %1204 = vector.shape_cast %1203 : vector<1x1x12xf32> to vector<1x12xf32>
    %1205 = vector.extract_strided_slice %1194 {offsets = [0, 5, 0], sizes = [1, 1, 12], strides = [1, 1, 1]} : vector<1x8x12xf32> to vector<1x1x12xf32>
    %1206 = vector.shape_cast %1205 : vector<1x1x12xf32> to vector<1x12xf32>
    %1207 = vector.extract_strided_slice %1194 {offsets = [0, 6, 0], sizes = [1, 1, 12], strides = [1, 1, 1]} : vector<1x8x12xf32> to vector<1x1x12xf32>
    %1208 = vector.shape_cast %1207 : vector<1x1x12xf32> to vector<1x12xf32>
    %1209 = vector.extract_strided_slice %1194 {offsets = [0, 7, 0], sizes = [1, 1, 12], strides = [1, 1, 1]} : vector<1x8x12xf32> to vector<1x1x12xf32>
    %1210 = vector.shape_cast %1209 : vector<1x1x12xf32> to vector<1x12xf32>
    %c0_122 = arith.constant 0 : index
    %1211 = memref.load %arg12[%c0_122] : memref<32xf32, #tpu.memory_space<smem>>
    %1212 = vector.broadcast %1211 : f32 to vector<1x12xf32>
    %1213 = arith.mulf %1196, %1212 : vector<1x12xf32>
    %c1_123 = arith.constant 1 : index
    %1214 = memref.load %arg12[%c1_123] : memref<32xf32, #tpu.memory_space<smem>>
    %1215 = vector.broadcast %1214 : f32 to vector<1x12xf32>
    %1216 = arith.mulf %1198, %1215 : vector<1x12xf32>
    %1217 = arith.addf %1213, %1216 : vector<1x12xf32>
    %c2_124 = arith.constant 2 : index
    %1218 = memref.load %arg12[%c2_124] : memref<32xf32, #tpu.memory_space<smem>>
    %1219 = vector.broadcast %1218 : f32 to vector<1x12xf32>
    %1220 = arith.mulf %1200, %1219 : vector<1x12xf32>
    %1221 = arith.addf %1217, %1220 : vector<1x12xf32>
    %c3_125 = arith.constant 3 : index
    %1222 = memref.load %arg12[%c3_125] : memref<32xf32, #tpu.memory_space<smem>>
    %1223 = vector.broadcast %1222 : f32 to vector<1x12xf32>
    %1224 = arith.mulf %1202, %1223 : vector<1x12xf32>
    %1225 = arith.addf %1221, %1224 : vector<1x12xf32>
    %c4_126 = arith.constant 4 : index
    %1226 = memref.load %arg12[%c4_126] : memref<32xf32, #tpu.memory_space<smem>>
    %1227 = vector.broadcast %1226 : f32 to vector<1x12xf32>
    %1228 = arith.mulf %1204, %1227 : vector<1x12xf32>
    %1229 = arith.addf %1225, %1228 : vector<1x12xf32>
    %c5_127 = arith.constant 5 : index
    %1230 = memref.load %arg12[%c5_127] : memref<32xf32, #tpu.memory_space<smem>>
    %1231 = vector.broadcast %1230 : f32 to vector<1x12xf32>
    %1232 = arith.mulf %1206, %1231 : vector<1x12xf32>
    %1233 = arith.addf %1229, %1232 : vector<1x12xf32>
    %c6_128 = arith.constant 6 : index
    %1234 = memref.load %arg12[%c6_128] : memref<32xf32, #tpu.memory_space<smem>>
    %1235 = vector.broadcast %1234 : f32 to vector<1x12xf32>
    %1236 = arith.mulf %1208, %1235 : vector<1x12xf32>
    %1237 = arith.addf %1233, %1236 : vector<1x12xf32>
    %c7_129 = arith.constant 7 : index
    %1238 = memref.load %arg12[%c7_129] : memref<32xf32, #tpu.memory_space<smem>>
    %1239 = vector.broadcast %1238 : f32 to vector<1x12xf32>
    %1240 = arith.mulf %1210, %1239 : vector<1x12xf32>
    %1241 = arith.addf %1237, %1240 : vector<1x12xf32>
    %c0_130 = arith.constant 0 : index
    %1242 = memref.load %arg13[%c0_130] : memref<4xf32, #tpu.memory_space<smem>>
    %1243 = vector.broadcast %1242 : f32 to vector<1x12xf32>
    %1244 = arith.addf %1241, %1243 : vector<1x12xf32>
    %c8_131 = arith.constant 8 : index
    %1245 = memref.load %arg12[%c8_131] : memref<32xf32, #tpu.memory_space<smem>>
    %1246 = vector.broadcast %1245 : f32 to vector<1x12xf32>
    %1247 = arith.mulf %1196, %1246 : vector<1x12xf32>
    %c9_132 = arith.constant 9 : index
    %1248 = memref.load %arg12[%c9_132] : memref<32xf32, #tpu.memory_space<smem>>
    %1249 = vector.broadcast %1248 : f32 to vector<1x12xf32>
    %1250 = arith.mulf %1198, %1249 : vector<1x12xf32>
    %1251 = arith.addf %1247, %1250 : vector<1x12xf32>
    %c10_133 = arith.constant 10 : index
    %1252 = memref.load %arg12[%c10_133] : memref<32xf32, #tpu.memory_space<smem>>
    %1253 = vector.broadcast %1252 : f32 to vector<1x12xf32>
    %1254 = arith.mulf %1200, %1253 : vector<1x12xf32>
    %1255 = arith.addf %1251, %1254 : vector<1x12xf32>
    %c11_134 = arith.constant 11 : index
    %1256 = memref.load %arg12[%c11_134] : memref<32xf32, #tpu.memory_space<smem>>
    %1257 = vector.broadcast %1256 : f32 to vector<1x12xf32>
    %1258 = arith.mulf %1202, %1257 : vector<1x12xf32>
    %1259 = arith.addf %1255, %1258 : vector<1x12xf32>
    %c12_135 = arith.constant 12 : index
    %1260 = memref.load %arg12[%c12_135] : memref<32xf32, #tpu.memory_space<smem>>
    %1261 = vector.broadcast %1260 : f32 to vector<1x12xf32>
    %1262 = arith.mulf %1204, %1261 : vector<1x12xf32>
    %1263 = arith.addf %1259, %1262 : vector<1x12xf32>
    %c13_136 = arith.constant 13 : index
    %1264 = memref.load %arg12[%c13_136] : memref<32xf32, #tpu.memory_space<smem>>
    %1265 = vector.broadcast %1264 : f32 to vector<1x12xf32>
    %1266 = arith.mulf %1206, %1265 : vector<1x12xf32>
    %1267 = arith.addf %1263, %1266 : vector<1x12xf32>
    %c14_137 = arith.constant 14 : index
    %1268 = memref.load %arg12[%c14_137] : memref<32xf32, #tpu.memory_space<smem>>
    %1269 = vector.broadcast %1268 : f32 to vector<1x12xf32>
    %1270 = arith.mulf %1208, %1269 : vector<1x12xf32>
    %1271 = arith.addf %1267, %1270 : vector<1x12xf32>
    %c15_138 = arith.constant 15 : index
    %1272 = memref.load %arg12[%c15_138] : memref<32xf32, #tpu.memory_space<smem>>
    %1273 = vector.broadcast %1272 : f32 to vector<1x12xf32>
    %1274 = arith.mulf %1210, %1273 : vector<1x12xf32>
    %1275 = arith.addf %1271, %1274 : vector<1x12xf32>
    %c1_139 = arith.constant 1 : index
    %1276 = memref.load %arg13[%c1_139] : memref<4xf32, #tpu.memory_space<smem>>
    %1277 = vector.broadcast %1276 : f32 to vector<1x12xf32>
    %1278 = arith.addf %1275, %1277 : vector<1x12xf32>
    %c16_140 = arith.constant 16 : index
    %1279 = memref.load %arg12[%c16_140] : memref<32xf32, #tpu.memory_space<smem>>
    %1280 = vector.broadcast %1279 : f32 to vector<1x12xf32>
    %1281 = arith.mulf %1196, %1280 : vector<1x12xf32>
    %c17_141 = arith.constant 17 : index
    %1282 = memref.load %arg12[%c17_141] : memref<32xf32, #tpu.memory_space<smem>>
    %1283 = vector.broadcast %1282 : f32 to vector<1x12xf32>
    %1284 = arith.mulf %1198, %1283 : vector<1x12xf32>
    %1285 = arith.addf %1281, %1284 : vector<1x12xf32>
    %c18_142 = arith.constant 18 : index
    %1286 = memref.load %arg12[%c18_142] : memref<32xf32, #tpu.memory_space<smem>>
    %1287 = vector.broadcast %1286 : f32 to vector<1x12xf32>
    %1288 = arith.mulf %1200, %1287 : vector<1x12xf32>
    %1289 = arith.addf %1285, %1288 : vector<1x12xf32>
    %c19_143 = arith.constant 19 : index
    %1290 = memref.load %arg12[%c19_143] : memref<32xf32, #tpu.memory_space<smem>>
    %1291 = vector.broadcast %1290 : f32 to vector<1x12xf32>
    %1292 = arith.mulf %1202, %1291 : vector<1x12xf32>
    %1293 = arith.addf %1289, %1292 : vector<1x12xf32>
    %c20_144 = arith.constant 20 : index
    %1294 = memref.load %arg12[%c20_144] : memref<32xf32, #tpu.memory_space<smem>>
    %1295 = vector.broadcast %1294 : f32 to vector<1x12xf32>
    %1296 = arith.mulf %1204, %1295 : vector<1x12xf32>
    %1297 = arith.addf %1293, %1296 : vector<1x12xf32>
    %c21_145 = arith.constant 21 : index
    %1298 = memref.load %arg12[%c21_145] : memref<32xf32, #tpu.memory_space<smem>>
    %1299 = vector.broadcast %1298 : f32 to vector<1x12xf32>
    %1300 = arith.mulf %1206, %1299 : vector<1x12xf32>
    %1301 = arith.addf %1297, %1300 : vector<1x12xf32>
    %c22_146 = arith.constant 22 : index
    %1302 = memref.load %arg12[%c22_146] : memref<32xf32, #tpu.memory_space<smem>>
    %1303 = vector.broadcast %1302 : f32 to vector<1x12xf32>
    %1304 = arith.mulf %1208, %1303 : vector<1x12xf32>
    %1305 = arith.addf %1301, %1304 : vector<1x12xf32>
    %c23_147 = arith.constant 23 : index
    %1306 = memref.load %arg12[%c23_147] : memref<32xf32, #tpu.memory_space<smem>>
    %1307 = vector.broadcast %1306 : f32 to vector<1x12xf32>
    %1308 = arith.mulf %1210, %1307 : vector<1x12xf32>
    %1309 = arith.addf %1305, %1308 : vector<1x12xf32>
    %c2_148 = arith.constant 2 : index
    %1310 = memref.load %arg13[%c2_148] : memref<4xf32, #tpu.memory_space<smem>>
    %1311 = vector.broadcast %1310 : f32 to vector<1x12xf32>
    %1312 = arith.addf %1309, %1311 : vector<1x12xf32>
    %c24_149 = arith.constant 24 : index
    %1313 = memref.load %arg12[%c24_149] : memref<32xf32, #tpu.memory_space<smem>>
    %1314 = vector.broadcast %1313 : f32 to vector<1x12xf32>
    %1315 = arith.mulf %1196, %1314 : vector<1x12xf32>
    %c25_150 = arith.constant 25 : index
    %1316 = memref.load %arg12[%c25_150] : memref<32xf32, #tpu.memory_space<smem>>
    %1317 = vector.broadcast %1316 : f32 to vector<1x12xf32>
    %1318 = arith.mulf %1198, %1317 : vector<1x12xf32>
    %1319 = arith.addf %1315, %1318 : vector<1x12xf32>
    %c26_151 = arith.constant 26 : index
    %1320 = memref.load %arg12[%c26_151] : memref<32xf32, #tpu.memory_space<smem>>
    %1321 = vector.broadcast %1320 : f32 to vector<1x12xf32>
    %1322 = arith.mulf %1200, %1321 : vector<1x12xf32>
    %1323 = arith.addf %1319, %1322 : vector<1x12xf32>
    %c27_152 = arith.constant 27 : index
    %1324 = memref.load %arg12[%c27_152] : memref<32xf32, #tpu.memory_space<smem>>
    %1325 = vector.broadcast %1324 : f32 to vector<1x12xf32>
    %1326 = arith.mulf %1202, %1325 : vector<1x12xf32>
    %1327 = arith.addf %1323, %1326 : vector<1x12xf32>
    %c28_153 = arith.constant 28 : index
    %1328 = memref.load %arg12[%c28_153] : memref<32xf32, #tpu.memory_space<smem>>
    %1329 = vector.broadcast %1328 : f32 to vector<1x12xf32>
    %1330 = arith.mulf %1204, %1329 : vector<1x12xf32>
    %1331 = arith.addf %1327, %1330 : vector<1x12xf32>
    %c29_154 = arith.constant 29 : index
    %1332 = memref.load %arg12[%c29_154] : memref<32xf32, #tpu.memory_space<smem>>
    %1333 = vector.broadcast %1332 : f32 to vector<1x12xf32>
    %1334 = arith.mulf %1206, %1333 : vector<1x12xf32>
    %1335 = arith.addf %1331, %1334 : vector<1x12xf32>
    %c30_155 = arith.constant 30 : index
    %1336 = memref.load %arg12[%c30_155] : memref<32xf32, #tpu.memory_space<smem>>
    %1337 = vector.broadcast %1336 : f32 to vector<1x12xf32>
    %1338 = arith.mulf %1208, %1337 : vector<1x12xf32>
    %1339 = arith.addf %1335, %1338 : vector<1x12xf32>
    %c31_156 = arith.constant 31 : index
    %1340 = memref.load %arg12[%c31_156] : memref<32xf32, #tpu.memory_space<smem>>
    %1341 = vector.broadcast %1340 : f32 to vector<1x12xf32>
    %1342 = arith.mulf %1210, %1341 : vector<1x12xf32>
    %1343 = arith.addf %1339, %1342 : vector<1x12xf32>
    %c3_157 = arith.constant 3 : index
    %1344 = memref.load %arg13[%c3_157] : memref<4xf32, #tpu.memory_space<smem>>
    %1345 = vector.broadcast %1344 : f32 to vector<1x12xf32>
    %1346 = arith.addf %1343, %1345 : vector<1x12xf32>
    %1347 = vector.shape_cast %1244 : vector<1x12xf32> to vector<1x1x12xf32>
    %1348 = vector.shape_cast %1278 : vector<1x12xf32> to vector<1x1x12xf32>
    %1349 = vector.shape_cast %1312 : vector<1x12xf32> to vector<1x1x12xf32>
    %1350 = vector.shape_cast %1346 : vector<1x12xf32> to vector<1x1x12xf32>
    %1351 = tpu.concatenate %1347, %1348, %1349, %1350 in 1 : vector<1x1x12xf32>, vector<1x1x12xf32>, vector<1x1x12xf32>, vector<1x1x12xf32> -> vector<1x4x12xf32>
    %1352 = vector.extract_strided_slice %0 {offsets = [0, 0, 2], sizes = [1, 4, 12], strides = [1, 1, 1]} : vector<1x4x16xf32> to vector<1x4x12xf32>
    %1353 = arith.addf %1351, %1352 : vector<1x4x12xf32>
    %c0_158 = arith.constant 0 : index
    %c0_159 = arith.constant 0 : index
    %c0_160 = arith.constant 0 : index
    %1354 = vector.load %arg14[%c0_158, %c0_159, %c0_160] : memref<1x4x12xf32, #tpu.memory_space<vmem>>, vector<1x4x12xf32>
    tpu.vector_store %arg14[%c0_158, %c0_159, %c0_160], %1353 {strides = array<i32>} : memref<1x4x12xf32, #tpu.memory_space<vmem>>, vector<1x4x12xf32>,
    return
  }
  func.func @transform_0(%arg0: i32) -> (i32, i32, i32) {
    %c0_i32 = arith.constant 0 : i32
    %c0_i32_0 = arith.constant 0 : i32
    %c0_i32_1 = arith.constant 0 : i32
    return %arg0, %c0_i32, %c0_i32_0 : i32, i32, i32
  }
  func.func @transform_1(%arg0: i32) -> (i32, i32) {
    %c0_i32 = arith.constant 0 : i32
    %c0_i32_0 = arith.constant 0 : i32
    %c0_i32_1 = arith.constant 0 : i32
    return %c0_i32, %c0_i32_0 : i32, i32
  }
  func.func @transform_2(%arg0: i32) -> (i32, i32) {
    %c0_i32 = arith.constant 0 : i32
    %c0_i32_0 = arith.constant 0 : i32
    %c0_i32_1 = arith.constant 0 : i32
    return %c0_i32, %c0_i32_0 : i32, i32
  }
  func.func @transform_3(%arg0: i32) -> (i32, i32) {
    %c0_i32 = arith.constant 0 : i32
    %c0_i32_0 = arith.constant 0 : i32
    %c0_i32_1 = arith.constant 0 : i32
    return %c0_i32, %c0_i32_0 : i32, i32
  }
  func.func @transform_4(%arg0: i32) -> (i32, i32) {
    %c0_i32 = arith.constant 0 : i32
    %c0_i32_0 = arith.constant 0 : i32
    %c0_i32_1 = arith.constant 0 : i32
    return %c0_i32, %c0_i32_0 : i32, i32
  }
  func.func @transform_5(%arg0: i32) -> (i32, i32) {
    %c0_i32 = arith.constant 0 : i32
    %c0_i32_0 = arith.constant 0 : i32
    %c0_i32_1 = arith.constant 0 : i32
    return %c0_i32, %c0_i32_0 : i32, i32
  }
  func.func @transform_6(%arg0: i32) -> (i32, i32) {
    %c0_i32 = arith.constant 0 : i32
    %c0_i32_0 = arith.constant 0 : i32
    %c0_i32_1 = arith.constant 0 : i32
    return %c0_i32, %c0_i32_0 : i32, i32
  }
  func.func @transform_7(%arg0: i32) -> i32 {
    %c0_i32 = arith.constant 0 : i32
    %c0_i32_0 = arith.constant 0 : i32
    return %c0_i32 : i32
  }
  func.func @transform_8(%arg0: i32) -> i32 {
    %c0_i32 = arith.constant 0 : i32
    %c0_i32_0 = arith.constant 0 : i32
    return %c0_i32 : i32
  }
  func.func @transform_9(%arg0: i32) -> i32 {
    %c0_i32 = arith.constant 0 : i32
    %c0_i32_0 = arith.constant 0 : i32
    return %c0_i32 : i32
  }
  func.func @transform_10(%arg0: i32) -> i32 {
    %c0_i32 = arith.constant 0 : i32
    %c0_i32_0 = arith.constant 0 : i32
    return %c0_i32 : i32
  }
  func.func @transform_11(%arg0: i32) -> i32 {
    %c0_i32 = arith.constant 0 : i32
    %c0_i32_0 = arith.constant 0 : i32
    return %c0_i32 : i32
  }
  func.func @transform_12(%arg0: i32) -> i32 {
    %c0_i32 = arith.constant 0 : i32
    %c0_i32_0 = arith.constant 0 : i32
    return %c0_i32 : i32
  }
  func.func @transform_13(%arg0: i32) -> (i32, i32, i32) {
    %c0_i32 = arith.constant 0 : i32
    %c0_i32_0 = arith.constant 0 : i32
    %c0_i32_1 = arith.constant 0 : i32
    return %arg0, %c0_i32, %c0_i32_0 : i32, i32, i32
  }
}

</mosaic_0001>

<bundles_post_ra>
// kernel: tpu_custom_call.1
= control target key start
LH: loop header
LB: loop body
LE: loop exit
PB: predicated region body
PF: predicated region fallthrough
CT: control target
= control target key end

     0   :  { %s5425_s0 = inlined_call_operand.vmem [shape: f32[2,4,16], index: 0, kind: input, shape index: {}]   ;;  %s5426_s1 = inlined_call_operand.vmem [shape: f32[4,1], index: 1, kind: input, shape index: {}]   ;;  %s5427_s2 = inlined_call_operand.vmem [shape: f32[4,1], index: 2, kind: input, shape index: {}]   ;;  %s5428_s3 = inlined_call_operand.vmem [shape: f32[8,1], index: 3, kind: input, shape index: {}]   ;;  %s5429_s4 = inlined_call_operand.vmem [shape: f32[8,1], index: 4, kind: input, shape index: {}]   ;;  %s5430_s5 = inlined_call_operand.vmem [shape: f32[8,1], index: 5, kind: input, shape index: {}]   ;;  %s5431_s6 = inlined_call_operand.vmem [shape: f32[8,1], index: 6, kind: input, shape index: {}]   ;;  %s5432_s7 = inlined_call_operand.vmem [shape: f32[32], index: 7, kind: input, shape index: {}]   ;;  %s5433_s8 = inlined_call_operand.vmem [shape: f32[8], index: 8, kind: input, shape index: {}]   ;;  %s5434_s9 = inlined_call_operand.vmem [shape: f32[192], index: 9, kind: input, shape index: {}]   ;;  %s5435_s10 = inlined_call_operand.vmem [shape: f32[8], index: 10, kind: input, shape index: {}]   ;;  %s5436_s11 = inlined_call_operand.vmem [shape: f32[32], index: 11, kind: input, shape index: {}]   ;;  %s5437_s12 = inlined_call_operand.vmem [shape: f32[4], index: 12, kind: input, shape index: {}]   ;;  %s5438_s13 = inlined_call_operand.hbm [shape: f32[2,4,12], index: 13, kind: output, shape index: {}]  }
   0x1   :  { %5510 = sst [smem:[#allocation84_spill]] %s5425_s0 }
   0x2   :  { %5511 = sst [smem:[#allocation85_spill]] %s5426_s1 }
   0x3   :  { %5512 = sst [smem:[#allocation86_spill]] %s5427_s2 }
   0x4   :  { %5513 = sst [smem:[#allocation87_spill]] %s5428_s3 }
   0x5   :  { %5514 = sst [smem:[#allocation88_spill]] %s5429_s4 }
   0x6   :  { %5515 = sst [smem:[#allocation89_spill]] %s5430_s5 }
   0x7   :  { %5516 = sst [smem:[#allocation90_spill]] %s5431_s6 }
   0x8   :  { %5517 = sst [smem:[#allocation91_spill]] %s5432_s7 }
   0x9   :  { %5518 = sst [smem:[#allocation92_spill]] %s5433_s8 }
   0xa   :  { %5519 = sst [smem:[#allocation93_spill]] %s5434_s9 }
   0xb   :  { %5520 = sst [smem:[#allocation94_spill]] %s5435_s10 }
   0xc   :  { %5521 = sst [smem:[#allocation95_spill]] %s5436_s11 }
   0xd   :  { %5522 = sst [smem:[#allocation96_spill]] %s5437_s12 }
   0xe   :  { %5523 = sst [smem:[#allocation97_spill]] %s5438_s13 }
   0xf   :  { %18 = vsyncpa [#allocation4], 0 }
  0x10   :  { %19 = vsyncpa [#allocation6], 0 }
  0x11   :  { %20 = vsyncpa [#allocation9], 0 }
  0x12   :  { %21 = vsyncpa [#allocation12], 0 }
  0x13   :  { %22 = vsyncpa [#allocation3], 0 }
  0x14   :  { %24 = vsyncpa [#allocation3 + $0x1], 0  ;;  %s3606_s25 = smov 0   ;;  %s3608_s26 = smov 0  }
  0x15   :  { %s3610_s27 = smov 0   ;;  %s3612_s28 = smov 0  }
  0x16 LB: > { %5524 = sst [smem:[#allocation19_spill]] %s3512_s25  ;;  %s3627_s29 = sadd.s32 4294967295, %s3524_s28   ;;  %s3524_s28 = sphi %s3612_s28, %s5745_s28   ;;  %s3520_s27 = sphi %s3610_s27, %s5748_s27   ;;  %s3516_s26 = sphi %s3608_s26, %s5747_s26   ;;  %s3512_s25 = sphi %s3606_s25, %s5746_s25  }
  0x17   : > { %5525 = sst [smem:[#allocation20_spill]] %s3516_s26  ;;  %s2942_s30 = sadd.s32 4294967294, %s3524_s28  }
  0x18   : > { %5526 = sst [smem:[#allocation21_spill]] %s3520_s27  ;;  %s3631_s14 = sadd.s32 1, %s3524_s28  }
  0x19   : > { %5527 = sst [smem:[#allocation22_spill]] %s3524_s28  ;;  %s315_s15 = sadd.s32 1, %s3520_s27 }
  0x1a   : > { %5528 = sst [smem:[#allocation23_spill]] %s3627_s29  ;;  %s312_s16 = ssub.s32 %s3524_s28, %s3631_s14 }
  0x1b   : > { %5529 = sst [smem:[#allocation24_spill]] %s3631_s14  ;;  %p325_p0 = scmp.ne.s32.totalorder %s3520_s27, %s3516_s26 }
  0x1c   : > { %p313_p1 = scmp.eq.s32.totalorder %s312_s16, 0  ;;  %p326_p2 = scmp.eq.s32.totalorder %s3627_s29, 1 }
  0x1d   : > { %p331_p3 = scmp.ne.s32.totalorder %s3516_s26, %s3512_s25  ;;  %p332_p4 = scmp.eq.s32.totalorder %s2942_s30, 1 }
  0x1e   : > { %s3642_s17 = scalar_select %p313_p1, %s3520_s27, %s315_s15  }
  0x1f   : > { %p3644_p5 = por %p326_p2, %p325_p0  ;;  %p3648_p6 = por %p332_p4, %p331_p3 }
  0x20   : > { %5530 = sst [smem:[#allocation25_spill]] %s3642_s17  ;;  %p2943_p7 = scmp.ge.s32.totalorder %s3524_s28, 1 }
  0x21   : > { %s5531_s18 = scalar_select %p3644_p5, 1, 0 }
  0x22   : > { %s5533_s19 = scalar_select %p3648_p6, 1, 0 }
  0x23   : > { %5532 = sst [smem:[#allocation26_spill]] %s5531_s18  ;;  %p339_p8 = scmp.lt.s32.totalorder %s3524_s28, 3 }
  0x24   : > { %5534 = sst [smem:[#allocation27_spill]] %s5533_s19  ;;  %p5443_p9 = scmp.eq.s32.totalorder %s3627_s29, 0 }
  0x25   : > { %p3655_p10 = pnand %p2943_p7, %p339_p8  ;;  %s5536_s8 = sld [smem:[#allocation92_spill]] }
  0x26   : > { %s5537_s10 = sld [smem:[#allocation94_spill]] }
  0x27   : > { %s5535_s20 = scalar_select %p3655_p10, 1, 0 }
  0x28   : > { %p3260_p11 = pneg %p3655_p10  ;;  %s5539_s7 = sld [smem:[#allocation91_spill]] }
  0x29   : > { %s5540_s9 = sld [smem:[#allocation93_spill]] }
  0x2a   : > { %p3669_p12 = pnand %p5443_p9, %p3260_p11 }
  0x2b   : > { %s381_s23 = sshll.u32 %s5536_s8, 4  ;;  %s382_s23 = int_to_ptr.vmem [resolvable:$true] %s381_s23 }
  0x2c   : > { %s403_s15 = sshll.u32 %s5537_s10, 4  ;;  %s3358_s19 = scalar_lea.vmem %s382_s23, 16  ;;  %s404_s15 = int_to_ptr.vmem [resolvable:$true] %s403_s15 }
  0x2d   : > { %p3359_p13 = scmp.ne.s32.totalorder %s382_s23, %s3358_s19  ;;  %p3683_p0 = pneg %p3669_p12 }
  0x2e   : > { %s370_s21 = sshll.u32 %s5539_s7, 4  ;;  %p3366_p3 = scmp.lt.s32.totalorder %s382_s23, %s382_s23  ;;  %s3676_s21 = int_to_ptr.vmem [resolvable:$true] %s370_s21 }
  0x2f   : > { %s392_s14 = sshll.u32 %s5540_s9, 4  ;;  %p3361_p1 = pnand %p3683_p0, %p3359_p13  ;;  %s393_s14 = int_to_ptr.vmem [resolvable:$true] %s392_s14 }
  0x30   : > { %p3367_p4 = scmp.lt.s32.totalorder %s3358_s19, %s3358_s19 }
  0x31   : > { %p3362_p2 = pneg %p3361_p1 }
  0x32   : > { %p3368_p7 = por %p3367_p4, %p3366_p3 }
  0x34   : > { %p3369_p8 = pnand %p3368_p7, %p3362_p2 }
  0x36   : > { %3372 = shalt.err (!%p3369_p8)
}
  0x37   : > { %s3526_s27 = smov [#allocation5]   ;;  %s3373_s8 = scalar_lea.vmem %s404_s15, 16 }
  0x38   : > { %3266 = dma.vmem_to_smem (!%p3669_p12), %s382_s23, 16, %s3526_s27, [#allocation6]  }
  0x39   : > { %p3374_p11 = scmp.ne.s32.totalorder %s404_s15, %s3373_s8  ;;  %p3381_p5 = scmp.lt.s32.totalorder %s404_s15, %s404_s15 }
  0x3a   : > { %p3382_p10 = scmp.lt.s32.totalorder %s3373_s8, %s3373_s8 }
  0x3b   : > { %p3376_p9 = pnand %p3374_p11, %p3683_p0 }
  0x3c   : > { %p3383_p13 = por %p3382_p10, %p3381_p5 }
  0x3d   : > { %p3377_p6 = pneg %p3376_p9 }
  0x3f   : > { %p3384_p1 = pnand %p3383_p13, %p3377_p6 }
  0x41   : > { %3387 = shalt.err (!%p3384_p1)
}
  0x42   : > { %s3527_s17 = smov [#allocation8]   ;;  %s3388_s19 = scalar_lea.vmem %s3676_s21, 16 }
  0x43   : > { %3272 = dma.vmem_to_smem (!%p3669_p12), %s404_s15, 16, %s3527_s17, [#allocation9]  }
  0x44   : > { %p3389_p2 = scmp.ne.s32.totalorder %s3676_s21, %s3388_s19  ;;  %p3396_p9 = scmp.lt.s32.totalorder %s3676_s21, %s3676_s21 }
  0x45   : > { %p3397_p7 = scmp.lt.s32.totalorder %s3388_s19, %s3388_s19 }
  0x46   : > { %p3391_p3 = pnand %p3389_p2, %p3683_p0 }
  0x47   : > { %p3398_p8 = por %p3397_p7, %p3396_p9 }
  0x48   : > { %p3392_p4 = pneg %p3391_p3 }
  0x4a   : > { %p3399_p5 = pnand %p3398_p8, %p3392_p4 }
  0x4c   : > { %3402 = shalt.err (!%p3399_p5)
}
  0x4d   : > { %s3528_s23 = smov [#allocation2]   ;;  %s3403_s15 = scalar_lea.vmem %s393_s14, 32 }
  0x4e   : > { %3263 = dma.vmem_to_smem (!%p3669_p12), %s3676_s21, 16, %s3528_s23, [#allocation4]  }
  0x4f   : > { %p3404_p6 = scmp.ne.s32.totalorder %s393_s14, %s3403_s15  ;;  %p3411_p13 = scmp.lt.s32.totalorder %s393_s14, %s393_s14 }
  0x50   : > { %p3412_p1 = scmp.lt.s32.totalorder %s3403_s15, %s3403_s15 }
  0x51   : > { %p3406_p10 = pnand %p3404_p6, %p3683_p0 }
  0x52   : > { %p3413_p2 = por %p3412_p1, %p3411_p13 }
  0x53   : > { %p3407_p11 = pneg %p3406_p10 }
  0x55   : > { %p3414_p3 = pnand %p3413_p2, %p3407_p11 }
  0x57   : > { %3417 = shalt.err (!%p3414_p3)
}
  0x58   : > { %s3529_s27 = smov [#allocation7]   ;;  %s5542_s11 = sld [smem:[#allocation95_spill]] }
  0x59   : > { %3269 = dma.vmem_to_smem (!%p3669_p12), %s393_s14, 32, %s3529_s27, [#allocation6]  }
  0x5a   : > { %s5543_s12 = sld [smem:[#allocation96_spill]] }
  0x5e   : > { %s414_s17 = sshll.u32 %s5542_s11, 4  ;;  %s415_s17 = int_to_ptr.vmem [resolvable:$true] %s414_s17 }
  0x5f   : > { %s3418_s22 = scalar_lea.vmem %s415_s17, 16  ;;  %p3426_p8 = scmp.lt.s32.totalorder %s415_s17, %s415_s17 }
  0x60   : > { %s425_s30 = sshll.u32 %s5543_s12, 4  ;;  %p3419_p4 = scmp.ne.s32.totalorder %s415_s17, %s3418_s22  ;;  %s426_s30 = int_to_ptr.vmem [resolvable:$true] %s425_s30 }
  0x61   : > { %p3427_p5 = scmp.lt.s32.totalorder %s3418_s22, %s3418_s22 }
  0x62   : > { %p3421_p9 = pnand %p3419_p4, %p3683_p0 }
  0x63   : > { %p3428_p6 = por %p3427_p5, %p3426_p8 }
  0x64   : > { %p3422_p7 = pneg %p3421_p9 }
  0x66   : > { %p3429_p10 = pnand %p3428_p6, %p3422_p7 }
  0x68   : > { %3432 = shalt.err (!%p3429_p10)
}
  0x69   : > { %s3530_s14 = smov [#allocation10]   ;;  %s3433_s15 = scalar_lea.vmem %s426_s30, 16 }
  0x6a   : > { %3275 = dma.vmem_to_smem (!%p3669_p12), %s415_s17, 16, %s3530_s14, [#allocation9]  }
  0x6b   : > { %p3434_p11 = scmp.ne.s32.totalorder %s426_s30, %s3433_s15  ;;  %p3441_p2 = scmp.lt.s32.totalorder %s426_s30, %s426_s30 }
  0x6c   : > { %p3442_p3 = scmp.lt.s32.totalorder %s3433_s15, %s3433_s15 }
  0x6d   : > { %p3436_p13 = pnand %p3434_p11, %p3683_p0 }
  0x6e   : > { %p3443_p4 = por %p3442_p3, %p3441_p2 }
  0x6f   : > { %p3437_p1 = pneg %p3436_p13 }
  0x71   : > { %p3444_p9 = pnand %p3443_p4, %p3437_p1 }
  0x73   : > { %3447 = shalt.err (!%p3444_p9)
}
  0x74   : > { %s3531_s27 = smov [#allocation11]   ;;  %p5544_p7 = scmp.ne.s32.totalorder %s5535_s20, 0 }
  0x75   : > { %3278 = dma.vmem_to_smem (!%p3669_p12), %s426_s30, 16, %s3531_s27, [#allocation12]  }
  0x76   : > { %445 = sbr.rel (%p5544_p7) target bundleno = 1789 (0x6fd), region = 72 }
  0x7b   : > { %p5545_p8 = scmp.eq.s32.totalorder %s3627_s29, 0 }
  0x7d   : > { %3491 = dma.done.wait (%p5545_p8), [#allocation4], 16   ;;  %p5546_p5 = pmov %p5545_p8 }
  0x7f   : > { %3493 = vsyncadd (%p5546_p5), [#allocation4], 4294967280  ;;  %p5547_p0 = pmov %p5546_p5 }
  0x81   : > { %3495 = dma.done.wait (%p5547_p0), [#allocation6], 48   ;;  %p5548_p6 = pmov %p5547_p0 }
  0x82   : > { %p5549_p10 = pmov %p5547_p0 }
  0x83   : > { %3497 = vsyncadd (%p5548_p6), [#allocation6], 4294967248 }
  0x84   : > { %3499 = dma.done.wait (%p5549_p10), [#allocation9], 32   ;;  %p5550_p12 = pmov %p5547_p0 }
  0x85   : > { %p5551_p11 = pmov %p5547_p0 }
  0x86   : > { %3501 = vsyncadd (%p5550_p12), [#allocation9], 4294967264 }
  0x87   : > { %3503 = dma.done.wait (%p5551_p11), [#allocation12], 16   ;;  %p5552_p13 = pmov %p5547_p0 }
  0x89   : > { %3505 = vsyncadd (%p5552_p13), [#allocation12], 4294967280 }
  0x8a   : > { %471 = sfence }
  0x8b   : > { %p509_p1 = scmp.lt.s32.totalorder %s3627_s29, 1  ;;  %vm516_vm0 = vcmask 125952   ;;  %s5553_s0 = sld [smem:[#allocation84_spill]]  ;;  %v3532_v3 = vmov 0   ;;  %vm818_vm2 = vcmask 1040384   ;;  %vm820_vm3 = vcmask 1041408  }
  0x8c   : > { %s5555_s1 = sld [smem:[#allocation85_spill]]  ;;  %3337 = vset.pattern.permute.xlu1 %v3532_v3  ;;  %3338 = vset.pattern.permute.xlu0 %v3532_v3  ;;  %vm822_vm4 = vcmask 1042432   ;;  %vm824_vm5 = vcmask 1043456   ;;  %vm826_vm6 = vcmask 1044480   ;;  %vm828_vm7 = vcmask 1045504  }
  0x8d   : > { %s510_s20 = scalar_select %p509_p1, %s3627_s29, 1  ;;  %vm830_vm8 = vcmask 1046528   ;;  %vm834_vm9 = vcmask 130048   ;;  %vm2505_vm11 = vcmask 97280   ;;  %vm2807_vm13 = vcmask 93184  }
  0x8e   : > { %s5556_s2 = sld [smem:[#allocation86_spill]] }
  0x8f   : > { %s2959_s16 = sshll.u32 %s510_s20, 2  ;;  %s5557_s4 = sld [smem:[#allocation88_spill]] }
  0x90   : > { %s5558_s3 = sld [smem:[#allocation87_spill]] }
  0x91   : > { %s3749_s8 = scalar_lea.vmem %s5553_s0, %s2959_s16  ;;  %s3772_s20 = sld [smem:[#allocation2]] }
  0x92   : > { %5554 = sst [smem:[#allocation28_spill]] %s3749_s8  ;;  %v513_v0 = vld [vmem:[%s3749_s8] sm:$0xf] }
  0x93   : > { %v517_v1 = vsel %vm516_vm0, %v513_v0, 0.0  ;;  %v514_v2 = vld [vmem:[%s5555_s1] sm:$0xf]  ;;  %s3774_s16 = sld [smem:[#allocation2 + $0x1]] }
  0x94   : > { %518 = vadd.xlane.f32.xlu0 %v517_v1  ;;  %544 = vperm.xlu1 %3337, %v514_v2   ;;  %v515_v4 = vld [vmem:[%s5556_s2] sm:$0xf]  ;;  %s3776_s24 = sld [smem:[#allocation2 + $0x2]] }
  0x95   : > { %v833_v5 = vld [vmem:[%s5557_s4] sm:$0xff]  ;;  %s3778_s21 = sld [smem:[#allocation2 + $0x3]] }
  0x96   : > { %v832_v17 = vld [vmem:[%s5558_s3] sm:$0xff]  ;;  %s3780_s17 = sld [smem:[#allocation2 + $0x4]] }
  0x97   : > { %s3782_s19 = sld [smem:[#allocation2 + $0x5]]  ;;  %v582_v52 = vstv %s3772_s20 }
  0x98   : > { %550 = vperm.xlu1 %3337, %v515_v4   ;;  %s3784_s23 = sld [smem:[#allocation2 + $0x6]] }
  0x99   : > { %s3786_s30 = sld [smem:[#allocation2 + $0x7]]  ;;  %v585_v53 = vstv %s3774_s16 }
  0x9a   : > { %s3788_s22 = sld [smem:[#allocation2 + $0x8]]  ;;  %v592_v54 = vstv %s3776_s24 }
  0x9b   : > { %s3790_s14 = sld [smem:[#allocation2 + $0x9]]  ;;  %v599_v55 = vstv %s3778_s21 }
  0x9c   : > { %868 = vperm.xlu1 %3337, %v833_v5   ;;  %s3792_s15 = sld [smem:[#allocation5]]  ;;  %v609_v56 = vstv %s3780_s17 }
  0x9d   : > { %s3794_s27 = sld [smem:[#allocation5 + $0x1]]  ;;  %v612_v57 = vstv %s3782_s19 }
  0x9e   : > { %s3796_s0 = sld [smem:[#allocation2 + $0xa]]  ;;  %v619_v58 = vstv %s3784_s23 }
  0x9f   : > { %s3798_s1 = sld [smem:[#allocation2 + $0xb]]  ;;  %v626_v60 = vstv %s3786_s30 }
  0xa0   : > { %s3800_s2 = sld [smem:[#allocation5 + $0x2]]  ;;  %v636_v61 = vstv %s3788_s22 }
  0xa1   : > { %s3802_s3 = sld [smem:[#allocation2 + $0xc]]  ;;  %v639_v62 = vstv %s3790_s14 }
  0xa2   : > { %s3804_s4 = sld [smem:[#allocation2 + $0xd]]  ;;  %v606_v63 = vstv %s3792_s15 }
  0xa3   : > { %s3806_s7 = sld [smem:[#allocation2 + $0xe]] }
  0xa4   : > { %s3808_s9 = sld [smem:[#allocation2 + $0xf]]  ;;  %v646_v1 = vstv %s3796_s0 }
  0xa5   : > { %s3810_s10 = sld [smem:[#allocation5 + $0x3]]  ;;  %v653_v2 = vstv %s3798_s1 }
  0xa6   : > { %s3812_s11 = sld [smem:[#allocation2 + $0x10]]  ;;  %v660_v4 = vstv %s3800_s2 }
  0xa7   : > { %s3814_s12 = sld [smem:[#allocation2 + $0x11]]  ;;  %v663_v5 = vstv %s3802_s3 }
  0xa8   : > { %s3816_s25 = sld [smem:[#allocation2 + $0x12]] }
  0xa9   : > { %s3818_s28 = sld [smem:[#allocation2 + $0x13]] }
  0xaa   : > { %s3820_s13 = sld [smem:[#allocation5 + $0x4]] }
  0xab   : > { %s3822_s18 = sld [smem:[#allocation2 + $0x14]] }
  0xac   : > { %s3824_s29 = sld [smem:[#allocation2 + $0x15]] }
  0xad   : > { %s3826_s26 = sld [smem:[#allocation2 + $0x16]] }
  0xae   : > { %s3828_s5 = sld [smem:[#allocation2 + $0x17]] }
  0xaf   : > { %s3830_s6 = sld [smem:[#allocation5 + $0x5]] }
  0xb0   : > { %s3832_s8 = sld [smem:[#allocation2 + $0x18]] }
  0xb1   : > { %5559 = sst [smem:[#allocation29_spill]] %s3822_s18 }
  0xb2   : > { %5560 = sst [smem:[#allocation30_spill]] %s3824_s29 }
  0xb3   : > { %s3834_s18 = sld [smem:[#allocation2 + $0x19]] }
  0xb4   : > { %s3836_s29 = sld [smem:[#allocation2 + $0x1a]] }
  0xb5   : > { %5561 = sst [smem:[#allocation31_spill]] %s3830_s6 }
  0xb6   : > { %s3841_s6 = sld [smem:[#allocation2 + $0x1b]] }
  0xb7   : > { %s3852_s20 = sld [smem:[#allocation2 + $0x1d]] }
  0xb8   : > { %s3858_s16 = sld [smem:[#allocation2 + $0x1e]] }
  0xb9   : > { %5562 = sst [smem:[#allocation32_spill]] %s3834_s18 }
  0xba   : > { %s3847_s18 = sld [smem:[#allocation2 + $0x1c]] }
  0xbb   : > { %s5563_s24 = sld [smem:[#allocation29_spill]] }
  0xbc   : > { %s5564_s21 = sld [smem:[#allocation30_spill]] }
  0xbd   : > { %s3863_s17 = sld [smem:[#allocation2 + $0x1f]] }
  0xbe   : > { %s5565_s19 = sld [smem:[#allocation31_spill]] }
  0xbf   : > { %s5566_s0 = sld [smem:[#allocation32_spill]] }
  0xc0   : > { %s3919_s1 = sld [smem:[#allocation5 + $0x6]] }
  0xc1   : > { %s3942_s2 = sld [smem:[#allocation5 + $0x7]] }
  0xc2   : > { %s3029_s3 = sld [smem:[#allocation7 + $0x19]] }
  0xc3   : > { %s3997_s23 = sld [smem:[#allocation7 + $0x62]] }
  0xc4   : > { %s4000_s30 = sld [smem:[#allocation7 + $0x34]] }
  0xc5   : > { %s4004_s22 = sld [smem:[#allocation7 + $0xaa]] }
  0xc6   : > { %s4006_s14 = sld [smem:[#allocation7 + $0x4]] }
  0xc7   : > { %s4010_s15 = sld [smem:[#allocation7 + $0x1f]] }
 0x10f   : > { %v545_v27 = vpop.permute.xlu1 %544 }
 0x113   : > { %v551_v31 = vpop.permute.xlu1 %550 }
 0x11d   : > { %v519_v6 = vpop.xlane.xlu0 %518 }
 0x11e   : > { %v520_v7 = vrot.slane %v519_v6, 4 }
 0x120   : > { %v521_v8 = vadd.f32 %v520_v7, %v519_v6  ;;  %v666_v6 = vstv %s3804_s4  ;;  %v673_v7 = vstv %s3806_s7  ;;  %s3005_s4 = sld [smem:[#allocation7 + $0x1]] }
 0x121   : > { %s3154_s7 = sld [smem:[#allocation7 + $0x91]] }
 0x122   : > { %v522_v9 = vrot.slane %v521_v8, 2 }
 0x124   : > { %v523_v10 = vadd.f32 %v522_v9, %v521_v8  ;;  %v680_v8 = vstv %s3808_s9  ;;  %v687_v9 = vstv %s3810_s10  ;;  %s3104_s9 = sld [smem:[#allocation7 + $0x61]] }
 0x125   : > { %s3971_s10 = sld [smem:[#allocation7 + $0x1a]] }
 0x126   : > { %v524_v11 = vrot.slane %v523_v10, 1 }
 0x128   : > { %v525_v12 = vadd.f32 %v524_v11, %v523_v10  ;;  %v690_v11 = vstv %s3812_s11  ;;  %s3129_s11 = sld [smem:[#allocation7 + $0x79]] }
 0x12a   : > { %v526_v13 = vmul.f32 0.015625, %v525_v12  ;;  %v693_v12 = vstv %s3814_s12  ;;  %s3975_s12 = sld [smem:[#allocation7 + $0x32]] }
 0x12c   : > { %v527_v14 = vsub.f32 %v513_v0, %v526_v13  ;;  %v633_v0 = vstv %s3794_s27  ;;  %v700_v13 = vstv %s3816_s25  ;;  %s3979_s25 = sld [smem:[#allocation7 + $0xa9]] }
 0x12d   : > { %s4014_s27 = sld [smem:[#allocation7 + $0x4c]] }
 0x12e   : > { %v528_v15 = vmul.f32 %v527_v14, %v527_v14 }
 0x130   : > { %v529_v16 = vsel %vm516_vm0, %v528_v15, 0.0 }
 0x131   : > { %530 = vadd.xlane.f32.xlu0 %v529_v16  ;;  %v707_v16 = vstv %s3818_s28  ;;  %s3985_s28 = sld [smem:[#allocation7 + $0x2]] }
 0x147   : > { %862 = vperm.xlu0 %3338, %v832_v17   ;;  %v714_v17 = vstv %s3820_s13  ;;  %s5482_s13 = smov 126  }
 0x1ba   : > { %v531_v18 = vpop.xlane.xlu0 %530 }
 0x1bb   : > { %v532_v19 = vrot.slane %v531_v18, 4 }
 0x1bd   : > { %v533_v20 = vadd.f32 %v532_v19, %v531_v18  ;;  %v717_v18 = vstv %s5563_s24  ;;  %v720_v19 = vstv %s5564_s21  ;;  %s4020_s24 = sld [smem:[#allocation7 + $0x37]] }
 0x1be   : > { %s4024_s21 = sld [smem:[#allocation7 + $0x7]] }
 0x1bf   : > { %v534_v21 = vrot.slane %v533_v20, 2 }
 0x1c1   : > { %v535_v22 = vadd.f32 %v534_v21, %v533_v20  ;;  %v727_v20 = vstv %s3826_s26  ;;  %v734_v21 = vstv %s3828_s5  ;;  %s3054_s5 = sld [smem:[#allocation7 + $0x31]] }
 0x1c2   : > { %s3981_s26 = sld [smem:[#allocation7 + $0x7a]] }
 0x1c3   : > { %v536_v23 = vrot.slane %v535_v22, 1 }
 0x1c5   : > { %v537_v24 = vadd.f32 %v536_v23, %v535_v22  ;;  %v741_v23 = vstv %s5565_s19  ;;  %s4032_s19 = sld [smem:[#allocation7 + $0x4f]] }
 0x1c7   : > { %v538_v25 = vmul.f32 0.015625, %v537_v24  ;;  %v744_v24 = vstv %s3832_s8  ;;  %s3993_s8 = sld [smem:[#allocation7 + $0x1c]] }
 0x1c9   : > { %v539_v26 = vadd.f32 1e-05, %v538_v25  ;;  %v747_v25 = vstv %s5566_s0  ;;  %s4034_s0 = sld [smem:[#allocation7 + $0x7c]] }
 0x1cb   : > { %3339 = vrsqrt.f32 %v539_v26  ;;  %v754_v26 = vstv %s3836_s29  ;;  %s3987_s29 = sld [smem:[#allocation7 + $0x92]] }
 0x1d8   : > { %v3340_v28 = vpop.eup %3339 }
 0x1d9   : > { %v541_v29 = vmul.f32 %v3340_v28, %v527_v14  ;;  %v771_v28 = vstv %s3847_s18  ;;  %s3991_s18 = sld [smem:[#allocation7 + $0x4a]] }
 0x1db   : > { %v547_v30 = vmul.f32 %v545_v27, %v541_v29  ;;  %v761_v27 = vstv %s3841_s6  ;;  %v774_v29 = vstv %s3852_s20  ;;  %s3079_s6 = sld [smem:[#allocation7 + $0x49]]  ;;  %s5457_s20 = smov 124  }
 0x1dd   : > { %v3766_v32 = vadd.f32 %v551_v31, %v547_v30 }
 0x1df   : > { %v3769_v33 = vmul.f32 0.70710677, %v3766_v32  ;;  %v554_v14 = vmul.f32 0.5, %v3766_v32 }
 0x1e1   : > { %v556_v34 = vand.u32 2147483647, %v3769_v33  ;;  %vm576_vm1 = vcmp.ge.f32.partialorder %v3769_v33, 0.0  ;;  %v781_v33 = vstv %s3858_s16  ;;  %s4018_s16 = sld [smem:[#allocation7 + $0x64]] }
 0x1e3   : > { %v557_v35 = vmul.f32 0.3275911, %v556_v34  ;;  %v570_v37 = vsub.f32 0.0, %v556_v34 }
 0x1e5   : > { %v558_v36 = vadd.f32 1.0, %v557_v35  ;;  %v571_v38 = vmul.f32 %v570_v37, %v556_v34  ;;  %v788_v37 = vstv %s3863_s17  ;;  %s4028_s17 = sld [smem:[#allocation7 + $0x22]] }
 0x1e7   : > { %3341 = vrcp.f32 %v558_v36  ;;  %v572_v41 = vmul.f32 1.442695, %v571_v38 }
 0x1e9   : > { %3343 = vpow2.f32 %v572_v41 }
 0x1f4   : > { %v3342_v39 = vpop.eup %3341 }
 0x1f5   : > { %v561_v40 = vmul.f32 1.0614054, %v3342_v39 }
 0x1f6   : > { %v3344_v50 = vpop.eup %3343 }
 0x1f7   : > { %v562_v42 = vadd.f32 -1.4531521, %v561_v40 }
 0x1f9   : > { %v563_v43 = vmul.f32 %v3342_v39, %v562_v42 }
 0x1fb   : > { %v564_v44 = vadd.f32 1.4214138, %v563_v43 }
 0x1fd   : > { %v565_v45 = vmul.f32 %v3342_v39, %v564_v44 }
 0x1ff   : > { %v566_v46 = vadd.f32 -0.28449672, %v565_v45 }
 0x201   : > { %v567_v47 = vmul.f32 %v3342_v39, %v566_v46 }
 0x203   : > { %v568_v48 = vadd.f32 0.2548296, %v567_v47 }
 0x205   : > { %v569_v49 = vmul.f32 %v3342_v39, %v568_v48 }
 0x207   : > { %v574_v51 = vmul.f32 %v3344_v50, %v569_v49 }
 0x209   : > { %v575_v59 = vsub.f32 1.0, %v574_v51 }
 0x20b   : > { %v577_v3 = vsub.f32 0.0, %v575_v59 }
 0x20d   : > { %v578_v10 = vsel %vm576_vm1, %v575_v59, %v577_v3 }
 0x20e   : > { %v579_v15 = vadd.f32 1.0, %v578_v10 }
 0x210   : > { %v3879_v22 = vmul.f32 %v579_v15, %v554_v14 }
 0x212   : > { %v586_v30 = vmul.f32 %v585_v53, %v3879_v22  ;;  %v593_v31 = vmul.f32 %v592_v54, %v3879_v22  ;;  %v600_v32 = vmul.f32 %v599_v55, %v3879_v22  ;;  %v583_v34 = vmul.f32 %v582_v52, %v3879_v22 }
 0x213   : > { %v613_v35 = vmul.f32 %v612_v57, %v3879_v22  ;;  %v620_v36 = vmul.f32 %v619_v58, %v3879_v22  ;;  %v610_v40 = vmul.f32 %v609_v56, %v3879_v22  ;;  %v627_v41 = vmul.f32 %v626_v60, %v3879_v22 }
 0x214   : > { %v588_v38 = vrot.slane %v586_v30, 1  ;;  %v595_v39 = vrot.slane %v593_v31, 2  ;;  %v602_v42 = vrot.slane %v600_v32, 3  ;;  %v637_v44 = vmul.f32 %v636_v61, %v3879_v22 }
 0x215   : > { %v615_v43 = vrot.slane %v613_v35, 1  ;;  %v640_v45 = vmul.f32 %v639_v62, %v3879_v22  ;;  %v622_v47 = vrot.slane %v620_v36, 2  ;;  %v647_v48 = vmul.f32 %v646_v1, %v3879_v22 }
 0x216   : > { %v590_v46 = vadd.f32 %v588_v38, %v583_v34  ;;  %v654_v49 = vmul.f32 %v653_v2, %v3879_v22  ;;  %v667_v52 = vmul.f32 %v666_v6, %v3879_v22  ;;  %v674_v53 = vmul.f32 %v673_v7, %v3879_v22 }
 0x217   : > { %v617_v50 = vadd.f32 %v615_v43, %v610_v40  ;;  %v642_v51 = vrot.slane %v640_v45, 1  ;;  %v629_v55 = vrot.slane %v627_v41, 3  ;;  %v664_v56 = vmul.f32 %v663_v5, %v3879_v22 }
 0x218   : > { %v597_v54 = vadd.f32 %v595_v39, %v590_v46  ;;  %v681_v57 = vmul.f32 %v680_v8, %v3879_v22  ;;  %v649_v60 = vrot.slane %v647_v48, 2  ;;  %v669_v61 = vrot.slane %v667_v52, 1 }
 0x219   : > { %v624_v58 = vadd.f32 %v622_v47, %v617_v50  ;;  %v644_v59 = vadd.f32 %v642_v51, %v637_v44  ;;  %v656_v1 = vrot.slane %v654_v49, 3  ;;  %v676_v2 = vrot.slane %v674_v53, 2 }
 0x21a   : > { %v604_v62 = vadd.f32 %v602_v42, %v597_v54  ;;  %v694_v3 = vmul.f32 %v693_v12, %v3879_v22  ;;  %v671_v7 = vadd.f32 %v669_v61, %v664_v56  ;;  %v701_v14 = vmul.f32 %v700_v13, %v3879_v22 }
 0x21b   : > { %v631_v10 = vadd.f32 %v629_v55, %v624_v58  ;;  %v651_v6 = vadd.f32 %v649_v60, %v644_v59  ;;  %v683_v5 = vrot.slane %v681_v57, 3  ;;  %v691_v8 = vmul.f32 %v690_v11, %v3879_v22 }
 0x21c   : > { %v696_v15 = vrot.slane %v694_v3, 1  ;;  %v708_v30 = vmul.f32 %v707_v16, %v3879_v22  ;;  %v607_v31 = vadd.f32 %v606_v63, %v604_v62  ;;  %v678_v32 = vadd.f32 %v676_v2, %v671_v7 }
 0x21d   : > { %v658_v12 = vadd.f32 %v656_v1, %v651_v6  ;;  %v718_v34 = vmul.f32 %v717_v18, %v3879_v22  ;;  %v703_v35 = vrot.slane %v701_v14, 2  ;;  %v721_v11 = vmul.f32 %v720_v19, %v3879_v22 }
 0x21e   : > { %v698_v13 = vadd.f32 %v696_v15, %v691_v8  ;;  %v728_v16 = vmul.f32 %v727_v20, %v3879_v22  ;;  %v634_v63 = vadd.f32 %v633_v0, %v631_v10  ;;  %v685_v18 = vadd.f32 %v683_v5, %v678_v32 }
 0x21f   : > { %v710_v36 = vrot.slane %v708_v30, 3  ;;  %v735_v38 = vmul.f32 %v734_v21, %v3879_v22  ;;  %v661_v19 = vadd.f32 %v660_v4, %v658_v12  ;;  %v723_v20 = vrot.slane %v721_v11, 1  ;;  %v863_v30 = vpop.permute.xlu0 %862 }
 0x220   : > { %v705_v39 = vadd.f32 %v703_v35, %v698_v13  ;;  %v748_v40 = vmul.f32 %v747_v25, %v3879_v22  ;;  %v688_v0 = vadd.f32 %v687_v9, %v685_v18  ;;  %v730_v41 = vrot.slane %v728_v16, 2 }
 0x221   : > { %v745_v42 = vmul.f32 %v744_v24, %v3879_v22  ;;  %v755_v21 = vmul.f32 %v754_v26, %v3879_v22  ;;  %v725_v44 = vadd.f32 %v723_v20, %v718_v34  ;;  %v762_v45 = vmul.f32 %v761_v27, %v3879_v22 }
 0x222   : > { %v712_v43 = vadd.f32 %v710_v36, %v705_v39  ;;  %v750_v4 = vrot.slane %v748_v40, 1  ;;  %v737_v25 = vrot.slane %v735_v38, 3  ;;  %v772_v9 = vmul.f32 %v771_v28, %v3879_v22  ;;  %v869_v38 = vpop.permute.xlu1 %868 }
 0x223   : > { %v775_v24 = vmul.f32 %v774_v29, %v3879_v22  ;;  %v782_v46 = vmul.f32 %v781_v33, %v3879_v22  ;;  %v732_v47 = vadd.f32 %v730_v41, %v725_v44  ;;  %v757_v49 = vrot.slane %v755_v21, 2 }
 0x224   : > { %v715_v26 = vadd.f32 %v714_v17, %v712_v43  ;;  %v752_v48 = vadd.f32 %v750_v4, %v745_v42  ;;  %v789_v50 = vmul.f32 %v788_v37, %v3879_v22  ;;  %v798_v51 = vrot.slane %v634_v63, 7 }
 0x225   : > { %v777_v27 = vrot.slane %v775_v24, 1  ;;  %v801_v52 = vrot.slane %v661_v19, 6  ;;  %v739_v53 = vadd.f32 %v737_v25, %v732_v47  ;;  %v764_v54 = vrot.slane %v762_v45, 3 }
 0x226   : > { %v759_v28 = vadd.f32 %v757_v49, %v752_v48  ;;  %v768_v29 = vstv %s3919_s1  ;;  %v784_v56 = vrot.slane %v782_v46, 2  ;;  %v804_v33 = vrot.slane %v688_v0, 5  ;;  %s4038_s1 = sld [smem:[#allocation7 + $0x67]] }
 0x227   : > { %v779_v55 = vadd.f32 %v777_v27, %v772_v9  ;;  %v819_v17 = vsel %vm818_vm2, %v607_v31, %v798_v51  ;;  %v742_v57 = vadd.f32 %v741_v23, %v739_v53  ;;  %v807_v59 = vrot.slane %v715_v26, 4 }
 0x228   : > { %v766_v58 = vadd.f32 %v764_v54, %v759_v28  ;;  %v821_v60 = vsel %vm820_vm3, %v819_v17, %v801_v52  ;;  %v791_v22 = vrot.slane %v789_v50, 3  ;;  %v795_v1 = vstv %s3942_s2  ;;  %s4043_s2 = sld [smem:[#allocation7 + $0x3a]] }
 0x229   : > { %v786_v61 = vadd.f32 %v784_v56, %v779_v55  ;;  %v823_v37 = vsel %vm822_vm4, %v821_v60, %v804_v33  ;;  %v810_v2 = vrot.slane %v742_v57, 3 }
 0x22a   : > { %v769_v62 = vadd.f32 %v768_v29, %v766_v58  ;;  %v825_v3 = vsel %vm824_vm5, %v823_v37, %v807_v59  ;;  %v952_v37 = vstv %s3005_s4  ;;  %s4049_s4 = sld [smem:[#allocation7 + $0x94]] }
 0x22b   : > { %v793_v10 = vadd.f32 %v791_v22, %v786_v61  ;;  %v827_v7 = vsel %vm826_vm6, %v825_v3, %v810_v2  ;;  %v1149_v22 = vstv %s3029_s3  ;;  %v1346_v3 = vstv %s3054_s5  ;;  %s4047_s3 = sld [smem:[#allocation7 + $0xa]] }
 0x22c   : > { %v813_v6 = vrot.slane %v769_v62, 2  ;;  %s4054_s5 = sld [smem:[#allocation7 + $0x52]] }
 0x22d   : > { %v796_v23 = vadd.f32 %v795_v1, %v793_v10  ;;  %v1543_v10 = vstv %s3079_s6  ;;  %s4058_s6 = sld [smem:[#allocation7 + $0x25]] }
 0x22e   : > { %v829_v14 = vsel %vm828_vm7, %v827_v7, %v813_v6 }
 0x22f   : > { %v816_v5 = vrot.slane %v796_v23, 1  ;;  %v2134_v23 = vstv %s3154_s7  ;;  %s4062_s7 = sld [smem:[#allocation7 + $0xac]] }
 0x231   : > { %v831_v8 = vsel %vm830_vm8, %v829_v14, %v816_v5  ;;  %v1740_v14 = vstv %s3104_s9  ;;  %s4064_s9 = sld [smem:[#allocation7 + $0x7f]] }
 0x232   : > { %v835_v15 = vsel %vm834_vm9, %v831_v8, 0.0 }
 0x233   : > { %836 = vadd.xlane.f32.xlu0 %v835_v15  ;;  %v1220_v15 = vstv %s3971_s10  ;;  %s4068_s10 = sld [smem:[#allocation7 + $0x6a]] }
 0x2bc   : > { %v837_v31 = vpop.xlane.xlu0 %836 }
 0x2bd   : > { %v838_v12 = vrot.slane %v837_v31, 4 }
 0x2bf   : > { %v839_v32 = vadd.f32 %v838_v12, %v837_v31 }
 0x2c1   : > { %v840_v34 = vrot.slane %v839_v32, 2 }
 0x2c3   : > { %v841_v13 = vadd.f32 %v840_v34, %v839_v32  ;;  %v1417_v32 = vstv %s3975_s12  ;;  %v2331_v34 = vstv %s3979_s25  ;;  %s4077_s12 = sld [smem:[#allocation7 + $0xd]] }
 0x2c4   : > { %s4079_s25 = sld [smem:[#allocation7 + $0x97]] }
 0x2c5   : > { %v842_v35 = vrot.slane %v841_v13, 1 }
 0x2c7   : > { %v843_v11 = vadd.f32 %v842_v35, %v841_v13 }
 0x2c9   : > { %v844_v16 = vmul.f32 0.0078125, %v843_v11  ;;  %v2008_v11 = vstv %s3981_s26  ;;  %s4084_s26 = sld [smem:[#allocation7 + $0x55]] }
 0x2cb   : > { %v845_v63 = vsub.f32 %v831_v8, %v844_v16  ;;  %v1023_v16 = vstv %s3985_s28  ;;  %s4088_s28 = sld [smem:[#allocation7 + $0x28]] }
 0x2cd   : > { %v846_v18 = vmul.f32 %v845_v63, %v845_v63 }
 0x2cf   : > { %v847_v36 = vsel %vm834_vm9, %v846_v18, 0.0 }
 0x2d0   : > { %848 = vadd.xlane.f32.xlu1 %v847_v36  ;;  %v2205_v36 = vstv %s3987_s29  ;;  %s4092_s29 = sld [smem:[#allocation7 + $0xaf]] }
 0x359   : > { %v849_v19 = vpop.xlane.xlu1 %848 }
 0x35a   : > { %v850_v39 = vrot.slane %v849_v19, 4 }
 0x35c   : > { %v851_v20 = vadd.f32 %v850_v39, %v849_v19  ;;  %v1157_v19 = vstv %s3993_s8  ;;  %s4098_s8 = sld [smem:[#allocation7 + $0x6d]] }
 0x35e   : > { %v852_v40 = vrot.slane %v851_v20, 2 }
 0x360   : > { %v853_v0 = vadd.f32 %v852_v40, %v851_v20 }
 0x362   : > { %v854_v41 = vrot.slane %v853_v0, 1 }
 0x364   : > { %v855_v42 = vadd.f32 %v854_v41, %v853_v0  ;;  %v1811_v0 = vstv %s3997_s23  ;;  %v1354_v41 = vstv %s4000_s30  ;;  %s4102_s23 = sld [smem:[#allocation7 + $0x40]] }
 0x365   : > { %s4106_s30 = sld [smem:[#allocation7 + $0x10]] }
 0x366   : > { %v856_v21 = vmul.f32 0.0078125, %v855_v42 }
 0x368   : > { %v857_v43 = vadd.f32 1e-05, %v856_v21 }
 0x36a   : > { %3345 = vrsqrt.f32 %v857_v43 }
 0x377   : > { %v3346_v44 = vpop.eup %3345 }
 0x378   : > { %v859_v4 = vmul.f32 %v3346_v44, %v845_v63  ;;  %v2402_v44 = vstv %s4004_s22  ;;  %s4108_s22 = sld [smem:[#allocation7 + $0x9a]] }
 0x37a   : > { %v865_v45 = vmul.f32 %v863_v30, %v859_v4  ;;  %v1937_v30 = vstv %s3129_s11  ;;  %v960_v4 = vstv %s4006_s14  ;;  %s4073_s11 = sld [smem:[#allocation7 + $0x3d]] }
 0x37b   : > { %s4112_s14 = sld [smem:[#allocation7 + $0x58]] }
 0x37c   : > { %v871_v25 = vadd.f32 %v869_v38, %v865_v45  ;;  %v1614_v38 = vstv %s3991_s18  ;;  %v1166_v45 = vstv %s4010_s15  ;;  %s4094_s18 = sld [smem:[#allocation7 + $0x82]] }
 0x37d   : > { %s4116_s15 = sld [smem:[#allocation7 + $0x2b]] }
 0x37e   : > { %v873_v9 = vmul.f32 0.70710677, %v871_v25  ;;  %v872_v60 = vmul.f32 0.5, %v871_v25 }
 0x380   : > { %v874_v24 = vand.u32 2147483647, %v873_v9  ;;  %vm894_vm10 = vcmp.ge.f32.partialorder %v873_v9, 0.0 }
 0x382   : > { %v875_v46 = vmul.f32 0.3275911, %v874_v24  ;;  %v888_v47 = vsub.f32 0.0, %v874_v24 }
 0x384   : > { %v876_v26 = vadd.f32 1.0, %v875_v46  ;;  %v889_v48 = vmul.f32 %v888_v47, %v874_v24  ;;  %v1748_v47 = vstv %s4018_s16  ;;  %s4122_s16 = sld [smem:[#allocation7 + $0x85]] }
 0x386   : > { %3347 = vrcp.f32 %v876_v26  ;;  %v890_v50 = vmul.f32 1.442695, %v889_v48  ;;  %v1551_v26 = vstv %s4014_s27  ;;  %s4120_s27 = sld [smem:[#allocation7 + $0xb2]] }
 0x388   : > { %3349 = vpow2.f32 %v890_v50 }
 0x393   : > { %v3348_v49 = vpop.eup %3347 }
 0x394   : > { %v879_v27 = vmul.f32 1.0614054, %v3348_v49 }
 0x395   : > { %v3350_v33 = vpop.eup %3349 }
 0x396   : > { %v880_v51 = vadd.f32 -1.4531521, %v879_v27 }
 0x398   : > { %v881_v52 = vmul.f32 %v3348_v49, %v880_v51  ;;  %v1363_v51 = vstv %s4020_s24  ;;  %s4126_s24 = sld [smem:[#allocation7 + $0x70]] }
 0x39a   : > { %v882_v53 = vadd.f32 1.4214138, %v881_v52  ;;  %v969_v52 = vstv %s4024_s21  ;;  %s4130_s21 = sld [smem:[#allocation7 + $0x43]] }
 0x39c   : > { %v883_v28 = vmul.f32 %v3348_v49, %v882_v53 }
 0x39e   : > { %v884_v54 = vadd.f32 -0.28449672, %v883_v28 }
 0x3a0   : > { %v885_v29 = vmul.f32 %v3348_v49, %v884_v54 }
 0x3a2   : > { %v886_v55 = vadd.f32 0.2548296, %v885_v29 }
 0x3a4   : > { %v887_v56 = vmul.f32 %v3348_v49, %v886_v55  ;;  %v1175_v55 = vstv %s4028_s17  ;;  %s4134_s17 = sld [smem:[#allocation7 + $0x13]] }
 0x3a6   : > { %v892_v17 = vmul.f32 %v3350_v33, %v887_v56  ;;  %v1560_v56 = vstv %s4032_s19  ;;  %s4136_s19 = sld [smem:[#allocation7 + $0x9d]] }
 0x3a8   : > { %v893_v57 = vsub.f32 1.0, %v892_v17 }
 0x3aa   : > { %v895_v58 = vsub.f32 0.0, %v893_v57 }
 0x3ac   : > { %v896_v59 = vsel %vm894_vm10, %v893_v57, %v895_v58  ;;  %5567 = sst [smem:[#allocation29_spill]] %s4136_s19 }
 0x3ad   : > { %v897_v61 = vadd.f32 1.0, %v896_v59  ;;  %v1945_v59 = vstv %s4034_s0  ;;  %s4140_s0 = sld [smem:[#allocation7 + $0x5b]] }
 0x3ae   : > { %s4150_s19 = sld [smem:[#allocation7 + $0x18]] }
 0x3af   : > { %v3969_v62 = vmul.f32 %v897_v61, %v872_v60  ;;  %v1757_v60 = vstv %s4038_s1  ;;  %s4144_s1 = sld [smem:[#allocation7 + $0x2e]] }
 0x3b1   : > { %v1150_v1 = vmul.f32 %v1149_v22, %v3969_v62  ;;  %v953_v2 = vmul.f32 %v952_v37, %v3969_v62  ;;  %v1347_v6 = vmul.f32 %v1346_v3, %v3969_v62  ;;  %v1544_v7 = vmul.f32 %v1543_v10, %v3969_v62 }
 0x3b2   : > { %v2135_v5 = vmul.f32 %v2134_v23, %v3969_v62  ;;  %v1741_v8 = vmul.f32 %v1740_v14, %v3969_v62  ;;  %v1221_v31 = vmul.f32 %v1220_v15, %v3969_v62  ;;  %v1938_v12 = vmul.f32 %v1937_v30, %v3969_v62 }
 0x3b3   : > { %1152 = vrot.lane.b32.xlu0 %v1150_v1, %s5482_s13  ;;  %955 = vrot.lane.b32.xlu1 %v953_v2, %s5482_s13  ;;  %v1418_v13 = vmul.f32 %v1417_v32, %v3969_v62  ;;  %v2332_v35 = vmul.f32 %v2331_v34, %v3969_v62  ;;  %v2009_v63 = vmul.f32 %v2008_v11, %v3969_v62  ;;  %v1372_v2 = vstv %s4043_s2  ;;  %s4154_s2 = sld [smem:[#allocation7 + $0x1b]] }
 0x3b4   : > { %v1024_v18 = vmul.f32 %v1023_v16, %v3969_v62  ;;  %v2206_v39 = vmul.f32 %v2205_v36, %v3969_v62  ;;  %v1615_v20 = vmul.f32 %v1614_v38, %v3969_v62  ;;  %v1158_v40 = vmul.f32 %v1157_v19, %v3969_v62  ;;  %5569 = sst [smem:[#allocation31_spill]] %s4150_s19 }
 0x3b5   : > { %v1812_v21 = vmul.f32 %v1811_v0, %v3969_v62  ;;  %v1355_v43 = vmul.f32 %v1354_v41, %v3969_v62  ;;  %v2403_v9 = vmul.f32 %v2402_v44, %v3969_v62  ;;  %v961_v24 = vmul.f32 %v960_v4, %v3969_v62  ;;  %s4164_s19 = sld [smem:[#allocation7 + $0x24]] }
 0x3b6   : > { %v1160_v42 = vrot.slane %v1158_v40, 1  ;;  %v1167_v46 = vmul.f32 %v1166_v45, %v3969_v62  ;;  %v1552_v27 = vmul.f32 %v1551_v26, %v3969_v62  ;;  %v1749_v50 = vmul.f32 %v1748_v47, %v3969_v62 }
 0x3b7   : > { %1349 = vrot.lane.b32.xlu0 %v1347_v6, %s5482_s13  ;;  %1546 = vrot.lane.b32.xlu1 %v1544_v7, %s5482_s13  ;;  %v1357_v25 = vrot.slane %v1355_v43, 1  ;;  %v963_v48 = vrot.slane %v961_v24, 1  ;;  %v1364_v54 = vmul.f32 %v1363_v51, %v3969_v62  ;;  %v970_v29 = vmul.f32 %v969_v52, %v3969_v62 }
 0x3b8   : > { %v1169_v49 = vrot.slane %v1167_v46, 2  ;;  %v1554_v53 = vrot.slane %v1552_v27, 1  ;;  %v1751_v28 = vrot.slane %v1749_v50, 1  ;;  %v1176_v57 = vmul.f32 %v1175_v55, %v3969_v62 }
 0x3b9   : > { %v1366_v33 = vrot.slane %v1364_v54, 2  ;;  %v972_v17 = vrot.slane %v970_v29, 2  ;;  %v1561_v58 = vmul.f32 %v1560_v56, %v3969_v62  ;;  %v1946_v37 = vmul.f32 %v1945_v59, %v3969_v62 }
 0x3ba   : > { %v1178_v61 = vrot.slane %v1176_v57, 3  ;;  %v1758_v1 = vmul.f32 %v1757_v60, %v3969_v62  ;;  %v978_v3 = vstv %s4047_s3  ;;  %v1373_v7 = vmul.f32 %v1372_v2, %v3969_v62  ;;  %s4158_s3 = sld [smem:[#allocation7 + $0x1e]] }
 0x3bb   : > { %2137 = vrot.lane.b32.xlu0 %v2135_v5, %s5482_s13  ;;  %1743 = vrot.lane.b32.xlu1 %v1741_v8, %s5482_s13  ;;  %v1563_v22 = vrot.slane %v1561_v58, 2  ;;  %v1948_v10 = vrot.slane %v1946_v37, 1  ;;  %v979_v23 = vmul.f32 %v978_v3, %v3969_v62  ;;  %v2142_v14 = vstv %s4049_s4  ;;  %5572 = sst [smem:[#allocation34_spill]] %s4164_s19 }
 0x3bc   : > { %v1760_v6 = vrot.slane %v1758_v1, 2  ;;  %v1569_v5 = vstv %s4054_s5  ;;  %v1375_v8 = vrot.slane %v1373_v7, 3  ;;  %v2143_v30 = vmul.f32 %v2142_v14, %v3969_v62  ;;  %s4168_s4 = sld [smem:[#allocation7 + $0x27]] }
 0x3bd   : > { %v981_v15 = vrot.slane %v979_v23, 3  ;;  %v2339_v32 = vstv %s4062_s7  ;;  %s4172_s5 = sld [smem:[#allocation7 + $0x2a]]  ;;  %v1954_v16 = vstv %s4064_s9  ;;  %v1578_v43 = vstv %s4084_s26 }
 0x3be   : > { %s4178_s19 = sld [smem:[#allocation7]]  ;;  %v2145_v34 = vrot.slane %v2143_v30, 1  ;;  %v2340_v11 = vmul.f32 %v2339_v32, %v3969_v62  ;;  %v1955_v38 = vmul.f32 %v1954_v16, %v3969_v62  ;;  %v2348_v24 = vstv %s4092_s29 }
 0x3bf   : > { %1223 = vrot.lane.b32.xlu0 %v1221_v31, %s5457_s20  ;;  %1940 = vrot.lane.b32.xlu1 %v1938_v12, %s5482_s13  ;;  %v1570_v31 = vmul.f32 %v1569_v5, %v3969_v62  ;;  %v1184_v12 = vstv %s4058_s6  ;;  %s4182_s6 = sld [smem:[#allocation7 + $0x3]]  ;;  %v1775_v27 = vstv %s4098_s8 }
 0x3c0   : > { %5570 = sst [smem:[#allocation32_spill]] %s4158_s3  ;;  %v2342_v36 = vrot.slane %v2340_v11, 1  ;;  %v1957_v40 = vrot.slane %v1955_v38, 2  ;;  %v996_v54 = vstv %s4106_s30  ;;  %v1587_v57 = vstv %s4112_s14 }
 0x3c1   : > { %s4186_s7 = sld [smem:[#allocation7 + $0x6]]  ;;  %v2357_v37 = vstv %s4120_s27  ;;  %v1784_v7 = vstv %s4126_s24  ;;  %v1399_v23 = vstv %s4130_s21  ;;  %v1005_v14 = vstv %s4134_s17 }
 0x3c2   : > { %5573 = sst [smem:[#allocation35_spill]] %s4168_s4  ;;  %v1107_v11 = vstv %s4158_s3 }
 0x3c3   : > { %1420 = vrot.lane.b32.xlu0 %v1418_v13, %s5457_s20  ;;  %2334 = vrot.lane.b32.xlu1 %v2332_v35, %s5482_s13  ;;  %5574 = sst [smem:[#allocation36_spill]] %s4172_s5  ;;  %v1572_v13 = vrot.slane %v1570_v31, 3  ;;  %v1185_v35 = vmul.f32 %v1184_v12, %v3969_v62 }
 0x3c4   : > { %5576 = sst [smem:[#allocation38_spill]] %s4178_s19 }
 0x3c5   : > { %5577 = sst [smem:[#allocation39_spill]] %s4182_s6 }
 0x3c6   : > { %s4192_s19 = sld [smem:[#allocation7 + $0xc]] }
 0x3c7   : > { %2011 = vrot.lane.b32.xlu0 %v2009_v63, %s5457_s20  ;;  %1026 = vrot.lane.b32.xlu1 %v1024_v18, %s5457_s20  ;;  %v1766_v63 = vstv %s4068_s10  ;;  %5578 = sst [smem:[#allocation40_spill]] %s4186_s7  ;;  %v1187_v18 = vrot.slane %v1185_v35, 4  ;;  %v1100_v35 = vstv %s4154_s2 }
 0x3c8   : > { %v1767_v19 = vmul.f32 %v1766_v63, %v3969_v62  ;;  %s4196_s9 = sld [smem:[#allocation7 + $0xf]] }
 0x3c9   : > { %s4200_s10 = sld [smem:[#allocation7 + $0x12]] }
 0x3ca   : > { %v1769_v0 = vrot.slane %v1767_v19, 3  ;;  %s4228_s26 = sld [smem:[#allocation7 + $0x3c]] }
 0x3cb   : > { %2208 = vrot.lane.b32.xlu0 %v2206_v39, %s5457_s20  ;;  %1617 = vrot.lane.b32.xlu1 %v1615_v20, %s5457_s20  ;;  %v1381_v39 = vstv %s4073_s11  ;;  %v987_v20 = vstv %s4077_s12  ;;  %s4210_s11 = sld [smem:[#allocation7 + $0x73]] }
 0x3cc   : > { %5580 = sst [smem:[#allocation42_spill]] %s4192_s19  ;;  %v1382_v41 = vmul.f32 %v1381_v39, %v3969_v62  ;;  %v903_v39 = vstv %s4182_s6 }
 0x3cd   : > { %s4206_s19 = sld [smem:[#allocation7 + $0x88]] }
 0x3ce   : > { %5581 = sst [smem:[#allocation43_spill]] %s4196_s9  ;;  %v1384_v44 = vrot.slane %v1382_v41, 4  ;;  %v1006_v41 = vmul.f32 %v1005_v14, %v3969_v62 }
 0x3cf   : > { %1161 = vrot.lane.b32.xlu0 %v1160_v42, %s5482_s13  ;;  %1814 = vrot.lane.b32.xlu1 %v1812_v21, %s5457_s20  ;;  %5582 = sst [smem:[#allocation44_spill]] %s4200_s10  ;;  %v988_v42 = vmul.f32 %v987_v20, %v3969_v62  ;;  %v2151_v21 = vstv %s4079_s25 }
 0x3d0   : > { %s4214_s12 = sld [smem:[#allocation7 + $0x30]]  ;;  %v2152_v45 = vmul.f32 %v2151_v21, %v3969_v62 }
 0x3d1   : > { %v990_v4 = vrot.slane %v988_v42, 4  ;;  %s4224_s25 = sld [smem:[#allocation7 + $0x39]]  ;;  %v910_v42 = vstv %s4186_s7 }
 0x3d2   : > { %5589 = sst [smem:[#allocation51_spill]] %s4228_s26  ;;  %v2154_v46 = vrot.slane %v2152_v45, 2 }
 0x3d3   : > { %1358 = vrot.lane.b32.xlu0 %v1357_v25, %s5482_s13  ;;  %2405 = vrot.lane.b32.xlu1 %v2403_v9, %s5457_s20  ;;  %s4148_s20 = sld [smem:[#allocation7 + $0xb5]]  ;;  %v1579_v25 = vmul.f32 %v1578_v43, %v3969_v62  ;;  %v1193_v9 = vstv %s4088_s28 }
 0x3d4   : > { %5584 = sst [smem:[#allocation46_spill]] %s4206_s19  ;;  %v1194_v47 = vmul.f32 %v1193_v9, %v3969_v62  ;;  %v1793_v9 = vstv %s4210_s11 }
 0x3d5   : > { %s4220_s19 = sld [smem:[#allocation7 + $0x36]]  ;;  %v1581_v26 = vrot.slane %v1579_v25, 4 }
 0x3d6   : > { %5585 = sst [smem:[#allocation47_spill]] %s4214_s12  ;;  %v1196_v50 = vrot.slane %v1194_v47, 5  ;;  %v1008_v47 = vrot.slane %v1006_v41, 6 }
 0x3d7   : > { %964 = vrot.lane.b32.xlu0 %v963_v48, %s5482_s13  ;;  %1170 = vrot.lane.b32.xlu1 %v1169_v49, %s5482_s13  ;;  %5588 = sst [smem:[#allocation50_spill]] %s4224_s25  ;;  %v2349_v48 = vmul.f32 %v2348_v24, %v3969_v62  ;;  %v1963_v49 = vstv %s4094_s18  ;;  %v1294_v24 = vstv %s4214_s12 }
 0x3d8   : > { %s4238_s28 = sld [smem:[#allocation7 + $0x45]]  ;;  %v1964_v52 = vmul.f32 %v1963_v49, %v3969_v62 }
 0x3d9   : > { %5568 = sst [smem:[#allocation30_spill]] %s4148_s20  ;;  %v2351_v51 = vrot.slane %v2349_v48, 2 }
 0x3da   : > { %s4162_s20 = sld [smem:[#allocation7 + $0x21]]  ;;  %v1966_v29 = vrot.slane %v1964_v52, 3 }
 0x3db   : > { %1555 = vrot.lane.b32.xlu0 %v1554_v53, %s5482_s13  ;;  %1752 = vrot.lane.b32.xlu1 %v1751_v28, %s5482_s13  ;;  %5587 = sst [smem:[#allocation49_spill]] %s4220_s19  ;;  %v1776_v53 = vmul.f32 %v1775_v27, %v3969_v62  ;;  %v1390_v28 = vstv %s4102_s23 }
 0x3dc   : > { %s4234_s19 = sld [smem:[#allocation7 + $0x42]]  ;;  %v1391_v56 = vmul.f32 %v1390_v28, %v3969_v62 }
 0x3dd   : > { %s4242_s29 = sld [smem:[#allocation7 + $0x48]]  ;;  %v1778_v55 = vrot.slane %v1776_v53, 4 }
 0x3de   : > { %5592 = sst [smem:[#allocation54_spill]] %s4238_s28  ;;  %v1393_v58 = vrot.slane %v1391_v56, 5  ;;  %v1339_v28 = vstv %s4238_s28 }
 0x3df   : > { %1367 = vrot.lane.b32.xlu0 %v1366_v33, %s5482_s13  ;;  %973 = vrot.lane.b32.xlu1 %v972_v17, %s5482_s13  ;;  %s4252_s18 = sld [smem:[#allocation7 + $0x51]]  ;;  %v997_v33 = vmul.f32 %v996_v54, %v3969_v62  ;;  %v2160_v17 = vstv %s4108_s22 }
 0x3e0   : > { %5571 = sst [smem:[#allocation33_spill]] %s4162_s20  ;;  %v2161_v60 = vmul.f32 %v2160_v17, %v3969_v62 }
 0x3e1   : > { %s4176_s20 = sld [smem:[#allocation7 + $0x2d]]  ;;  %v999_v59 = vrot.slane %v997_v33, 5 }
 0x3e2   : > { %5591 = sst [smem:[#allocation53_spill]] %s4234_s19  ;;  %v2163_v1 = vrot.slane %v2161_v60, 3 }
 0x3e3   : > { %1179 = vrot.lane.b32.xlu0 %v1178_v61, %s5482_s13  ;;  %1564 = vrot.lane.b32.xlu1 %v1563_v22, %s5482_s13  ;;  %s4248_s19 = sld [smem:[#allocation7 + $0x4e]]  ;;  %v1588_v61 = vmul.f32 %v1587_v57, %v3969_v62  ;;  %v1202_v22 = vstv %s4116_s15  ;;  %v1491_v54 = vstv %s4242_s29 }
 0x3e4   : > { %s4256_s8 = sld [smem:[#allocation7 + $0x54]]  ;;  %v1203_v3 = vmul.f32 %v1202_v22, %v3969_v62 }
 0x3e5   : > { %5595 = sst [smem:[#allocation57_spill]] %s4252_s18  ;;  %v1590_v2 = vrot.slane %v1588_v61, 5  ;;  %v1508_v56 = vstv %s4252_s18 }
 0x3e6   : > { %s4266_s23 = sld [smem:[#allocation7 + $0x5d]]  ;;  %v1205_v31 = vrot.slane %v1203_v3, 6 }
 0x3e7   : > { %1949 = vrot.lane.b32.xlu0 %v1948_v10, %s5482_s13  ;;  %1761 = vrot.lane.b32.xlu1 %v1760_v6, %s5482_s13  ;;  %5575 = sst [smem:[#allocation37_spill]] %s4176_s20  ;;  %v2358_v10 = vmul.f32 %v2357_v37, %v3969_v62  ;;  %v1972_v6 = vstv %s4122_s16 }
 0x3e8   : > { %s4190_s20 = sld [smem:[#allocation7 + $0x9]]  ;;  %v1973_v32 = vmul.f32 %v1972_v6, %v3969_v62 }
 0x3e9   : > { %5594 = sst [smem:[#allocation56_spill]] %s4248_s19  ;;  %v2360_v12 = vrot.slane %v2358_v10, 3 }
 0x3ea   : > { %5596 = sst [smem:[#allocation58_spill]] %s4256_s8  ;;  %v1975_v20 = vrot.slane %v1973_v32, 4 }
 0x3eb   : > { %1376 = vrot.lane.b32.xlu0 %v1375_v8, %s5482_s13  ;;  %982 = vrot.lane.b32.xlu1 %v981_v15, %s5482_s13  ;;  %s4262_s19 = sld [smem:[#allocation7 + $0x5a]]  ;;  %v1596_v8 = vstv %s4140_s0  ;;  %v1211_v15 = vstv %s4144_s1 }
 0x3ec   : > { %5599 = sst [smem:[#allocation61_spill]] %s4266_s23  ;;  %v1597_v49 = vmul.f32 %v1596_v8, %v3969_v62  ;;  %v1212_v57 = vmul.f32 %v1211_v15, %v3969_v62 }
 0x3ed   : > { %s4270_s30 = sld [smem:[#allocation7 + $0x46]] }
 0x3ee   : > { %5579 = sst [smem:[#allocation41_spill]] %s4190_s20  ;;  %v1599_v17 = vrot.slane %v1597_v49, 6 }
 0x3ef   : > { %2146 = vrot.lane.b32.xlu0 %v2145_v34, %s5482_s13  ;;  %1573 = vrot.lane.b32.xlu1 %v1572_v13, %s5482_s13  ;;  %s4204_s20 = sld [smem:[#allocation7 + $0x15]]  ;;  %v1785_v34 = vmul.f32 %v1784_v7, %v3969_v62  ;;  %v1214_v7 = vrot.slane %v1212_v57, 7 }
 0x3f0   : > { %s4280_s22 = sld [smem:[#allocation7 + $0x93]] }
 0x3f1   : > { %5598 = sst [smem:[#allocation60_spill]] %s4262_s19 }
 0x3f2   : > { %s4276_s19 = sld [smem:[#allocation7 + $0x90]] }
 0x3f3   : > { %1188 = vrot.lane.b32.xlu0 %v1187_v18, %s5482_s13  ;;  %2343 = vrot.lane.b32.xlu1 %v2342_v36, %s5482_s13  ;;  %5600 = sst [smem:[#allocation62_spill]] %s4270_s30  ;;  %v1128_v18 = vstv %s4168_s4  ;;  %v1135_v36 = vstv %s4172_s5 }
 0x3f4   : > { %s4284_s14 = sld [smem:[#allocation7 + $0x96]] }
 0x3f5   : > { %5583 = sst [smem:[#allocation45_spill]] %s4204_s20 }
 0x3f6   : > { %s4218_s20 = sld [smem:[#allocation7 + $0x33]] }
 0x3f7   : > { %1958 = vrot.lane.b32.xlu0 %v1957_v40, %s5482_s13  ;;  %1770 = vrot.lane.b32.xlu1 %v1769_v0, %s5482_s13  ;;  %5603 = sst [smem:[#allocation65_spill]] %s4280_s22  ;;  %v1787_v40 = vrot.slane %v1785_v34, 5  ;;  %v1400_v0 = vmul.f32 %v1399_v23, %v3969_v62  ;;  %v1101_v34 = vmul.f32 %v1100_v35, %v3969_v62 }
 0x3f8   : > { %5602 = sst [smem:[#allocation64_spill]] %s4276_s19 }
 0x3f9   : > { %s5605_s19 = sld [smem:[#allocation29_spill]] }
 0x3fa   : > { %5604 = sst [smem:[#allocation66_spill]] %s4284_s14 }
 0x3fb   : > { %1385 = vrot.lane.b32.xlu0 %v1384_v44, %s5482_s13  ;;  %991 = vrot.lane.b32.xlu1 %v990_v4, %s5482_s13  ;;  %s4290_s30 = sld [smem:[#allocation7 + $0x9c]]  ;;  %v931_v44 = vstv %s4196_s9  ;;  %v938_v4 = vstv %s4200_s10 }
 0x3fc   : > { %5586 = sst [smem:[#allocation48_spill]] %s4218_s20 }
 0x3fd   : > { %s4232_s20 = sld [smem:[#allocation7 + $0x3f]] }
 0x3fe   : > { %s5608_s23 = sld [smem:[#allocation30_spill]] }
 0x3ff   : > { %2155 = vrot.lane.b32.xlu0 %v2154_v46, %s5482_s13  ;;  %1582 = vrot.lane.b32.xlu1 %v1581_v26, %s5482_s13  ;;  %s4294_s15 = sld [smem:[#allocation7 + $0x9f]]  ;;  %v2169_v5 = vstv %s5605_s19  ;;  %s5620_s19 = smov 126   ;;  %v1402_v26 = vrot.slane %v1400_v0, 6 }
 0x400   : > { %s4298_s27 = sld [smem:[#allocation7 + $0xa2]]  ;;  %v2170_v48 = vmul.f32 %v2169_v5, %v3969_v62  ;;  %v1794_v5 = vmul.f32 %v1793_v9, %v3969_v62 }
 0x401   : > { %5607 = sst [smem:[#allocation67_spill]] %s4290_s30 }
 0x402   : > { %s5611_s14 = sld [smem:[#allocation31_spill]]  ;;  %v2172_v33 = vrot.slane %v2170_v48, 4 }
 0x403   : > { %5590 = sst [smem:[#allocation52_spill]] %s4232_s20  ;;  %1197 = vrot.lane.b32.xlu0 %v1196_v50, %s5482_s13  ;;  %2352 = vrot.lane.b32.xlu1 %v2351_v51, %s5482_s13  ;;  %v1311_v50 = vstv %s4224_s25  ;;  %v1318_v51 = vstv %s4228_s26 }
 0x404   : > { %s4246_s20 = sld [smem:[#allocation7 + $0x4b]]  ;;  %v2366_v30 = vstv %s5608_s23 }
 0x405   : > { %5609 = sst [smem:[#allocation30_spill]] %s4294_s15  ;;  %v2113_v15 = vstv %s4294_s15 }
 0x406   : > { %5610 = sst [smem:[#allocation68_spill]] %s4298_s27 }
 0x407   : > { %1967 = vrot.lane.b32.xlu0 %v1966_v29, %s5482_s13  ;;  %1779 = vrot.lane.b32.xlu1 %v1778_v55, %s5482_s13  ;;  %s5612_s30 = sld [smem:[#allocation33_spill]] }
 0x408   : > { %s5614_s22 = sld [smem:[#allocation34_spill]]  ;;  %v1097_v13 = vstv %s5611_s14 }
 0x409   : > { %s4310_s16 = sld [smem:[#allocation7 + $0x60]] }
 0x40a   : > { %5593 = sst [smem:[#allocation55_spill]] %s4246_s20 }
 0x40b   : > { %s4260_s20 = sld [smem:[#allocation7 + $0x57]]  ;;  %1394 = vrot.lane.b32.xlu0 %v1393_v58, %s5482_s13  ;;  %1000 = vrot.lane.b32.xlu1 %v999_v59, %s5482_s13  ;;  %v2367_v58 = vmul.f32 %v2366_v30, %v3969_v62  ;;  %v1515_v59 = vstv %s4256_s8  ;;  %v2120_v30 = vstv %s4298_s27 }
 0x40c   : > { %s5616_s24 = sld [smem:[#allocation37_spill]] }
 0x40d   : > { %s4314_s21 = sld [smem:[#allocation7 + $0x63]]  ;;  %v1114_v16 = vstv %s5612_s30  ;;  %v2369_v23 = vrot.slane %v2367_v58, 4 }
 0x40e   : > { %s4320_s17 = sld [smem:[#allocation7 + $0x66]]  ;;  %v1121_v63 = vstv %s5614_s22 }
 0x40f   : > { %2164 = vrot.lane.b32.xlu0 %v2163_v1, %s5482_s13  ;;  %1591 = vrot.lane.b32.xlu1 %v1590_v2, %s5482_s13  ;;  %5615 = sst [smem:[#allocation70_spill]] %s4310_s16 }
 0x410   : > { %s5617_s13 = sld [smem:[#allocation38_spill]] }
 0x411   : > { %5597 = sst [smem:[#allocation59_spill]] %s4260_s20 }
 0x412   : > { %s4274_s20 = sld [smem:[#allocation7 + $0x16]]  ;;  %v1142_v38 = vstv %s5616_s24 }
 0x413   : > { %5618 = sst [smem:[#allocation71_spill]] %s4314_s21  ;;  %1206 = vrot.lane.b32.xlu0 %v1205_v31, %s5620_s19  ;;  %2361 = vrot.lane.b32.xlu1 %v2360_v12, %s5620_s19  ;;  %v1691_v32 = vstv %s4314_s21  ;;  %s5675_s21 = smov 124  }
 0x414   : > { %5619 = sst [smem:[#allocation72_spill]] %s4320_s17 }
 0x415   : > { %s5621_s0 = sld [smem:[#allocation41_spill]] }
 0x416   : > { %s5622_s16 = sld [smem:[#allocation42_spill]]  ;;  %v900_v19 = vstv %s5617_s13 }
 0x417   : > { %s5624_s3 = sld [smem:[#allocation45_spill]]  ;;  %1976 = vrot.lane.b32.xlu0 %v1975_v20, %s5620_s19  ;;  %1788 = vrot.lane.b32.xlu1 %v1787_v40, %s5620_s19 }
 0x418   : > { %5601 = sst [smem:[#allocation63_spill]] %s4274_s20 }
 0x419   : > { %s4288_s20 = sld [smem:[#allocation7 + $0x99]] }
 0x41a   : > { %s4332_s30 = sld [smem:[#allocation7 + $0x6c]] }
 0x41b   : > { %s5626_s14 = sld [smem:[#allocation46_spill]]  ;;  %v917_v21 = vstv %s5621_s0  ;;  %1403 = vrot.lane.b32.xlu0 %v1402_v26, %s5620_s19  ;;  %1009 = vrot.lane.b32.xlu1 %v1008_v47, %s5620_s19  ;;  %v1796_v26 = vrot.slane %v1794_v5, 6 }
 0x41c   : > { %s5627_s22 = sld [smem:[#allocation48_spill]]  ;;  %v924_v43 = vstv %s5622_s16 }
 0x41d   : > { %s4336_s4 = sld [smem:[#allocation7 + $0x6f]]  ;;  %v945_v45 = vstv %s5624_s3 }
 0x41e   : > { %s4342_s24 = sld [smem:[#allocation7 + $0x72]] }
 0x41f   : > { %5606 = sst [smem:[#allocation29_spill]] %s4288_s20  ;;  %2173 = vrot.lane.b32.xlu0 %v2172_v33, %s5620_s19  ;;  %1600 = vrot.lane.b32.xlu1 %v1599_v17, %s5620_s19 }
 0x420   : > { %s4304_s20 = sld [smem:[#allocation7 + $0xa5]] }
 0x421   : > { %5625 = sst [smem:[#allocation74_spill]] %s4332_s30  ;;  %v1981_v25 = vstv %s5626_s14 }
 0x422   : > { %s5628_s5 = sld [smem:[#allocation49_spill]]  ;;  %v1297_v46 = vstv %s5627_s22  ;;  %v1982_v14 = vmul.f32 %v1981_v25, %v3969_v62 }
 0x423   : > { %s5629_s13 = sld [smem:[#allocation52_spill]]  ;;  %1215 = vrot.lane.b32.xlu0 %v1214_v7, %s5620_s19  ;;  %2370 = vrot.lane.b32.xlu1 %v2369_v23, %s5620_s19  ;;  %v1108_v23 = vmul.f32 %v1107_v11, %v3969_v62 }
 0x424   : > { %s4348_s6 = sld [smem:[#allocation7 + $0x75]]  ;;  %v1984_v9 = vrot.slane %v1982_v14, 5 }
 0x425   : > { %s5631_s7 = sld [smem:[#allocation53_spill]]  ;;  %v4428_v41 = vpop.permute.xlu0 %1152  ;;  %v4430_v25 = vpop.permute.xlu1 %955 }
 0x426   : > { %5613 = sst [smem:[#allocation69_spill]] %s4304_s20 }
 0x427   : > { %s4326_s20 = sld [smem:[#allocation7 + $0x69]]  ;;  %1985 = vrot.lane.b32.xlu0 %v1984_v9, %s5620_s19  ;;  %1797 = vrot.lane.b32.xlu1 %v1796_v26, %s5620_s19 }
 0x428   : > { %s4354_s9 = sld [smem:[#allocation7 + $0xa0]]  ;;  %v1304_v27 = vstv %s5628_s5 }
 0x429   : > { %s5632_s16 = sld [smem:[#allocation55_spill]]  ;;  %v1325_v52 = vstv %s5629_s13  ;;  %v4451_v14 = vpop.permute.xlu0 %1349  ;;  %v4453_v5 = vpop.permute.xlu1 %1546 }
 0x42a   : > { %5630 = sst [smem:[#allocation46_spill]] %s4348_s6 }
 0x42b   : > { %s5633_s0 = sld [smem:[#allocation56_spill]]  ;;  %v1332_v53 = vstv %s5631_s7 }
 0x42c   : > { %s4358_s3 = sld [smem:[#allocation7 + $0x5e]] }
 0x42d   : > { %5623 = sst [smem:[#allocation73_spill]] %s4326_s20  ;;  %v4479_v0 = vpop.permute.xlu0 %2137 }
 0x42e   : > { %s4364_s11 = sld [smem:[#allocation7 + $0x78]]  ;;  %v2178_v33 = vstv %s4354_s9 }
 0x42f   : > { %s5635_s14 = sld [smem:[#allocation59_spill]]  ;;  %v1494_v29 = vstv %s5632_s16  ;;  %v2179_v57 = vmul.f32 %v2178_v33, %v3969_v62 }
 0x430   : > { %s5636_s10 = sld [smem:[#allocation60_spill]] }
 0x431   : > { %s5637_s12 = sld [smem:[#allocation61_spill]]  ;;  %v1501_v55 = vstv %s5633_s0 }
 0x432   : > { %s4370_s22 = sld [smem:[#allocation7 + $0x7b]]  ;;  %v1605_v17 = vstv %s4358_s3 }
 0x433   : > { %s5638_s25 = sld [smem:[#allocation62_spill]]  ;;  %v1606_v49 = vmul.f32 %v1605_v17, %v3969_v62 }
 0x434   : > { %5634 = sst [smem:[#allocation55_spill]] %s4364_s11 }
 0x435   : > { %s5639_s26 = sld [smem:[#allocation63_spill]]  ;;  %v1522_v60 = vstv %s5635_s14 }
 0x436   : > { %s4376_s13 = sld [smem:[#allocation7 + $0x7e]]  ;;  %v1529_v61 = vstv %s5636_s10 }
 0x437   : > { %s5640_s5 = sld [smem:[#allocation64_spill]]  ;;  %v1536_v22 = vstv %s5637_s12 }
 0x438   : > { %s5641_s11 = sld [smem:[#allocation65_spill]] }
 0x439   : > { %s5642_s6 = sld [smem:[#allocation66_spill]]  ;;  %v1408_v37 = vstv %s5638_s25 }
 0x43a   : > { %s5643_s28 = sld [smem:[#allocation29_spill]]  ;;  %v1409_v47 = vmul.f32 %v1408_v37, %v3969_v62  ;;  %v1103_v37 = vrot.slane %v1101_v34, 1  ;;  %v1098_v34 = vmul.f32 %v1097_v13, %v3969_v62 }
 0x43b   : > { %s4384_s7 = sld [smem:[#allocation7 + $0x81]]  ;;  %v1014_v1 = vstv %s5639_s26 }
 0x43c   : > { %s4390_s18 = sld [smem:[#allocation7 + $0x84]]  ;;  %v1015_v35 = vmul.f32 %v1014_v1, %v3969_v62  ;;  %v1411_v9 = vrot.slane %v1409_v47, 7  ;;  %v904_v47 = vmul.f32 %v903_v39, %v3969_v62  ;;  %v1105_v13 = vadd.f32 %v1103_v37, %v1098_v34  ;;  %v4481_v1 = vpop.permute.xlu1 %1743 }
 0x43d   : > { %s5644_s0 = sld [smem:[#allocation67_spill]]  ;;  %v2082_v2 = vstv %s5640_s5  ;;  %v2181_v39 = vrot.slane %v2179_v57, 5  ;;  %v1110_v37 = vrot.slane %v1108_v23, 2  ;;  %v1115_v34 = vmul.f32 %v1114_v16, %v3969_v62 }
 0x43e   : > { %s5645_s1 = sld [smem:[#allocation69_spill]]  ;;  %v2085_v3 = vstv %s5641_s11  ;;  %v1017_v26 = vrot.slane %v1015_v35, 7  ;;  %1412 = vrot.lane.b32.xlu0 %v1411_v9, %s5620_s19  ;;  %v1608_v9 = vrot.slane %v1606_v49, 7  ;;  %v1122_v49 = vmul.f32 %v1121_v63, %v3969_v62 }
 0x43f   : > { %s4396_s23 = sld [smem:[#allocation7 + $0x87]]  ;;  %v2092_v10 = vstv %s5642_s6  ;;  %v906_v57 = vrot.slane %v904_v47, 1  ;;  %v901_v23 = vmul.f32 %v900_v19, %v3969_v62  ;;  %v911_v63 = vmul.f32 %v910_v42, %v3969_v62  ;;  %v4514_v47 = vpop.permute.xlu0 %1223 }
 0x440   : > { %s5647_s8 = sld [smem:[#allocation70_spill]]  ;;  %v2099_v6 = vstv %s5643_s28  ;;  %1018 = vrot.lane.b32.xlu1 %v1017_v26, %s5620_s19  ;;  %5663 = vst [vmem:[#allocation75_spill] sm:$0xff] %v4514_v47  ;;  %v4516_v33 = vpop.permute.xlu1 %1940  ;;  %v1117_v19 = vrot.slane %v1115_v34, 3  ;;  %v4525_v42 = vmul.f32 %v1135_v36, %v3969_v62  ;;  %v1124_v16 = vrot.slane %v1122_v49, 4 }
 0x441   : > { %s4402_s12 = sld [smem:[#allocation7 + $0x8a]]  ;;  %v918_v34 = vmul.f32 %v917_v21, %v3969_v62  ;;  %v1305_v21 = vmul.f32 %v1304_v27, %v3969_v62 }
 0x442   : > { %s4406_s25 = sld [smem:[#allocation7 + $0x8b]]  ;;  %2182 = vrot.lane.b32.xlu0 %v2181_v39, %s5620_s19 }
 0x443   : > { %v2106_v8 = vstv %s5644_s0  ;;  %s4412_s26 = sld [smem:[#allocation7 + $0xb8]]  ;;  %v920_v27 = vrot.slane %v918_v34, 3 }
 0x444   : > { %v2127_v31 = vstv %s5645_s1  ;;  %s4418_s5 = sld [smem:[#allocation7 + $0x8d]]  ;;  %1609 = vrot.lane.b32.xlu1 %v1608_v9, %s5620_s19 }
 0x445   : > { %5646 = sst [smem:[#allocation59_spill]] %s4396_s23 }
 0x446   : > { %v1688_v12 = vstv %s5647_s8  ;;  %s4426_s27 = sld [smem:[#allocation7 + $0xa8]] }
 0x447   : > { %5648 = sst [smem:[#allocation60_spill]] %s4402_s12 }
 0x448   : > { %s5651_s15 = sld [smem:[#allocation55_spill]]  ;;  %v1990_v48 = vstv %s4406_s25 }
 0x449   : > { %s4434_s2 = sld [smem:[#allocation7 + $0xa3]]  ;;  %v2375_v7 = vstv %s4412_s26  ;;  %v1991_v26 = vmul.f32 %v1990_v48, %v3969_v62  ;;  %v4500_v48 = vmul.f32 %v1128_v18, %v3969_v62  ;;  %v1298_v18 = vmul.f32 %v1297_v46, %v3969_v62 }
 0x44a   : > { %5649 = sst [smem:[#allocation62_spill]] %s4418_s5  ;;  %v2376_v35 = vmul.f32 %v2375_v7, %v3969_v62  ;;  %v1112_v7 = vadd.f32 %v1110_v37, %v1105_v13 }
 0x44b   : > { %s4440_s30 = sld [smem:[#allocation7 + $0x76]]  ;;  %v1993_v39 = vrot.slane %v1991_v26, 6  ;;  %v1131_v26 = vrot.slane %v4500_v48, 5  ;;  %v1300_v49 = vrot.slane %v1298_v18, 1  ;;  %v4546_v48 = vpop.permute.xlu1 %2334 }
 0x44c   : > { %s4446_s8 = sld [smem:[#allocation7 + $0xab]]  ;;  %v2378_v58 = vrot.slane %v2376_v35, 5  ;;  %v4535_v35 = vmul.f32 %v1142_v38, %v3969_v62  ;;  %v1119_v36 = vadd.f32 %v1117_v19, %v1112_v7  ;;  %v4544_v38 = vpop.permute.xlu0 %1420  ;;  %v1295_v7 = vmul.f32 %v1294_v24, %v3969_v62 }
 0x44d   : > { %s4457_s3 = sld [smem:[#allocation7 + $0x1d]]  ;;  %1994 = vrot.lane.b32.xlu0 %v1993_v39, %s5620_s19  ;;  %5668 = vst [vmem:[#allocation76_spill] sm:$0xff] %v4544_v38 }
 0x44e   : > { %s4467_s9 = sld [smem:[#allocation7 + $0xbb]]  ;;  %2379 = vrot.lane.b32.xlu1 %v2378_v58, %s5620_s19  ;;  %v1126_v24 = vadd.f32 %v1124_v16, %v1119_v36  ;;  %v1307_v16 = vrot.slane %v1305_v21, 2 }
 0x44f   : > { %s4485_s23 = sld [smem:[#allocation7 + $0x8e]]  ;;  %v2187_v11 = vstv %s4434_s2 }
 0x450   : > { %s4492_s5 = sld [smem:[#allocation7 + $0x5]]  ;;  %v2188_v9 = vmul.f32 %v2187_v11, %v3969_v62  ;;  %v913_v11 = vrot.slane %v911_v63, 2  ;;  %v4572_v40 = vpop.permute.xlu0 %2011 }
 0x451   : > { %v1802_v17 = vstv %s4440_s30  ;;  %s4520_s2 = sld [smem:[#allocation7 + $0x35]]  ;;  %5672 = vst [vmem:[#allocation77_spill] sm:$0xff] %v4572_v40 }
 0x452   : > { %v1803_v13 = vmul.f32 %v1802_v17, %v3969_v62  ;;  %s4529_s20 = sld [smem:[#allocation7 + $0x4d]]  ;;  %v908_v17 = vadd.f32 %v906_v57, %v901_v23  ;;  %v2190_v57 = vrot.slane %v2188_v9, 6  ;;  %v1138_v9 = vrot.slane %v4525_v42, 6 }
 0x453   : > { %v1228_v37 = vstv %s4457_s3  ;;  %s4539_s12 = sld [smem:[#allocation7 + $0xae]]  ;;  %v1302_v42 = vadd.f32 %v1300_v49, %v1295_v7  ;;  %v1133_v7 = vadd.f32 %v1131_v26, %v1126_v24 }
 0x454   : > { %v2384_v46 = vstv %s4467_s9  ;;  %v1805_v23 = vrot.slane %v1803_v13, 7  ;;  %v1229_v39 = vmul.f32 %v1228_v37, %v3969_v62  ;;  %s4550_s25 = sld [smem:[#allocation7 + $0xa6]]  ;;  %v1145_v13 = vrot.slane %v4535_v35, 7  ;;  %2191 = vrot.lane.b32.xlu0 %v2190_v57, %s5620_s19 }
 0x455   : > { %v2385_v58 = vmul.f32 %v2384_v46, %v3969_v62  ;;  %v1999_v63 = vstv %s4485_s23  ;;  %s4560_s26 = sld [smem:[#allocation7 + $0xbe]]  ;;  %v915_v19 = vadd.f32 %v913_v11, %v908_v17  ;;  %v925_v37 = vmul.f32 %v924_v43, %v3969_v62  ;;  %v4574_v17 = vpop.permute.xlu1 %1026 }
 0x456   : > { %v1031_v18 = vstv %s4492_s5  ;;  %1806 = vrot.lane.b32.xlu1 %v1805_v23, %s5620_s19  ;;  %v932_v46 = vmul.f32 %v931_v44, %v3969_v62  ;;  %5673 = vst [vmem:[#allocation78_spill] sm:$0xff] %v4574_v17  ;;  %v1231_v11 = vrot.slane %v1229_v39, 1  ;;  %v2000_v20 = vmul.f32 %v1999_v63, %v3969_v62  ;;  %s4578_s1 = sld [smem:[#allocation7 + $0x20]] }
 0x457   : > { %v2387_v43 = vrot.slane %v2385_v58, 6  ;;  %v1032_v57 = vmul.f32 %v1031_v18, %v3969_v62  ;;  %v1312_v44 = vmul.f32 %v1311_v50, %v3969_v62  ;;  %v1425_v36 = vstv %s4520_s2  ;;  %s4585_s17 = sld [smem:[#allocation7 + $0x65]]  ;;  %v4601_v18 = vpop.permute.xlu0 %2208 }
 0x458   : > { %v1622_v34 = vstv %s4529_s20  ;;  %v922_v49 = vadd.f32 %v920_v27, %v915_v19  ;;  %v927_v23 = vrot.slane %v925_v37, 4  ;;  %v4590_v39 = vmul.f32 %v938_v4, %v3969_v62  ;;  %1232 = vrot.lane.b32.xlu0 %v1231_v11, %s5675_s21  ;;  %5678 = vst [vmem:[#allocation79_spill] sm:$0xff] %v4601_v18  ;;  %s4607_s3 = sld [smem:[#allocation7 + $0x38]] }
 0x459   : > { %v2289_v58 = vstv %s4539_s12  ;;  %v1309_v21 = vadd.f32 %v1307_v16, %v1302_v42  ;;  %v1319_v50 = vmul.f32 %v1318_v51, %v3969_v62  ;;  %v1495_v63 = vmul.f32 %v1494_v29, %v3969_v62  ;;  %v4603_v4 = vpop.permute.xlu1 %1617  ;;  %s4611_s16 = sld [smem:[#allocation7 + $0x8]] }
 0x45a   : > { %2388 = vrot.lane.b32.xlu1 %v2387_v43, %s5620_s19  ;;  %5679 = vst [vmem:[#allocation80_spill] sm:$0xff] %v4603_v4  ;;  %v2002_v19 = vrot.slane %v2000_v20, 7  ;;  %v1034_v37 = vrot.slane %v1032_v57, 1  ;;  %v1426_v27 = vmul.f32 %v1425_v36, %v3969_v62  ;;  %v1623_v11 = vmul.f32 %v1622_v34, %v3969_v62  ;;  %s4630_s30 = sld [smem:[#allocation7 + $0x23]] }
 0x45b   : > { %v934_v26 = vrot.slane %v932_v46, 5  ;;  %v1314_v24 = vrot.slane %v1312_v44, 3  ;;  %v2196_v51 = vstv %s4550_s25  ;;  %v2393_v42 = vstv %s4560_s26  ;;  %v4624_v34 = vpop.permute.xlu0 %1161  ;;  %s4640_s5 = sld [smem:[#allocation7 + $0x50]] }
 0x45c   : > { %v929_v29 = vadd.f32 %v927_v23, %v922_v49  ;;  %v941_v43 = vrot.slane %v4590_v39, 6  ;;  %v4617_v20 = vmul.f32 %v945_v45, %v3969_v62  ;;  %v1326_v57 = vmul.f32 %v1325_v52, %v3969_v62  ;;  %2003 = vrot.lane.b32.xlu0 %v2002_v19, %s5620_s19  ;;  %s4672_s2 = sld [smem:[#allocation7 + $0x68]] }
 0x45d   : > { %v1140_v46 = vadd.f32 %v1138_v9, %v1133_v7  ;;  %v1316_v16 = vadd.f32 %v1314_v24, %v1309_v21  ;;  %v1321_v44 = vrot.slane %v1319_v50, 4  ;;  %v1497_v36 = vrot.slane %v1495_v63, 1  ;;  %v4626_v49 = vpop.permute.xlu1 %1814  ;;  %s4696_s14 = sld [smem:[#allocation7 + $0x3b]] }
 0x45e   : > { %1035 = vrot.lane.b32.xlu1 %v1034_v37, %s5675_s21  ;;  %5682 = vst [vmem:[#allocation81_spill] sm:$0xff] %v4626_v49  ;;  %v1428_v45 = vrot.slane %v1426_v27, 1  ;;  %v1625_v23 = vrot.slane %v1623_v11, 1  ;;  %v2197_v39 = vmul.f32 %v2196_v51, %v3969_v62  ;;  %v2394_v52 = vmul.f32 %v2393_v42, %v3969_v62  ;;  %s4703_s10 = sld [smem:[#allocation7 + $0xb]] }
 0x45f   : > { %v1492_v9 = vmul.f32 %v1491_v54, %v3969_v62  ;;  %v1502_v7 = vmul.f32 %v1501_v55, %v3969_v62  ;;  %v1237_v21 = vstv %s4578_s1  ;;  %v1819_v50 = vstv %s4585_s17  ;;  %s4657_s1 = sld [smem:[#allocation7 + $0xb1]] }
 0x460   : > { %v936_v63 = vadd.f32 %v934_v26, %v929_v29  ;;  %v948_v19 = vrot.slane %v4617_v20, 7  ;;  %v1328_v37 = vrot.slane %v1326_v57, 5  ;;  %v1333_v27 = vmul.f32 %v1332_v53, %v3969_v62  ;;  %1429 = vrot.lane.b32.xlu0 %v1428_v45, %s5675_s21  ;;  %v4659_v53 = vpop.permute.xlu0 %1358  ;;  %s4665_s17 = sld [smem:[#allocation7 + $0x7d]] }
 0x461   : > { %v4650_v54 = vadd.f32 %v1145_v13, %v1140_v46  ;;  %v1323_v55 = vadd.f32 %v1321_v44, %v1316_v16  ;;  %v4655_v11 = vmul.f32 %v1339_v28, %v3969_v62  ;;  %v1499_v26 = vadd.f32 %v1497_v36, %v1492_v9  ;;  %v4661_v24 = vpop.permute.xlu1 %2405  ;;  %s4730_s6 = sld [smem:[#allocation7 + $0x53]] }
 0x462   : > { %1626 = vrot.lane.b32.xlu1 %v1625_v23, %s5675_s21  ;;  %5686 = vst [vmem:[#allocation82_spill] sm:$0xff] %v4661_v24  ;;  %v2199_v51 = vrot.slane %v2197_v39, 7  ;;  %v2396_v42 = vrot.slane %v2394_v52, 7  ;;  %v1238_v35 = vmul.f32 %v1237_v21, %v3969_v62  ;;  %v1820_v13 = vmul.f32 %v1819_v50, %v3969_v62  ;;  %s5694_s26 = sld [smem:[#allocation72_spill]] }
 0x463   : > { %v1504_v28 = vrot.slane %v1502_v7, 2  ;;  %v1509_v29 = vmul.f32 %v1508_v56, %v3969_v62  ;;  %v1434_v20 = vstv %s4607_s3  ;;  %v1040_v57 = vstv %s4611_s16  ;;  %s4725_s16 = sld [smem:[#allocation7 + $0x95]] }
 0x464   : > { %v943_v46 = vadd.f32 %v941_v43, %v936_v63  ;;  %v1335_v16 = vrot.slane %v1333_v27, 6  ;;  %v1516_v44 = vmul.f32 %v1515_v59, %v3969_v62  ;;  %v4680_v36 = vmul.f32 %v1522_v60, %v3969_v62  ;;  %2200 = vrot.lane.b32.xlu0 %v2199_v51, %s5620_s19  ;;  %v4690_v59 = vpop.permute.xlu0 %964  ;;  %s5695_s23 = sld [smem:[#allocation73_spill]] }
 0x465   : > { %v1330_v56 = vadd.f32 %v1328_v37, %v1323_v55  ;;  %v1342_v45 = vrot.slane %v4655_v11, 7  ;;  %v1506_v23 = vadd.f32 %v1504_v28, %v1499_v26  ;;  %v4688_v43 = vmul.f32 %v1529_v61, %v3969_v62  ;;  %v4692_v39 = vpop.permute.xlu1 %1170  ;;  %s4793_s29 = sld [smem:[#allocation7 + $0x80]] }
 0x466   : > { %2397 = vrot.lane.b32.xlu1 %v2396_v42, %s5620_s19  ;;  %v1240_v60 = vrot.slane %v1238_v35, 2  ;;  %v1822_v52 = vrot.slane %v1820_v13, 1  ;;  %v1435_v9 = vmul.f32 %v1434_v20, %v3969_v62  ;;  %v1041_v7 = vmul.f32 %v1040_v57, %v3969_v62  ;;  %s4832_s20 = sld [smem:[#allocation7 + $0xe]] }
 0x467   : > { %v1511_v21 = vrot.slane %v1509_v29, 3  ;;  %v2086_v50 = vmul.f32 %v2085_v3, %v3969_v62  ;;  %v1246_v61 = vstv %s4630_s30  ;;  %v1631_v63 = vstv %s4640_s5  ;;  %s4757_s30 = sld [smem:[#allocation7 + $0x26]] }
 0x468   : > { %v4705_v37 = vadd.f32 %v948_v19, %v943_v46  ;;  %v1518_v27 = vrot.slane %v1516_v44, 4  ;;  %v1525_v55 = vrot.slane %v4680_v36, 5  ;;  %v4711_v11 = vmul.f32 %v1536_v22, %v3969_v62  ;;  %1241 = vrot.lane.b32.xlu0 %v1240_v60, %s5675_s21  ;;  %v4719_v42 = vpop.permute.xlu0 %1555  ;;  %s4766_s5 = sld [smem:[#allocation7 + $0xad]] }
 0x469   : > { %v1337_v3 = vadd.f32 %v1335_v16, %v1330_v56  ;;  %v1513_v26 = vadd.f32 %v1511_v21, %v1506_v23  ;;  %v1532_v19 = vrot.slane %v4688_v43, 6  ;;  %v2093_v51 = vmul.f32 %v2092_v10, %v3969_v62  ;;  %v4721_v22 = vpop.permute.xlu1 %1752  ;;  %s5711_s12 = sld [smem:[#allocation46_spill]] }
 0x46a   : > { %1823 = vrot.lane.b32.xlu1 %v1822_v52, %s5675_s21  ;;  %v1437_v35 = vrot.slane %v1435_v9, 2  ;;  %v1043_v13 = vrot.slane %v1041_v7, 2  ;;  %v1247_v28 = vmul.f32 %v1246_v61, %v3969_v62  ;;  %v1632_v29 = vmul.f32 %v1631_v63, %v3969_v62  ;;  %s5715_s11 = sld [smem:[#allocation60_spill]] }
 0x46b   : > { %v2088_v20 = vrot.slane %v2086_v50, 1  ;;  %v2016_v46 = vstv %s4665_s17  ;;  %v1828_v16 = vstv %s4672_s2  ;;  %v2100_v44 = vmul.f32 %v2099_v6, %v3969_v62  ;;  %s4800_s17 = sld [smem:[#allocation7 + $0x6b]] }
 0x46c   : > { %v4739_v36 = vmul.f32 %v2106_v8, %v3969_v62  ;;  %v1692_v56 = vmul.f32 %v1691_v32, %v3969_v62  ;;  %1438 = vrot.lane.b32.xlu0 %v1437_v35, %s5675_s21  ;;  %v4746_v23 = vadd.f32 %v1342_v45, %v1337_v3  ;;  %v1520_v60 = vadd.f32 %v1518_v27, %v1513_v26  ;;  %v4751_v8 = vpop.permute.xlu0 %1367  ;;  %s5700_s2 = sld [smem:[#allocation74_spill]] }
 0x46d   : > { %v2083_v6 = vmul.f32 %v2082_v2, %v3969_v62  ;;  %v2095_v52 = vrot.slane %v2093_v51, 2  ;;  %v4753_v9 = vpop.permute.xlu1 %973  ;;  %v1249_v7 = vrot.slane %v1247_v28, 3  ;;  %v1634_v32 = vrot.slane %v1632_v29, 2  ;;  %s4924_s3 = sld [smem:[#allocation7 + $0x41]] }
 0x46e   : > { %1044 = vrot.lane.b32.xlu1 %v1043_v13, %s5675_s21  ;;  %v2017_v21 = vmul.f32 %v2016_v46, %v3969_v62  ;;  %v1829_v50 = vmul.f32 %v1828_v16, %v3969_v62  ;;  %v4762_v2 = vmul.f32 %v2113_v15, %v3969_v62  ;;  %v1443_v61 = vstv %s4696_s14  ;;  %s4848_s14 = sld [smem:[#allocation7 + $0xb7]] }
 0x46f   : > { %v2090_v45 = vadd.f32 %v2088_v20, %v2083_v6  ;;  %v1049_v63 = vstv %s4703_s10  ;;  %v2102_v27 = vrot.slane %v2100_v44, 3  ;;  %v4772_v26 = vmul.f32 %v2120_v30, %v3969_v62  ;;  %s4915_s10 = sld [smem:[#allocation7 + $0x6e]] }
 0x470   : > { %v1694_v51 = vrot.slane %v1692_v56, 1  ;;  %1250 = vrot.lane.b32.xlu0 %v1249_v7, %s5675_s21  ;;  %v1527_v15 = vadd.f32 %v1525_v55, %v1520_v60  ;;  %v4779_v35 = vmul.f32 %v2127_v31, %v3969_v62  ;;  %v1689_v13 = vmul.f32 %v1688_v12, %v3969_v62  ;;  %v4787_v29 = vpop.permute.xlu0 %1179  ;;  %s4945_s9 = sld [smem:[#allocation7 + $0x9b]] }
 0x471   : > { %v5696_v28 = vstv %s5694_s26  ;;  %v4789_v20 = vpop.permute.xlu1 %1564  ;;  %v2019_v46 = vrot.slane %v2017_v21, 1  ;;  %v1831_v16 = vrot.slane %v1829_v50, 2  ;;  %v1444_v55 = vmul.f32 %v1443_v61, %v3969_v62  ;;  %s4957_s28 = sld [smem:[#allocation7 + $0x59]] }
 0x472   : > { %1635 = vrot.lane.b32.xlu1 %v1634_v32, %s5675_s21  ;;  %v1699_v30 = vmul.f32 %v5696_v28, %v3969_v62  ;;  %v1050_v44 = vmul.f32 %v1049_v63, %v3969_v62  ;;  %v2097_v31 = vadd.f32 %v2095_v52, %v2090_v45  ;;  %v5697_v12 = vstv %s5695_s23  ;;  %s4966_s0 = sld [smem:[#allocation7 + $0x2c]] }
 0x473   : > { %v1706_v56 = vmul.f32 %v5697_v12, %v3969_v62  ;;  %v2213_v60 = vstv %s4725_s16  ;;  %v1640_v6 = vstv %s4730_s6  ;;  %v1696_v32 = vadd.f32 %v1694_v51, %v1689_v13  ;;  %s4936_s16 = sld [smem:[#allocation7 + $0x11]] }
 0x474   : > { %v5698_v21 = vstv %s4370_s22  ;;  %v5699_v61 = vstv %s4446_s8  ;;  %2020 = vrot.lane.b32.xlu0 %v2019_v46, %s5675_s21  ;;  %v4813_v52 = vadd.f32 %v1532_v19, %v1527_v15  ;;  %v1701_v51 = vrot.slane %v1699_v30, 2  ;;  %s4817_s22 = sld [smem:[#allocation7 + $0xb4]]  ;;  %v4819_v13 = vpop.permute.xlu0 %1949 }
 0x475   : > { %v1889_v50 = vmul.f32 %v5698_v21, %v3969_v62  ;;  %v2283_v28 = vmul.f32 %v5699_v61, %v3969_v62  ;;  %v4821_v12 = vpop.permute.xlu1 %1761  ;;  %v1446_v46 = vrot.slane %v1444_v55, 3  ;;  %v1052_v21 = vrot.slane %v1050_v44, 3  ;;  %s4825_s8 = sld [smem:[#allocation7 + $0x3e]] }
 0x476   : > { %1832 = vrot.lane.b32.xlu1 %v1831_v16, %s5675_s21  ;;  %v2214_v43 = vmul.f32 %v2213_v60, %v3969_v62  ;;  %v1641_v19 = vmul.f32 %v1640_v6, %v3969_v62  ;;  %v2104_v15 = vadd.f32 %v2102_v27, %v2097_v31  ;;  %v5701_v30 = vstv %s5700_s2  ;;  %s5719_s6 = sld [smem:[#allocation62_spill]] }
 0x477   : > { %v1713_v16 = vmul.f32 %v5701_v30, %v3969_v62  ;;  %v1255_v61 = vstv %s4757_s30  ;;  %v2410_v63 = vstv %s4766_s5  ;;  %v1703_v55 = vadd.f32 %v1701_v51, %v1696_v32  ;;  %s4976_s25 = sld [smem:[#allocation7 + $0xb3]] }
 0x478   : > { %v1708_v10 = vrot.slane %v1706_v56, 3  ;;  %v1891_v44 = vrot.slane %v1889_v50, 1  ;;  %v2285_v45 = vrot.slane %v2283_v28, 1  ;;  %1447 = vrot.lane.b32.xlu0 %v1446_v46, %s5675_s21  ;;  %v5702_v27 = vstv %s5651_s15  ;;  %v4850_v50 = vpop.permute.xlu0 %1376  ;;  %s4866_s15 = sld [smem:[#allocation7 + $0x56]] }
 0x479   : > { %v1886_v31 = vmul.f32 %v5702_v27, %v3969_v62  ;;  %v5703_v60 = vstv %s4376_s13  ;;  %v5704_v30 = vstv %s4426_s27  ;;  %v2290_v56 = vmul.f32 %v2289_v58, %v3969_v62  ;;  %v4852_v28 = vpop.permute.xlu1 %982  ;;  %s4856_s13 = sld [smem:[#allocation7 + $0x98]] }
 0x47a   : > { %1053 = vrot.lane.b32.xlu1 %v1052_v21, %s5675_s21  ;;  %v1896_v6 = vmul.f32 %v5703_v60, %v3969_v62  ;;  %v2280_v32 = vmul.f32 %v5704_v30, %v3969_v62  ;;  %v2216_v51 = vrot.slane %v2214_v43, 1  ;;  %v1643_v46 = vrot.slane %v1641_v19, 3  ;;  %s4891_s27 = sld [smem:[#allocation7 + $0xb0]] }
 0x47b   : > { %v1256_v21 = vmul.f32 %v1255_v61, %v3969_v62  ;;  %v2411_v27 = vmul.f32 %v2410_v63, %v3969_v62  ;;  %v5705_v60 = vstv %s4336_s4  ;;  %v5706_v58 = vstv %s4384_s7  ;;  %s4874_s4 = sld [smem:[#allocation7 + $0xba]] }
 0x47c   : > { %v1720_v30 = vmul.f32 %v5705_v60, %v3969_v62  ;;  %v1903_v7 = vmul.f32 %v5706_v58, %v3969_v62  ;;  %v2025_v3 = vstv %s4793_s29  ;;  %v1837_v57 = vstv %s4800_s17  ;;  %2217 = vrot.lane.b32.xlu0 %v2216_v51, %s5675_s21  ;;  %s4882_s7 = sld [smem:[#allocation7 + $0x29]] }
 0x47d   : > { %v1710_v43 = vadd.f32 %v1708_v10, %v1703_v55  ;;  %v1715_v19 = vrot.slane %v1713_v16, 4  ;;  %v1893_v24 = vadd.f32 %v1891_v44, %v1886_v31  ;;  %v2287_v61 = vadd.f32 %v2285_v45, %v2280_v32  ;;  %v4876_v10 = vpop.permute.xlu0 %2146  ;;  %v4878_v16 = vpop.permute.xlu1 %1573  ;;  %s4991_s26 = sld [smem:[#allocation7 + $0x86]] }
 0x47e   : > { %1644 = vrot.lane.b32.xlu1 %v1643_v46, %s5675_s21  ;;  %v1898_v63 = vrot.slane %v1896_v6, 2  ;;  %v2292_v60 = vrot.slane %v2290_v56, 2  ;;  %v5707_v18 = vstv %s4657_s1  ;;  %v2303_v40 = vstv %s4817_s22  ;;  %s4900_s1 = sld [smem:[#allocation7 + $0xbd]] }
 0x47f   : > { %v2297_v58 = vmul.f32 %v5707_v18, %v3969_v62  ;;  %v1258_v45 = vrot.slane %v1256_v21, 4  ;;  %v2413_v55 = vrot.slane %v2411_v27, 1  ;;  %v2026_v44 = vmul.f32 %v2025_v3, %v3969_v62  ;;  %s5004_s30 = sld [smem:[#allocation7 + $0x71]] }
 0x480   : > { %v1838_v31 = vmul.f32 %v1837_v57, %v3969_v62  ;;  %v5708_v6 = vrot.slane %v4739_v36, 4  ;;  %v5709_v32 = vstv %s4342_s24  ;;  %v1452_v51 = vstv %s4825_s8  ;;  %s5712_s24 = sld [smem:[#allocation59_spill]] }
 0x481   : > { %v1727_v56 = vmul.f32 %v5709_v32, %v3969_v62  ;;  %v1058_v46 = vstv %s4832_s20  ;;  %v1900_v49 = vadd.f32 %v1898_v63, %v1893_v24  ;;  %v1905_v21 = vrot.slane %v1903_v7, 3  ;;  %1259 = vrot.lane.b32.xlu0 %v1258_v45, %s5675_s21  ;;  %v4902_v24 = vpop.permute.xlu0 %1188  ;;  %v4904_v7 = vpop.permute.xlu1 %2343  ;;  %s5014_s5 = sld [smem:[#allocation7 + $0x44]] }
 0x482   : > { %v2111_v18 = vadd.f32 %v5708_v6, %v2104_v15  ;;  %v5710_v27 = vstv %s4390_s18  ;;  %v2294_v4 = vadd.f32 %v2292_v60, %v2287_v61  ;;  %2414 = vrot.lane.b32.xlu1 %v2413_v55, %s5675_s21  ;;  %v1717_v57 = vadd.f32 %v1715_v19, %v1710_v43  ;;  %s4908_s18 = sld [smem:[#allocation7 + $0x83]] }
 0x483   : > { %v1910_v3 = vmul.f32 %v5710_v27, %v3969_v62  ;;  %v2299_v36 = vrot.slane %v2297_v58, 3  ;;  %v2304_v15 = vmul.f32 %v2303_v40, %v3969_v62  ;;  %v2310_v6 = vstv %s4848_s14  ;;  %s5026_s23 = sld [smem:[#allocation7 + $0x14]] }
 0x484   : > { %v2028_v61 = vrot.slane %v2026_v44, 2  ;;  %v1840_v63 = vrot.slane %v1838_v31, 3  ;;  %v1453_v60 = vmul.f32 %v1452_v51, %v3969_v62  ;;  %v1059_v45 = vmul.f32 %v1058_v46, %v3969_v62  ;;  %s5045_s29 = sld [smem:[#allocation7 + $0x9e]] }
 0x485   : > { %v1722_v43 = vrot.slane %v1720_v30, 5  ;;  %v5713_v40 = vstv %s5711_s12  ;;  %v2222_v58 = vstv %s4856_s13  ;;  %v1649_v55 = vstv %s4866_s15  ;;  %s5053_s17 = sld [smem:[#allocation7 + $0x5c]] }
 0x486   : > { %v1734_v19 = vmul.f32 %v5713_v40, %v3969_v62  ;;  %v1907_v32 = vadd.f32 %v1905_v21, %v1900_v49  ;;  %v1912_v27 = vrot.slane %v1910_v3, 4  ;;  %v5714_v44 = vstv %s5712_s24  ;;  %2029 = vrot.lane.b32.xlu0 %v2028_v61, %s5675_s21  ;;  %1841 = vrot.lane.b32.xlu1 %v1840_v63, %s5675_s21  ;;  %v4926_v49 = vpop.permute.xlu0 %1958  ;;  %v4928_v21 = vpop.permute.xlu1 %1770  ;;  %s5069_s2 = sld [smem:[#allocation7 + $0x2f]] }
 0x487   : > { %v1917_v31 = vmul.f32 %v5714_v44, %v3969_v62  ;;  %v2301_v38 = vadd.f32 %v2299_v36, %v2294_v4  ;;  %v1724_v30 = vadd.f32 %v1722_v43, %v1717_v57  ;;  %v2306_v51 = vrot.slane %v2304_v15, 4  ;;  %5716 = vst [vmem:[#allocation83_spill] sm:$0xff] %v4926_v49  ;;  %s5073_s22 = sld [smem:[#allocation7 + $0xb6]] }
 0x488   : > { %v2311_v46 = vmul.f32 %v2310_v6, %v3969_v62  ;;  %v2317_v40 = vstv %s4874_s4  ;;  %v1455_v3 = vrot.slane %v1453_v60, 4  ;;  %v1061_v4 = vrot.slane %v1059_v45, 4  ;;  %s5083_s8 = sld [smem:[#allocation7 + $0x89]] }
 0x489   : > { %v2223_v36 = vmul.f32 %v2222_v58, %v3969_v62  ;;  %v1650_v61 = vmul.f32 %v1649_v55, %v3969_v62  ;;  %v5717_v57 = vrot.slane %v4762_v2, 5  ;;  %v1729_v63 = vrot.slane %v1727_v56, 6  ;;  %s5087_s20 = sld [smem:[#allocation7 + $0x74]] }
 0x48a   : > { %v1264_v6 = vstv %s4882_s7  ;;  %v2419_v43 = vstv %s4891_s27  ;;  %v1914_v44 = vadd.f32 %v1912_v27, %v1907_v32  ;;  %v1919_v17 = vrot.slane %v1917_v31, 5  ;;  %1456 = vrot.lane.b32.xlu0 %v1455_v3, %s5675_s21  ;;  %1062 = vrot.lane.b32.xlu1 %v1061_v4, %s5675_s21  ;;  %v4947_v58 = vpop.permute.xlu0 %1385  ;;  %v4949_v55 = vpop.permute.xlu1 %991  ;;  %s5094_s14 = sld [smem:[#allocation7 + $0x47]] }
 0x48b   : > { %v2118_v15 = vadd.f32 %v5717_v57, %v2111_v18  ;;  %v5718_v47 = vstv %s5715_s11  ;;  %v2308_v60 = vadd.f32 %v2306_v51, %v2301_v38  ;;  %v1731_v45 = vadd.f32 %v1729_v63, %v1724_v30  ;;  %s5099_s13 = sld [smem:[#allocation7 + $0x17]] }
 0x48c   : > { %v1924_v49 = vmul.f32 %v5718_v47, %v3969_v62  ;;  %v2313_v2 = vrot.slane %v2311_v46, 5  ;;  %v2318_v18 = vmul.f32 %v2317_v40, %v3969_v62  ;;  %v2324_v56 = vstv %s4900_s1  ;;  %s5105_s15 = sld [smem:[#allocation7 + $0xa1]] }
 0x48d   : > { %v2225_v47 = vrot.slane %v2223_v36, 2  ;;  %v1652_v38 = vrot.slane %v1650_v61, 4  ;;  %v1265_v32 = vmul.f32 %v1264_v6, %v3969_v62  ;;  %v2420_v27 = vmul.f32 %v2419_v43, %v3969_v62  ;;  %s5111_s4 = sld [smem:[#allocation7 + $0x8c]] }
 0x48e   : > { %v5720_v31 = vrot.slane %v4772_v26, 6  ;;  %v1736_v51 = vrot.slane %v1734_v19, 7  ;;  %v2034_v46 = vstv %s4908_s18  ;;  %v1846_v40 = vstv %s4915_s10  ;;  %v4970_v6 = vpop.permute.xlu0 %2155  ;;  %s5117_s7 = sld [smem:[#allocation7 + $0x5f]] }
 0x48f   : > { %v1921_v3 = vadd.f32 %v1919_v17, %v1914_v44  ;;  %v1926_v4 = vrot.slane %v1924_v49, 6  ;;  %v5721_v57 = vstv %s5719_s6  ;;  %v2315_v36 = vadd.f32 %v2313_v2, %v2308_v60  ;;  %2226 = vrot.lane.b32.xlu0 %v2225_v47, %s5675_s21  ;;  %1653 = vrot.lane.b32.xlu1 %v1652_v38, %s5675_s21  ;;  %v4972_v17 = vpop.permute.xlu1 %1582  ;;  %s5121_s27 = sld [smem:[#allocation7 + $0x77]] }
 0x490   : > { %v2125_v30 = vadd.f32 %v5720_v31, %v2118_v15  ;;  %v4962_v63 = vmul.f32 %v5721_v57, %v3969_v62  ;;  %v1738_v26 = vadd.f32 %v1736_v51, %v1731_v45  ;;  %v2320_v19 = vrot.slane %v2318_v18, 6  ;;  %s5127_s12 = sld [smem:[#allocation7 + $0xb9]] }
 0x491   : > { %v2325_v61 = vmul.f32 %v2324_v56, %v3969_v62  ;;  %v1461_v15 = vstv %s4924_s3  ;;  %v1267_v49 = vrot.slane %v1265_v32, 5  ;;  %v2422_v43 = vrot.slane %v2420_v27, 2  ;;  %s5133_s24 = sld [smem:[#allocation7 + $0x8f]] }
 0x492   : > { %v2035_v44 = vmul.f32 %v2034_v46, %v3969_v62  ;;  %v1847_v60 = vmul.f32 %v1846_v40, %v3969_v62  ;;  %v5722_v45 = vrot.slane %v4711_v11, 7  ;;  %v5723_v18 = vrot.slane %v4779_v35, 7  ;;  %v4999_v46 = vpop.permute.xlu0 %1197  ;;  %s5139_s1 = sld [smem:[#allocation7 + $0xa4]] }
 0x493   : > { %v1746_v47 = vadd.f32 %v4481_v1, %v1738_v26  ;;  %v1067_v38 = vstv %s4936_s16  ;;  %v4985_v31 = vadd.f32 %v1926_v4, %v1921_v3  ;;  %v1933_v32 = vrot.slane %v4962_v63, 7  ;;  %1268 = vrot.lane.b32.xlu0 %v1267_v49, %s5675_s21  ;;  %2423 = vrot.lane.b32.xlu1 %v2422_v43, %s5675_s21  ;;  %v5001_v40 = vpop.permute.xlu1 %2352  ;;  %s5143_s18 = sld [smem:[#allocation7 + $0xa7]] }
 0x494   : > { %v1541_v2 = vadd.f32 %v5722_v45, %v4813_v52  ;;  %v2132_v56 = vadd.f32 %v5723_v18, %v2125_v30  ;;  %v2322_v27 = vadd.f32 %v2320_v19, %v2315_v36  ;;  %v1462_v51 = vmul.f32 %v1461_v15, %v3969_v62  ;;  %s5151_s10 = sld [smem:[#allocation7 + $0xbc]] }
 0x495   : > { %v958_v11 = vadd.f32 %v4430_v25, %v4705_v37  ;;  %v1352_v1 = vadd.f32 %v4451_v14, %v4746_v23  ;;  %v1755_v35 = vadd.f32 %v4721_v22, %v1746_v47  ;;  %v2231_v52 = vstv %s4945_s9  ;;  %s3194_s11 = sld [smem:[#allocation7 + $0xbf]] }
 0x496   : > { %v2327_v30 = vrot.slane %v2325_v61, 7  ;;  %v2037_v3 = vrot.slane %v2035_v44, 3  ;;  %v1849_v4 = vrot.slane %v1847_v60, 4  ;;  %v1068_v57 = vmul.f32 %v1067_v38, %v3969_v62  ;;  %v5022_v49 = vpop.permute.xlu0 %1967  ;;  %s3070_s3 = sld [smem:[#allocation8 + $0x2]] }
 0x497   : > { %v1361_v25 = vadd.f32 %v4659_v53, %v1352_v1  ;;  %v967_v37 = vadd.f32 %v4690_v59, %v958_v11  ;;  %v1764_v14 = vadd.f32 %v4821_v12, %v1755_v35  ;;  %v1658_v22 = vstv %s4957_s28  ;;  %v1780_v43 = vpop.permute.xlu1 %1779  ;;  %s1093_s16 = sld [smem:[#allocation8]] }
 0x498   : > { %v2329_v23 = vadd.f32 %v2327_v30, %v2322_v27  ;;  %2038 = vrot.lane.b32.xlu0 %v2037_v3, %s5675_s21  ;;  %1850 = vrot.lane.b32.xlu1 %v1849_v4, %s5675_s21  ;;  %v1464_v36 = vrot.slane %v1462_v51, 5  ;;  %v2232_v26 = vmul.f32 %v2231_v52, %v3969_v62  ;;  %v1273_v19 = vstv %s4966_s0  ;;  %s5198_s6 = sld [smem:[#allocation8 + $0x3]] }
 0x499   : > { %v1549_v61 = vadd.f32 %v4453_v5, %v1541_v2  ;;  %v1370_v53 = vadd.f32 %v4751_v8, %v1361_v25  ;;  %v976_v59 = vadd.f32 %v4753_v9, %v967_v37  ;;  %v1773_v12 = vadd.f32 %v4928_v21, %v1764_v14  ;;  %s5200_s9 = sld [smem:[#allocation8 + $0x4]] }
 0x49a   : > { %v1155_v15 = vadd.f32 %v4428_v41, %v4650_v54  ;;  %v1070_v44 = vrot.slane %v1068_v57, 5  ;;  %v1659_v60 = vmul.f32 %v1658_v22, %v3969_v62  ;;  %v2428_v45 = vstv %s4976_s25  ;;  %v1395_v27 = vpop.permute.xlu0 %1394  ;;  %s5202_s28 = sld [smem:[#allocation8 + $0x5]] }
 0x49b   : > { %v1558_v5 = vadd.f32 %v4719_v42, %v1549_v61  ;;  %v1379_v8 = vadd.f32 %v4850_v50, %v1370_v53  ;;  %v985_v9 = vadd.f32 %v4852_v28, %v976_v59  ;;  %v5031_v21 = vadd.f32 %v1780_v43, %v1773_v12  ;;  %v5724_v61 = vld [vmem:[#allocation83_spill] sm:$0xff]  ;;  %s3170_s0 = sld [smem:[#allocation8 + $0x6]] }
 0x49c   : > { %v1164_v41 = vadd.f32 %v4624_v34, %v1155_v15  ;;  %1465 = vrot.lane.b32.xlu0 %v1464_v36, %s5675_s21  ;;  %1071 = vrot.lane.b32.xlu1 %v1070_v44, %s5675_s21  ;;  %v2234_v54 = vrot.slane %v2232_v26, 3  ;;  %v1274_v2 = vmul.f32 %v1273_v19, %v3969_v62  ;;  %v2043_v18 = vstv %s4991_s26  ;;  %v1001_v34 = vpop.permute.xlu1 %1000  ;;  %s3195_s25 = sld [smem:[#allocation8 + $0x7]] }
 0x49d   : > { %v2140_v47 = vadd.f32 %v4479_v0, %v2132_v56  ;;  %v1567_v42 = vadd.f32 %v4789_v20, %v1558_v5  ;;  %v1388_v50 = vadd.f32 %v4947_v58, %v1379_v8  ;;  %v994_v28 = vadd.f32 %v4949_v55, %v985_v9  ;;  %s5733_s26 = sld [smem:[#allocation28_spill]] }
 0x49e   : > { %v1173_v38 = vadd.f32 %v4692_v39, %v1164_v41  ;;  %v1661_v51 = vrot.slane %v1659_v60, 5  ;;  %v2429_v11 = vmul.f32 %v2428_v45, %v3969_v62  ;;  %v1855_v1 = vstv %s5004_s30  ;;  %v2165_v4 = vpop.permute.xlu0 %2164  ;;  %s5287_s30 = sld [smem:[#allocation10 + $0x18]] }
 0x49f   : > { %v2149_v35 = vadd.f32 %v4876_v10, %v2140_v47  ;;  %v1576_v0 = vadd.f32 %v4878_v16, %v1567_v42  ;;  %v5049_v20 = vadd.f32 %v1395_v27, %v1388_v50  ;;  %v5051_v58 = vadd.f32 %v1001_v34, %v994_v28 }
 0x4a0   : > { %v1935_v39 = vadd.f32 %v1933_v32, %v4985_v31  ;;  %2235 = vrot.lane.b32.xlu0 %v2234_v54, %s5675_s21  ;;  %1662 = vrot.lane.b32.xlu1 %v1661_v51, %s5675_s21  ;;  %v1276_v55 = vrot.slane %v1274_v2, 6  ;;  %v2044_v10 = vmul.f32 %v2043_v18, %v3969_v62  ;;  %v1470_v56 = vstv %s5014_s5  ;;  %v1592_v31 = vpop.permute.xlu1 %1591  ;;  %s5289_s5 = sld [smem:[#allocation10 + $0x19]] }
 0x4a1   : > { %v2337_v16 = vadd.f32 %v4546_v48, %v2329_v23  ;;  %v1182_v52 = vadd.f32 %v4787_v29, %v1173_v38  ;;  %v2158_v30 = vadd.f32 %v4970_v6, %v2149_v35  ;;  %v1585_v3 = vadd.f32 %v4972_v17, %v1576_v0 }
 0x4a2   : > { %v1943_v63 = vadd.f32 %v4516_v33, %v1935_v39  ;;  %v2431_v32 = vrot.slane %v2429_v11, 3  ;;  %v1856_v57 = vmul.f32 %v1855_v1, %v3969_v62  ;;  %v1076_v25 = vstv %s5026_s23  ;;  %v1207_v22 = vpop.permute.xlu0 %1206  ;;  %s5734_s23 = sld [smem:[#allocation90_spill]] }
 0x4a3   : > { %v1191_v37 = vadd.f32 %v4902_v24, %v1182_v52  ;;  %v2346_v48 = vadd.f32 %v4904_v7, %v2337_v16  ;;  %v2167_v29 = vadd.f32 %v2165_v4, %v2158_v30  ;;  %v1594_v14 = vadd.f32 %v1592_v31, %v1585_v3 }
 0x4a4   : > { %1277 = vrot.lane.b32.xlu0 %v1276_v55, %s5675_s21  ;;  %2432 = vrot.lane.b32.xlu1 %v2431_v32, %s5675_s21  ;;  %v1952_v33 = vadd.f32 %v4819_v13, %v1943_v63  ;;  %v1471_v24 = vmul.f32 %v1470_v56, %v3969_v62  ;;  %v2362_v23 = vpop.permute.xlu1 %2361  ;;  %v2046_v7 = vrot.slane %v2044_v10, 4  ;;  %v1858_v36 = vrot.slane %v1856_v57, 5 }
 0x4a5   : > { %v1200_v6 = vadd.f32 %v4999_v46, %v1191_v37  ;;  %v2355_v17 = vadd.f32 %v5001_v40, %v2346_v48  ;;  %v1077_v26 = vmul.f32 %v1076_v25, %v3969_v62  ;;  %v2240_v19 = vstv %s5045_s29  ;;  %s5298_s29 = sld [smem:[#allocation10 + $0x1b]] }
 0x4a6   : > { %v1961_v53 = vadd.f32 %v5724_v61, %v1952_v33  ;;  %v1667_v46 = vstv %s5053_s17  ;;  %v1977_v12 = vpop.permute.xlu0 %1976  ;;  %v1473_v43 = vrot.slane %v1471_v24, 6  ;;  %v2241_v60 = vmul.f32 %v2240_v19, %v3969_v62  ;;  %s5303_s17 = sld [smem:[#allocation10 + $0x1c]] }
 0x4a7   : > { %v1209_v59 = vadd.f32 %v1207_v22, %v1200_v6  ;;  %v2364_v13 = vadd.f32 %v2362_v23, %v2355_v17  ;;  %v1079_v44 = vrot.slane %v1077_v26, 6  ;;  %v1668_v45 = vmul.f32 %v1667_v46, %v3969_v62 }
 0x4a8   : > { %2047 = vrot.lane.b32.xlu0 %v2046_v7, %s5675_s21  ;;  %1859 = vrot.lane.b32.xlu1 %v1858_v36, %s5675_s21  ;;  %v1970_v40 = vadd.f32 %v5022_v49, %v1961_v53  ;;  %v1789_v15 = vpop.permute.xlu1 %1788  ;;  %v1282_v9 = vstv %s5069_s2  ;;  %v2437_v41 = vstv %s5073_s22  ;;  %v2243_v2 = vrot.slane %v2241_v60, 4  ;;  %s5735_s2 = sld [smem:[#allocation89_spill]] }
 0x4a9   : > { %v1791_v8 = vadd.f32 %v1789_v15, %v5031_v21  ;;  %v1670_v18 = vrot.slane %v1668_v45, 6  ;;  %v1283_v47 = vmul.f32 %v1282_v9, %v3969_v62  ;;  %v2438_v42 = vmul.f32 %v2437_v41, %v3969_v62  ;;  %s5239_s22 = sld [smem:[#allocation10 + $0x1]] }
 0x4aa   : > { %v1979_v5 = vadd.f32 %v1977_v12, %v1970_v40  ;;  %v1404_v49 = vpop.permute.xlu0 %1403  ;;  %v2052_v28 = vstv %s5083_s8  ;;  %v1864_v38 = vstv %s5087_s20  ;;  %v1085_v39 = vstv %s5099_s13  ;;  %s5241_s8 = sld [smem:[#allocation10 + $0x2]] }
 0x4ab   : > { %v1406_v21 = vadd.f32 %v1404_v49, %v5049_v20  ;;  %v1285_v51 = vrot.slane %v1283_v47, 7  ;;  %v2440_v11 = vrot.slane %v2438_v42, 4  ;;  %v2053_v1 = vmul.f32 %v2052_v28, %v3969_v62  ;;  %s5243_s20 = sld [smem:[#allocation10 + $0x3]] }
 0x4ac   : > { %1474 = vrot.lane.b32.xlu0 %v1473_v43, %s5675_s21  ;;  %1080 = vrot.lane.b32.xlu1 %v1079_v44, %s5675_s21  ;;  %v1010_v54 = vpop.permute.xlu1 %1009  ;;  %v1865_v35 = vmul.f32 %v1864_v38, %v3969_v62  ;;  %v1086_v30 = vmul.f32 %v1085_v39, %v3969_v62  ;;  %v2249_v4 = vstv %s5105_s15  ;;  %v2061_v31 = vstv %s5111_s4  ;;  %s5247_s13 = sld [smem:[#allocation10 + $0x5]] }
 0x4ad   : > { %v1012_v50 = vadd.f32 %v1010_v54, %v5051_v58  ;;  %v1479_v58 = vstv %s5094_s14  ;;  %v2055_v56 = vrot.slane %v2053_v1, 5  ;;  %v2250_v48 = vmul.f32 %v2249_v4, %v3969_v62  ;;  %v5725_v1 = vld [vmem:[#allocation75_spill] sm:$0xff]  ;;  %s5245_s14 = sld [smem:[#allocation10 + $0x4]] }
 0x4ae   : > { %v2174_v27 = vpop.permute.xlu0 %2173  ;;  %v1867_v16 = vrot.slane %v1865_v35, 6  ;;  %v1480_v52 = vmul.f32 %v1479_v58, %v3969_v62  ;;  %v1088_v37 = vrot.slane %v1086_v30, 7  ;;  %v1676_v6 = vstv %s5117_s7  ;;  %s5249_s15 = sld [smem:[#allocation10 + $0x6]] }
 0x4af   : > { %v2176_v0 = vadd.f32 %v2174_v27, %v2167_v29  ;;  %v2062_v29 = vmul.f32 %v2061_v31, %v3969_v62  ;;  %v1873_v17 = vstv %s5121_s27  ;;  %v2252_v23 = vrot.slane %v2250_v48, 5  ;;  %s5251_s4 = sld [smem:[#allocation10 + $0x7]] }
 0x4b0   : > { %2244 = vrot.lane.b32.xlu0 %v2243_v2, %s5675_s21  ;;  %1671 = vrot.lane.b32.xlu1 %v1670_v18, %s5675_s21  ;;  %v1601_v34 = vpop.permute.xlu1 %1600  ;;  %v1482_v25 = vrot.slane %v1480_v52, 7  ;;  %v1677_v36 = vmul.f32 %v1676_v6, %v3969_v62  ;;  %v1874_v26 = vmul.f32 %v1873_v17, %v3969_v62  ;;  %v2446_v53 = vstv %s5127_s12  ;;  %s5253_s7 = sld [smem:[#allocation10 + $0x8]] }
 0x4b1   : > { %v1603_v20 = vadd.f32 %v1601_v34, %v1594_v14  ;;  %v2064_v7 = vrot.slane %v2062_v29, 6  ;;  %v2447_v15 = vmul.f32 %v2446_v53, %v3969_v62  ;;  %v2258_v45 = vstv %s5139_s1  ;;  %s5255_s27 = sld [smem:[#allocation10 + $0x9]] }
 0x4b2   : > { %v1216_v55 = vpop.permute.xlu0 %1215  ;;  %v1679_v40 = vrot.slane %v1677_v36, 7  ;;  %v1876_v12 = vrot.slane %v1874_v26, 7  ;;  %v2259_v54 = vmul.f32 %v2258_v45, %v3969_v62  ;;  %v2455_v42 = vstv %s5151_s10  ;;  %s5257_s12 = sld [smem:[#allocation10 + $0xa]] }
 0x4b3   : > { %v5129_v3 = vadd.f32 %v1216_v55, %v1209_v59  ;;  %v2070_v59 = vstv %s5133_s24  ;;  %v2449_v41 = vrot.slane %v2447_v15, 5  ;;  %v2456_v27 = vmul.f32 %v2455_v42, %v3969_v62  ;;  %v5730_v15 = vld [vmem:[#allocation77_spill] sm:$0xff]  ;;  %s5259_s24 = sld [smem:[#allocation10 + $0xb]] }
 0x4b4   : > { %1286 = vrot.lane.b32.xlu0 %v1285_v51, %s5675_s21  ;;  %2441 = vrot.lane.b32.xlu1 %v2440_v11, %s5675_s21  ;;  %v2371_v10 = vpop.permute.xlu1 %2370  ;;  %v2071_v43 = vmul.f32 %v2070_v59, %v3969_v62  ;;  %v2261_v28 = vrot.slane %v2259_v54, 6  ;;  %v2464_v11 = vstv %s3194_s11  ;;  %v5731_v54 = vld [vmem:[#allocation79_spill] sm:$0xff]  ;;  %s5261_s1 = sld [smem:[#allocation10 + $0xc]] }
 0x4b5   : > { %v2373_v63 = vadd.f32 %v2371_v10, %v2364_v13  ;;  %v1226_v35 = vadd.f32 %v5725_v1, %v5129_v3  ;;  %v2458_v58 = vrot.slane %v2456_v27, 6  ;;  %v2465_v39 = vmul.f32 %v2464_v11, %v3969_v62  ;;  %s5265_s10 = sld [smem:[#allocation10 + $0xe]] }
 0x4b6   : > { %v1986_v32 = vpop.permute.xlu0 %1985  ;;  %v2073_v49 = vrot.slane %v2071_v43, 7  ;;  %s5267_s11 = sld [smem:[#allocation10 + $0xf]] }
 0x4b7   : > { %v1988_v14 = vadd.f32 %v1986_v32, %v1979_v5  ;;  %v2267_v5 = vstv %s5143_s18  ;;  %v5727_v32 = vld [vmem:[#allocation76_spill] sm:$0xff]  ;;  %s5263_s18 = sld [smem:[#allocation10 + $0xd]] }
 0x4b8   : > { %2056 = vrot.lane.b32.xlu0 %v2055_v56, %s5675_s21  ;;  %1868 = vrot.lane.b32.xlu1 %v1867_v16, %s5675_s21  ;;  %v1798_v57 = vpop.permute.xlu1 %1797  ;;  %v2268_v2 = vmul.f32 %v2267_v5, %v3969_v62  ;;  %v5726_v56 = vld [vmem:[#allocation78_spill] sm:$0xff] }
 0x4b9   : > { %v1800_v33 = vadd.f32 %v1798_v57, %v1791_v8  ;;  %v5728_v57 = vld [vmem:[#allocation80_spill] sm:$0xff] }
 0x4ba   : > { %v1413_v24 = vpop.permute.xlu0 %1412  ;;  %v2270_v38 = vrot.slane %v2268_v2, 7 }
 0x4bb   : > { %v1415_v19 = vadd.f32 %v1413_v24, %v1406_v21  ;;  %v5729_v24 = vld [vmem:[#allocation81_spill] sm:$0xff] }
 0x4bc   : > { %1483 = vrot.lane.b32.xlu0 %v1482_v25, %s5675_s21  ;;  %1089 = vrot.lane.b32.xlu1 %v1088_v37, %s5675_s21  ;;  %v1019_v22 = vpop.permute.xlu1 %1018 }
 0x4bd   : > { %v1021_v61 = vadd.f32 %v1019_v22, %v1012_v50  ;;  %v1423_v3 = vadd.f32 %v5727_v32, %v1415_v19 }
 0x4be   : > { %v2183_v13 = vpop.permute.xlu0 %2182 }
 0x4bf   : > { %v2185_v44 = vadd.f32 %v2183_v13, %v2176_v0  ;;  %v1029_v16 = vadd.f32 %v5726_v56, %v1021_v61 }
 0x4c0   : > { %2253 = vrot.lane.b32.xlu0 %v2252_v23, %s5675_s21  ;;  %2065 = vrot.lane.b32.xlu1 %v2064_v7, %s5675_s21  ;;  %v1610_v46 = vpop.permute.xlu1 %1609 }
 0x4c1   : > { %v1612_v60 = vadd.f32 %v1610_v46, %v1603_v20 }
 0x4c2   : > { %v1995_v8 = vpop.permute.xlu0 %1994 }
 0x4c3   : > { %v1997_v18 = vadd.f32 %v1995_v8, %v1988_v14  ;;  %v1620_v25 = vadd.f32 %v5728_v57, %v1612_v60 }
 0x4c4   : > { %1680 = vrot.lane.b32.xlu0 %v1679_v40, %s5675_s21  ;;  %1877 = vrot.lane.b32.xlu1 %v1876_v12, %s5675_s21  ;;  %v2380_v9 = vpop.permute.xlu1 %2379 }
 0x4c5   : > { %v2382_v47 = vadd.f32 %v2380_v9, %v2373_v63  ;;  %v2467_v63 = vrot.slane %v2465_v39, 7 }
 0x4c6   : > { %v2192_v21 = vpop.permute.xlu0 %2191 }
 0x4c7   : > { %v2194_v34 = vadd.f32 %v2192_v21, %v2185_v44 }
 0x4c8   : > { %2450 = vrot.lane.b32.xlu0 %v2449_v41, %s5675_s21  ;;  %2074 = vrot.lane.b32.xlu1 %v2073_v49, %s5675_s21  ;;  %v1807_v50 = vpop.permute.xlu1 %1806 }
 0x4c9   : > { %v1809_v51 = vadd.f32 %v1807_v50, %v1800_v33 }
 0x4ca   : > { %v1233_v0 = vpop.permute.xlu0 %1232 }
 0x4cb   : > { %v1235_v55 = vadd.f32 %v1233_v0, %v1226_v35  ;;  %v1817_v22 = vadd.f32 %v5729_v24, %v1809_v51 }
 0x4cc   : > { %2262 = vrot.lane.b32.xlu0 %v2261_v28, %s5675_s21  ;;  %2271 = vrot.lane.b32.xlu1 %v2270_v38, %s5675_s21  ;;  %v2389_v20 = vpop.permute.xlu1 %2388 }
 0x4cd   : > { %v2391_v10 = vadd.f32 %v2389_v20, %v2382_v47 }
 0x4ce   : > { %v2004_v52 = vpop.permute.xlu0 %2003 }
 0x4cf   : > { %v2006_v4 = vadd.f32 %v2004_v52, %v1997_v18 }
 0x4d0   : > { %2459 = vrot.lane.b32.xlu0 %v2458_v58, %s5675_s21  ;;  %v1036_v30 = vpop.permute.xlu1 %1035 }
 0x4d1   : > { %v1038_v31 = vadd.f32 %v1036_v30, %v1029_v16  ;;  %v2014_v43 = vadd.f32 %v5730_v15, %v2006_v4 }
 0x4d2   : > { %v1430_v37 = vpop.permute.xlu0 %1429 }
 0x4d3   : > { %v1432_v62 = vadd.f32 %v1430_v37, %v1423_v3 }
 0x4d4   : > { %2468 = vrot.lane.b32.xlu0 %v2467_v63, %s5675_s21  ;;  %v1627_v48 = vpop.permute.xlu1 %1626  ;;  %s3045_s21 = sld [smem:[#allocation8 + $0x1]] }
 0x4d5   : > { %v1629_v29 = vadd.f32 %v1627_v48, %v1620_v25 }
 0x4d6   : > { %v2201_v14 = vpop.permute.xlu0 %2200 }
 0x4d7   : > { %v2203_v6 = vadd.f32 %v2201_v14, %v2194_v34 }
 0x4d8   : > { %v2398_v33 = vpop.permute.xlu1 %2397 }
 0x4d9   : > { %v5177_v17 = vadd.f32 %v2398_v33, %v2391_v10  ;;  %v2211_v2 = vadd.f32 %v5731_v54, %v2203_v6 }
 0x4da   : > { %v1242_v23 = vpop.permute.xlu0 %1241  ;;  %v1291_v24 = vstv %s3045_s21  ;;  %s5269_s21 = sld [smem:[#allocation11 + $0x1]] }
 0x4db   : > { %v1244_v36 = vadd.f32 %v1242_v23, %v1235_v55 }
 0x4dc   : > { %v1824_v7 = vpop.permute.xlu1 %1823 }
 0x4dd   : > { %v1826_v26 = vadd.f32 %v1824_v7, %v1817_v22 }
 0x4de   : > { %v1439_v61 = vpop.permute.xlu0 %1438 }
 0x4df   : > { %v1441_v19 = vadd.f32 %v1439_v61, %v1432_v62 }
 0x4e0   : > { %v1045_v53 = vpop.permute.xlu1 %1044 }
 0x4e1   : > { %v1047_v59 = vadd.f32 %v1045_v53, %v1038_v31 }
 0x4e2   : > { %v1251_v13 = vpop.permute.xlu0 %1250 }
 0x4e3   : > { %v1253_v40 = vadd.f32 %v1251_v13, %v1244_v36  ;;  %v1094_v13 = vstv %s1093_s16  ;;  %s5273_s16 = sld [smem:[#allocation10 + $0x11]] }
 0x4e4   : > { %v1636_v46 = vpop.permute.xlu1 %1635 }
 0x4e5   : > { %v1638_v12 = vadd.f32 %v1636_v46, %v1629_v29 }
 0x4e6   : > { %v2021_v44 = vpop.permute.xlu0 %2020 }
 0x4e7   : > { %v2023_v45 = vadd.f32 %v2021_v44, %v2014_v43 }
 0x4e8   : > { %v1833_v60 = vpop.permute.xlu1 %1832 }
 0x4e9   : > { %v1835_v5 = vadd.f32 %v1833_v60, %v1826_v26 }
 0x4ea   : > { %v1448_v8 = vpop.permute.xlu0 %1447 }
 0x4eb   : > { %v1450_v41 = vadd.f32 %v1448_v8, %v1441_v19  ;;  %v1488_v19 = vstv %s3070_s3  ;;  %s5271_s3 = sld [smem:[#allocation10 + $0x10]] }
 0x4ec   : > { %v1054_v9 = vpop.permute.xlu1 %1053 }
 0x4ed   : > { %v1056_v49 = vadd.f32 %v1054_v9, %v1047_v59 }
 0x4ee   : > { %v2218_v18 = vpop.permute.xlu0 %2217 }
 0x4ef   : > { %v5182_v42 = vadd.f32 %v2218_v18, %v2211_v2 }
 0x4f0   : > { %v1645_v47 = vpop.permute.xlu1 %1644 }
 0x4f1   : > { %v1647_v21 = vadd.f32 %v1645_v47, %v1638_v12 }
 0x4f3   : > { %v1260_v50 = vpop.permute.xlu0 %1259 }
 0x4f4   : > { %v5184_v28 = vpop.permute.xlu1 %2414  ;;  %v1262_v38 = vadd.f32 %v1260_v50, %v1253_v40 }
 0x4f8   : > { %v2030_v27 = vpop.permute.xlu0 %2029  ;;  %v1842_v34 = vpop.permute.xlu1 %1841 }
 0x4f9   : > { %v2032_v51 = vadd.f32 %v2030_v27, %v2023_v45  ;;  %v1844_v40 = vadd.f32 %v1842_v34, %v1835_v5  ;;  %v1685_v27 = vstv %s5198_s6  ;;  %s5275_s6 = sld [smem:[#allocation10 + $0x12]] }
 0x4fc   : > { %v1457_v11 = vpop.permute.xlu0 %1456  ;;  %v1063_v1 = vpop.permute.xlu1 %1062 }
 0x4fd   : > { %v1459_v14 = vadd.f32 %v1457_v11, %v1450_v41  ;;  %v1065_v33 = vadd.f32 %v1063_v1, %v1056_v49  ;;  %v1882_v11 = vstv %s5200_s9  ;;  %s5277_s9 = sld [smem:[#allocation10 + $0x13]] }
 0x501   : > { %v5186_v35 = vpop.permute.xlu0 %2226  ;;  %v1654_v0 = vpop.permute.xlu1 %1653 }
 0x502   : > { %v1656_v43 = vadd.f32 %v1654_v0, %v1647_v21 }
 0x505   : > { %v1269_v20 = vpop.permute.xlu0 %1268  ;;  %v5188_v58 = vpop.permute.xlu1 %2423 }
 0x506   : > { %v1271_v37 = vadd.f32 %v1269_v20, %v1262_v38 }
 0x50a   : > { %v2039_v39 = vpop.permute.xlu0 %2038  ;;  %v1851_v55 = vpop.permute.xlu1 %1850 }
 0x50b   : > { %v1853_v44 = vadd.f32 %v1851_v55, %v1844_v40  ;;  %v2041_v9 = vadd.f32 %v2039_v39, %v2032_v51  ;;  %v2229_v51 = vadd.f32 %v5186_v35, %v5182_v42  ;;  %v5732_v55 = vld [vmem:[#allocation82_spill] sm:$0xff] }
 0x50e   : > { %v1466_v10 = vpop.permute.xlu0 %1465  ;;  %v1072_v56 = vpop.permute.xlu1 %1071 }
 0x50f   : > { %v1468_v7 = vadd.f32 %v1466_v10, %v1459_v14  ;;  %v1074_v36 = vadd.f32 %v1072_v56, %v1065_v33  ;;  %v2408_v10 = vadd.f32 %v5732_v55, %v5177_v17 }
 0x512   : > { %v5190_v16 = vpop.permute.xlu0 %2235  ;;  %v1663_v52 = vpop.permute.xlu1 %1662 }
 0x513   : > { %v1665_v54 = vadd.f32 %v1663_v52, %v1656_v43  ;;  %v2238_v56 = vadd.f32 %v5190_v16, %v2229_v51 }
 0x516   : > { %v1278_v30 = vpop.permute.xlu0 %1277  ;;  %v5192_v63 = vpop.permute.xlu1 %2432 }
 0x517   : > { %v1280_v29 = vadd.f32 %v1278_v30, %v1271_v37 }
 0x51a   : > { %v2048_v4 = vpop.permute.xlu0 %2047  ;;  %v1860_v31 = vpop.permute.xlu1 %1859 }
 0x51b   : > { %v1862_v2 = vadd.f32 %v1860_v31, %v1853_v44  ;;  %v2050_v5 = vadd.f32 %v2048_v4, %v2041_v9  ;;  %v2417_v31 = vadd.f32 %v5184_v28, %v2408_v10  ;;  %v2504_v44 = vld [vmem:[%s5734_s23] sm:$0xff]  ;;  %s5293_s23 = sld [smem:[#allocation10 + $0x1a]] }
 0x51e   : > { %v1475_v32 = vpop.permute.xlu0 %1474  ;;  %v1081_v3 = vpop.permute.xlu1 %1080 }
 0x51f   : > { %v1477_v26 = vadd.f32 %v1475_v32, %v1468_v7  ;;  %v1083_v61 = vadd.f32 %v1081_v3, %v1074_v36  ;;  %v2079_v3 = vstv %s5202_s28  ;;  %s5279_s28 = sld [smem:[#allocation10 + $0x14]] }
 0x522   : > { %v5194_v57 = vpop.permute.xlu0 %2244  ;;  %v1672_v25 = vpop.permute.xlu1 %1671 }
 0x523   : > { %v1674_v50 = vadd.f32 %v1672_v25, %v1665_v54  ;;  %v2247_v37 = vadd.f32 %v5194_v57, %v2238_v56 }
 0x526   : > { %v1287_v48 = vpop.permute.xlu0 %1286  ;;  %v5196_v62 = vpop.permute.xlu1 %2441 }
 0x527   : > { %v1289_v6 = vadd.f32 %v1287_v48, %v1280_v29  ;;  %v2426_v29 = vadd.f32 %v5188_v58, %v2417_v31 }
 0x529   : > { %v1292_v53 = vadd.f32 %v1291_v24, %v1289_v6  ;;  %v2435_v28 = vadd.f32 %v5192_v63, %v2426_v29 }
 0x52a   : > { %v2057_v22 = vpop.permute.xlu0 %2056  ;;  %v1869_v23 = vpop.permute.xlu1 %1868 }
 0x52b   : > { %v2476_v60 = vrot.slane %v1292_v53, 7  ;;  %v1871_v38 = vadd.f32 %v1869_v23, %v1862_v2  ;;  %v2059_v0 = vadd.f32 %v2057_v22, %v2050_v5  ;;  %v2276_v23 = vstv %s3170_s0  ;;  %s5281_s0 = sld [smem:[#allocation10 + $0x15]] }
 0x52c   : > { %v2444_v57 = vadd.f32 %v5196_v62, %v2435_v28 }
 0x52e   : > { %v1484_v59 = vpop.permute.xlu0 %1483  ;;  %v1090_v46 = vpop.permute.xlu1 %1089 }
 0x52f   : > { %v1486_v12 = vadd.f32 %v1484_v59, %v1477_v26  ;;  %v1092_v15 = vadd.f32 %v1090_v46, %v1083_v61 }
 0x531   : > { %v1489_v45 = vadd.f32 %v1488_v19, %v1486_v12  ;;  %v1095_v8 = vadd.f32 %v1094_v13, %v1092_v15  ;;  %v2473_v13 = vstv %s3195_s25  ;;  %s5283_s25 = sld [smem:[#allocation10 + $0x16]] }
 0x532   : > { %v2254_v41 = vpop.permute.xlu0 %2253  ;;  %v2066_v49 = vpop.permute.xlu1 %2065 }
 0x533   : > { %v2479_v18 = vrot.slane %v1489_v45, 6  ;;  %v2496_v47 = vsel %vm818_vm2, %v1095_v8, %v2476_v60  ;;  %v2068_v52 = vadd.f32 %v2066_v49, %v2059_v0  ;;  %v2256_v14 = vadd.f32 %v2254_v41, %v2247_v37  ;;  %v3357_v60 = vld [vmem:[%s5733_s26] sm:$0xf]  ;;  %s5285_s26 = sld [smem:[#allocation10 + $0x17]] }
 0x535   : > { %v2497_v21 = vsel %vm820_vm3, %v2496_v47, %v2479_v18 }
 0x536   : > { %v1681_v34 = vpop.permute.xlu0 %1680  ;;  %v1878_v1 = vpop.permute.xlu1 %1877 }
 0x537   : > { %v1683_v20 = vadd.f32 %v1681_v34, %v1674_v50  ;;  %v1880_v39 = vadd.f32 %v1878_v1, %v1871_v38  ;;  %v2503_v38 = vld [vmem:[%s5735_s2] sm:$0xff]  ;;  %s5308_s2 = sld [smem:[#allocation10 + $0x1d]] }
 0x539   : > { %v1686_v30 = vadd.f32 %v1685_v27, %v1683_v20  ;;  %v1883_v4 = vadd.f32 %v1882_v11, %v1880_v39 }
 0x53a   : > { %v2451_v32 = vpop.permute.xlu0 %2450  ;;  %v2075_v25 = vpop.permute.xlu1 %2074 }
 0x53b   : > { %v2482_v42 = vrot.slane %v1686_v30, 5  ;;  %v2485_v35 = vrot.slane %v1883_v4, 4  ;;  %v2077_v48 = vadd.f32 %v2075_v25, %v2068_v52  ;;  %v2453_v61 = vadd.f32 %v2451_v32, %v2444_v57 }
 0x53d   : > { %v2498_v17 = vsel %vm822_vm4, %v2497_v21, %v2482_v42  ;;  %v2080_v33 = vadd.f32 %v2079_v3, %v2077_v48 }
 0x53e   : > { %v2499_v16 = vsel %vm824_vm5, %v2498_v17, %v2485_v35  ;;  %v2263_v6 = vpop.permute.xlu0 %2262  ;;  %v2272_v7 = vpop.permute.xlu1 %2271 }
 0x53f   : > { %v2488_v24 = vrot.slane %v2080_v33, 3  ;;  %v2265_v22 = vadd.f32 %v2263_v6, %v2256_v14 }
 0x541   : > { %v2274_v36 = vadd.f32 %v2272_v7, %v2265_v22  ;;  %v2500_v26 = vsel %vm826_vm6, %v2499_v16, %v2488_v24 }
 0x542   : > { %v2460_v58 = vpop.permute.xlu0 %2459 }
 0x543   : > { %v2277_v53 = vadd.f32 %v2276_v23, %v2274_v36  ;;  %v2462_v59 = vadd.f32 %v2460_v58, %v2453_v61  ;;  %v2574_v58 = vstv %s5239_s22  ;;  %v2581_v61 = vstv %s5241_s8  ;;  %s5359_s22 = sld [smem:[#allocation10 + $0x1f]] }
 0x544   : > { %s5364_s8 = sld [smem:[#allocation11 + $0x2]] }
 0x545   : > { %v2491_v19 = vrot.slane %v2277_v53, 2  ;;  %v2588_v53 = vstv %s5243_s20  ;;  %s5368_s20 = sld [smem:[#allocation11]] }
 0x546   : > { %v2469_v46 = vpop.permute.xlu0 %2468 }
 0x547   : > { %v2471_v40 = vadd.f32 %v2469_v46, %v2462_v59  ;;  %v2501_v63 = vsel %vm828_vm7, %v2500_v26, %v2491_v19  ;;  %v2595_v19 = vstv %s5245_s14  ;;  %v2609_v46 = vstv %s5249_s15  ;;  %s5736_s14 = sld [smem:[#allocation20_spill]] }
 0x549   : > { %v2474_v12 = vadd.f32 %v2473_v13, %v2471_v40  ;;  %v2602_v13 = vstv %s5247_s13  ;;  %v2616_v40 = vstv %s5251_s4  ;;  %s3229_s13 = sld [smem:[#allocation11 + $0x3]] }
 0x54a   : > { %s5737_s4 = sld [smem:[#allocation23_spill]] }
 0x54b   : > { %v2494_v15 = vrot.slane %v2474_v12, 1 }
 0x54d   : > { %v2502_v43 = vsel %vm830_vm8, %v2501_v63, %v2494_v15  ;;  %v2626_v15 = vstv %s5253_s7  ;;  %s506_s15 = sand.u32 1, %s5736_s14  }
 0x54e   : > { %v2506_v62 = vsel %vm2505_vm11, %v2502_v43, 0.0  ;;  %s2958_s7 = sshll.u32 %s506_s15, 2 }
 0x54f   : > { %2507 = vadd.xlane.f32.xlu1 %v2506_v62  ;;  %v2636_v62 = vstv %s5257_s12 }
 0x550   : > { %s3231_s12 = sshll.u32 %s5737_s4, 6 }
 0x560   : > { %2539 = vperm.xlu1 %3337, %v2504_v44   ;;  %v2643_v44 = vstv %s5259_s24  ;;  %s508_s24 = scalar_lea.vmem [#allocation13], %s2958_s7 }
 0x564   : > { %2803 = vrot.lane.b32.xlu1 %v3357_v60, %s5620_s19  ;;  %s5237_s19 = sld [smem:[#allocation10]]  ;;  %v2650_v60 = vstv %s5261_s1  ;;  %s2823_s1 = sshll.u32 %s508_s24, 4  ;;  %s2824_s1 = int_to_ptr.vmem [resolvable:$true] %s2823_s1 }
 0x56a   : > { %v2571_v26 = vstv %s5237_s19  ;;  %s5314_s19 = sld [smem:[#allocation10 + $0x1e]] }
 0x5d8   : > { %v2508_v45 = vpop.xlane.xlu1 %2507 }
 0x5d9   : > { %v2509_v8 = vrot.slane %v2508_v45, 4 }
 0x5db   : > { %v2510_v9 = vadd.f32 %v2509_v8, %v2508_v45  ;;  %v2657_v45 = vstv %s5263_s18 }
 0x5dc   : > { %v2540_v30 = vpop.permute.xlu1 %2539 }
 0x5dd   : > { %v2511_v41 = vrot.slane %v2510_v9, 2 }
 0x5df   : > { %v2512_v49 = vadd.f32 %v2511_v41, %v2510_v9  ;;  %v2664_v9 = vstv %s5265_s10  ;;  %v2671_v41 = vstv %s5267_s11  ;;  %s5739_s11 = sld [smem:[#allocation97_spill]] }
 0x5e1   : > { %v2513_v54 = vrot.slane %v2512_v49, 1 }
 0x5e3   : > { %v2514_v2 = vadd.f32 %v2513_v54, %v2512_v49  ;;  %v2678_v49 = vstv %s5269_s21  ;;  %v2681_v54 = vstv %s5271_s3  ;;  %s2810_s3 = scalar_lea.sflag [#allocation3], %s506_s15 }
 0x5e5   : > { %v2515_v18 = vmul.f32 0.010416667, %v2514_v2  ;;  %v2684_v2 = vstv %s5273_s16  ;;  %s2821_s21 = scalar_lea.hbm %s5739_s11, %s3231_s12  ;;  %s3448_s16 = scalar_lea.vmem %s2824_s1, 64 }
 0x5e6   : > { %p3449_p2 = scmp.ne.s32.totalorder %s2824_s1, %s3448_s16 }
 0x5e7   : > { %v2516_v47 = vsub.f32 %v2502_v43, %v2515_v18  ;;  %v2629_v43 = vstv %s5255_s27  ;;  %v2691_v18 = vstv %s5275_s6  ;;  %s5738_s27 = sld [smem:[#allocation26_spill]]  ;;  %s3535_s6 = smov [#allocation13]  }
 0x5e9   : > { %v2517_v5 = vmul.f32 %v2516_v47, %v2516_v47 }
 0x5eb   : > { %v2518_v50 = vsel %vm2505_vm11, %v2517_v5, 0.0 }
 0x5ec   : > { %2519 = vadd.xlane.f32.xlu0 %v2518_v50 }
 0x5ed   : > { %p5740_p3 = scmp.ne.s32.totalorder %s5738_s27, 0 }
 0x5ef   : > { %p3450_p4 = pnand %p3449_p2, %p5740_p3 }
 0x5f1   : > { %p3451_p9 = pneg %p3450_p4 }
 0x602   : > { %2533 = vperm.xlu0 %3338, %v2503_v38   ;;  %v2705_v38 = vstv %s5279_s28 }
 0x675   : > { %v2520_v21 = vpop.xlane.xlu0 %2519 }
 0x676   : > { %v2521_v27 = vrot.slane %v2520_v21, 4 }
 0x678   : > { %v2522_v34 = vadd.f32 %v2521_v27, %v2520_v21  ;;  %v2712_v21 = vstv %s5281_s0  ;;  %v2719_v27 = vstv %s5283_s25 }
 0x67a   : > { %v2523_v11 = vrot.slane %v2522_v34, 2 }
 0x67c   : > { %v2524_v1 = vadd.f32 %v2523_v11, %v2522_v34  ;;  %v2726_v34 = vstv %s5285_s26  ;;  %v2736_v11 = vstv %s5287_s30 }
 0x67d   : > { %v2534_v56 = vpop.permute.xlu0 %2533 }
 0x67e   : > { %v2525_v51 = vrot.slane %v2524_v1, 1 }
 0x680   : > { %v2526_v0 = vadd.f32 %v2525_v51, %v2524_v1  ;;  %v2739_v1 = vstv %s5289_s5 }
 0x682   : > { %v2527_v20 = vmul.f32 0.010416667, %v2526_v0 }
 0x684   : > { %v2528_v39 = vadd.f32 1e-05, %v2527_v20 }
 0x686   : > { %3351 = vrsqrt.f32 %v2528_v39  ;;  %v2746_v39 = vstv %s5293_s23 }
 0x693   : > { %v3352_v55 = vpop.eup %3351 }
 0x694   : > { %v2530_v10 = vmul.f32 %v3352_v55, %v2516_v47  ;;  %v2698_v47 = vstv %s5277_s9  ;;  %s3452_s9 = sshll.u32 %s3535_s6, 4  ;;  %s3453_s9 = int_to_ptr.vmem [resolvable:$false] %s3452_s9 }
 0x695   : > { %s3454_s28 = scalar_lea.vmem %s3453_s9, 128  ;;  %p3455_p7 = scmp.lt.s32.totalorder %s2824_s1, %s3453_s9 }
 0x696   : > { %v2536_v52 = vmul.f32 %v2534_v56, %v2530_v10  ;;  %v2753_v56 = vstv %s5298_s29  ;;  %p3456_p8 = scmp.lt.s32.totalorder %s3454_s28, %s3448_s16 }
 0x698   : > { %v5234_v4 = vadd.f32 %v2540_v30, %v2536_v52  ;;  %v2760_v52 = vstv %s5303_s17  ;;  %p3457_p5 = por %p3456_p8, %p3455_p7 }
 0x69a   : > { %v2544_v31 = vmul.f32 0.70710677, %v5234_v4  ;;  %v2543_v63 = vmul.f32 0.5, %v5234_v4  ;;  %p3458_p0 = pnand %p3457_p5, %p3451_p9 }
 0x69c   : > { %v2545_v32 = vand.u32 2147483647, %v2544_v31  ;;  %vm2565_vm12 = vcmp.ge.f32.partialorder %v2544_v31, 0.0 }
 0x69e   : > { %v2546_v3 = vmul.f32 0.3275911, %v2545_v32  ;;  %v2559_v37 = vsub.f32 0.0, %v2545_v32 }
 0x6a0   : > { %v2547_v25 = vadd.f32 1.0, %v2546_v3  ;;  %v2560_v42 = vmul.f32 %v2559_v37, %v2545_v32  ;;  %v2767_v37 = vstv %s5308_s2 }
 0x6a2   : > { %3353 = vrcp.f32 %v2547_v25  ;;  %v2561_v29 = vmul.f32 1.442695, %v2560_v42  ;;  %v2774_v42 = vstv %s5314_s19 }
 0x6a4   : > { %3355 = vpow2.f32 %v2561_v29 }
 0x6af   : > { %v3354_v35 = vpop.eup %3353 }
 0x6b0   : > { %v2550_v48 = vmul.f32 1.0614054, %v3354_v35 }
 0x6b1   : > { %v3356_v23 = vpop.eup %3355 }
 0x6b2   : > { %v2551_v14 = vadd.f32 -1.4531521, %v2550_v48 }
 0x6b4   : > { %v2552_v17 = vmul.f32 %v3354_v35, %v2551_v14 }
 0x6b6   : > { %v2553_v33 = vadd.f32 1.4214138, %v2552_v17 }
 0x6b8   : > { %v2554_v16 = vmul.f32 %v3354_v35, %v2553_v33 }
 0x6ba   : > { %v2555_v6 = vadd.f32 -0.28449672, %v2554_v16 }
 0x6bc   : > { %v2556_v28 = vmul.f32 %v3354_v35, %v2555_v6 }
 0x6be   : > { %v2557_v24 = vadd.f32 0.2548296, %v2556_v28 }
 0x6c0   : > { %v2558_v22 = vmul.f32 %v3354_v35, %v2557_v24 }
 0x6c2   : > { %v2563_v7 = vmul.f32 %v3356_v23, %v2558_v22 }
 0x6c4   : > { %v2564_v57 = vsub.f32 1.0, %v2563_v7 }
 0x6c6   : > { %v2566_v36 = vsub.f32 0.0, %v2564_v57 }
 0x6c8   : > { %v2567_v59 = vsel %vm2565_vm12, %v2564_v57, %v2566_v36 }
 0x6c9   : > { %v2568_v12 = vadd.f32 1.0, %v2567_v59 }
 0x6cb   : > { %v5316_v8 = vmul.f32 %v2568_v12, %v2543_v63 }
 0x6cd   : > { %v2575_v5 = vmul.f32 %v2574_v58, %v5316_v8  ;;  %v2582_v50 = vmul.f32 %v2581_v61, %v5316_v8  ;;  %v2572_v51 = vmul.f32 %v2571_v26, %v5316_v8  ;;  %v2589_v20 = vmul.f32 %v2588_v53, %v5316_v8 }
 0x6ce   : > { %v2596_v55 = vmul.f32 %v2595_v19, %v5316_v8  ;;  %v2603_v10 = vmul.f32 %v2602_v13, %v5316_v8  ;;  %v2630_v31 = vmul.f32 %v2629_v43, %v5316_v8  ;;  %v2637_v32 = vmul.f32 %v2636_v62, %v5316_v8 }
 0x6cf   : > { %v2577_v0 = vrot.slane %v2575_v5, 1  ;;  %v2584_v4 = vrot.slane %v2582_v50, 2  ;;  %v2610_v3 = vmul.f32 %v2609_v46, %v5316_v8  ;;  %v2644_v25 = vmul.f32 %v2643_v44, %v5316_v8 }
 0x6d0   : > { %v2591_v48 = vrot.slane %v2589_v20, 3  ;;  %v2627_v29 = vmul.f32 %v2626_v15, %v5316_v8  ;;  %v2632_v14 = vrot.slane %v2630_v31, 1  ;;  %v2598_v17 = vrot.slane %v2596_v55, 4 }
 0x6d1   : > { %v2579_v30 = vadd.f32 %v2577_v0, %v2572_v51  ;;  %v2605_v33 = vrot.slane %v2603_v10, 5  ;;  %v5348_v16 = vmul.f32 %v2616_v40, %v5316_v8  ;;  %v2651_v6 = vmul.f32 %v2650_v60, %v5316_v8 }
 0x6d2   : > { %v2634_v24 = vadd.f32 %v2632_v14, %v2627_v29  ;;  %v2639_v22 = vrot.slane %v2637_v32, 2  ;;  %v2685_v23 = vmul.f32 %v2684_v2, %v5316_v8  ;;  %v2646_v7 = vrot.slane %v2644_v25, 3 }
 0x6d3   : > { %v2586_v35 = vadd.f32 %v2584_v4, %v2579_v30  ;;  %v2658_v57 = vmul.f32 %v2657_v45, %v5316_v8  ;;  %v2665_v36 = vmul.f32 %v2664_v9, %v5316_v8  ;;  %v2692_v26 = vmul.f32 %v2691_v18, %v5316_v8 }
 0x6d4   : > { %v2641_v58 = vadd.f32 %v2639_v22, %v2634_v24  ;;  %v2682_v61 = vmul.f32 %v2681_v54, %v5316_v8  ;;  %v2687_v53 = vrot.slane %v2685_v23, 1  ;;  %v2699_v19 = vmul.f32 %v2698_v47, %v5316_v8 }
 0x6d5   : > { %v2593_v28 = vadd.f32 %v2591_v48, %v2586_v35  ;;  %v2612_v13 = vrot.slane %v2610_v3, 6  ;;  %v2653_v46 = vrot.slane %v2651_v6, 4  ;;  %v2672_v40 = vmul.f32 %v2671_v41, %v5316_v8 }
 0x6d6   : > { %v2648_v63 = vadd.f32 %v2646_v7, %v2641_v58  ;;  %v2689_v12 = vadd.f32 %v2687_v53, %v2682_v61  ;;  %v2694_v15 = vrot.slane %v2692_v26, 2  ;;  %v2706_v43 = vmul.f32 %v2705_v38, %v5316_v8 }
 0x6d7   : > { %v2600_v59 = vadd.f32 %v2598_v17, %v2593_v28  ;;  %v2660_v62 = vrot.slane %v2658_v57, 5  ;;  %v2667_v44 = vrot.slane %v2665_v36, 6  ;;  %v2740_v60 = vmul.f32 %v2739_v1, %v5316_v8 }
 0x6d8   : > { %v2747_v45 = vmul.f32 %v2746_v39, %v5316_v8  ;;  %v2655_v9 = vadd.f32 %v2653_v46, %v2648_v63  ;;  %v2696_v54 = vadd.f32 %v2694_v15, %v2689_v12  ;;  %v2701_v2 = vrot.slane %v2699_v19, 3  ;;  %v2804_v63 = vpop.permute.xlu1 %2803 }
 0x6d9   : > { %v2713_v18 = vmul.f32 %v2712_v21, %v5316_v8  ;;  %v2607_v41 = vadd.f32 %v2605_v33, %v2600_v59  ;;  %v2737_v47 = vmul.f32 %v2736_v11, %v5316_v8  ;;  %v2742_v5 = vrot.slane %v2740_v60, 1 }
 0x6da   : > { %v2754_v50 = vmul.f32 %v2753_v56, %v5316_v8  ;;  %v2662_v38 = vadd.f32 %v2660_v62, %v2655_v9  ;;  %v2703_v1 = vadd.f32 %v2701_v2, %v2696_v54  ;;  %v2708_v51 = vrot.slane %v2706_v43, 4 }
 0x6db   : > { %v2720_v0 = vmul.f32 %v2719_v27, %v5316_v8  ;;  %v2674_v20 = vrot.slane %v2672_v40, 7  ;;  %v2744_v21 = vadd.f32 %v2742_v5, %v2737_v47  ;;  %v2749_v39 = vrot.slane %v2747_v45, 2 }
 0x6dc   : > { %v2761_v55 = vmul.f32 %v2760_v52, %v5316_v8  ;;  %v2669_v10 = vadd.f32 %v2667_v44, %v2662_v38  ;;  %v2710_v11 = vadd.f32 %v2708_v51, %v2703_v1  ;;  %v2715_v30 = vrot.slane %v2713_v18, 5 }
 0x6dd   : > { %v2727_v56 = vmul.f32 %v2726_v34, %v5316_v8  ;;  %v2614_v4 = vadd.f32 %v2612_v13, %v2607_v41  ;;  %v2751_v31 = vadd.f32 %v2749_v39, %v2744_v21  ;;  %v2756_v32 = vrot.slane %v2754_v50, 3 }
 0x6de   : > { %v2768_v27 = vmul.f32 %v2767_v37, %v5316_v8  ;;  %v2676_v3 = vadd.f32 %v2674_v20, %v2669_v10  ;;  %v2717_v25 = vadd.f32 %v2715_v30, %v2710_v11  ;;  %v2722_v35 = vrot.slane %v2720_v0, 6 }
 0x6df   : > { %v2781_v48 = vstv %s5359_s22  ;;  %v2619_v52 = vrot.slane %v5348_v16, 7  ;;  %v2758_v29 = vadd.f32 %v2756_v32, %v2751_v31  ;;  %v2763_v14 = vrot.slane %v2761_v55, 4 }
 0x6e0   : > { %v2775_v34 = vmul.f32 %v2774_v42, %v5316_v8  ;;  %v2679_v17 = vadd.f32 %v2678_v49, %v2676_v3  ;;  %v2724_v33 = vadd.f32 %v2722_v35, %v2717_v25  ;;  %v2729_v6 = vrot.slane %v2727_v56, 7 }
 0x6e1   : > { %v2733_v28 = vstv %s5364_s8  ;;  %v2621_v37 = vadd.f32 %v2619_v52, %v2614_v4  ;;  %v2765_v24 = vadd.f32 %v2763_v14, %v2758_v29  ;;  %v2770_v22 = vrot.slane %v2768_v27, 5 }
 0x6e2   : > { %v2782_v23 = vmul.f32 %v2781_v48, %v5316_v8  ;;  %v2623_v7 = vstv %s5368_s20  ;;  %v2731_v57 = vadd.f32 %v2729_v6, %v2724_v33  ;;  %v2777_v16 = vrot.slane %v2775_v34, 6 }
 0x6e3   : > { %v2772_v36 = vadd.f32 %v2770_v22, %v2765_v24  ;;  %v2791_v26 = vrot.slane %v2679_v17, 7  ;;  %v2624_v61 = vadd.f32 %v2623_v7, %v2621_v37  ;;  %v2788_v49 = vstv %s3229_s13 }
 0x6e4   : > { %v2734_v58 = vadd.f32 %v2733_v28, %v2731_v57  ;;  %v2784_v53 = vrot.slane %v2782_v23, 7 }
 0x6e5   : > { %v2779_v42 = vadd.f32 %v2777_v16, %v2772_v36  ;;  %v2799_v13 = vsel %vm818_vm2, %v2624_v61, %v2791_v26 }
 0x6e6   : > { %v2794_v19 = vrot.slane %v2734_v58, 6 }
 0x6e7   : > { %v2786_v59 = vadd.f32 %v2784_v53, %v2779_v42 }
 0x6e8   : > { %v2800_v8 = vsel %vm820_vm3, %v2799_v13, %v2794_v19 }
 0x6e9   : > { %v2789_v46 = vadd.f32 %v2788_v49, %v2786_v59 }
 0x6eb   : > { %v2797_v40 = vrot.slane %v2789_v46, 5 }
 0x6ed   : > { %v2801_v12 = vsel %vm822_vm4, %v2800_v8, %v2797_v40 }
 0x6ee   : > { %v2806_v15 = vadd.f32 %v2804_v63, %v2801_v12 }
 0x6f0   : > { %2808 = vst.msk [vmem:[%s508_s24] sm:$0xf] %vm2807_vm13, %v2806_v15 }
 0x6f1   : > { %3461 = shalt.err (!%p3458_p0)
}
 0x6f2   : > { %s3462_s0 = scalar_lea.hbm %s2821_s21, 64  ;;  %s3466_s30 = scalar_lea.hbm %s5739_s11, 128 }
 0x6f3   : > { %p3463_p6 = scmp.ne.s32.totalorder %s2821_s21, %s3462_s0  ;;  %p3467_p11 = scmp.lt.s32.totalorder %s2821_s21, %s5739_s11 }
 0x6f4   : > { %p3468_p13 = scmp.lt.s32.totalorder %s3466_s30, %s3462_s0 }
 0x6f5   : > { %p3464_p10 = pnand %p3463_p6, %p5740_p3 }
 0x6f6   : > { %p3469_p1 = por %p3468_p13, %p3467_p11 }
 0x6f7   : > { %p3465_p12 = pneg %p3464_p10 }
 0x6f9   : > { %p3470_p2 = pnand %p3469_p1, %p3465_p12 }
 0x6fb   : > { %3473 = shalt.err (!%p3470_p2)
}
 0x6fc   : > { %3258 = dma.vmem_to_hbm [thread:$0]  (%p5740_p3), %s2824_s1, 64, %s2821_s21, %s2810_s3  }
 0x6fd PF: > { %s5741_s29 = sld [smem:[#allocation22_spill]] }
 0x6fe   : > { %s5742_s17 = sld [smem:[#allocation19_spill]] }
 0x6ff   : > { %s5743_s2 = sld [smem:[#allocation27_spill]] }
 0x703   : > { %p3295_p4 = scmp.ge.s32.totalorder %s5741_s29, 2 }
 0x704   : > { %s2835_s19 = sand.u32 1, %s5742_s17  }
 0x705   : > { %p5744_p9 = scmp.ne.s32.totalorder %s5743_s2, 0  ;;  %s2836_s22 = scalar_lea.sflag [#allocation3], %s2835_s19 }
 0x707   : > { %p3280_p7 = pnand %p3295_p4, %p5744_p9 }
 0x709   : > { %p3281_p8 = pneg %p3280_p7 }
 0x70b   : > { %3507 = dma.done.wait (%p3281_p8), %s2836_s22, 64  }
 0x70c   : > { %3509 = vsyncadd (%p3281_p8), %s2836_s22, 4294967232  ;;  %s5745_s28 = sld [smem:[#allocation24_spill]] }
 0x70d   : > { %s5746_s25 = sld [smem:[#allocation20_spill]] }
 0x70e   : > { %s5747_s26 = sld [smem:[#allocation21_spill]] }
 0x70f   : > { %s5748_s27 = sld [smem:[#allocation25_spill]] }
 0x712   : > { %p27_p5 = scmp.ge.s32.totalorder %s5745_s28, 4  }
 0x714   :  { %29 = sbr.rel (!%p27_p5) target bundleno = 22 (0x16), region = 132 }
 0x719   :  { %2841 = vsyncpa [#allocation3], 1 }
 0x71a   :  { %2843 = vsyncpa [#allocation3 + $0x1], 1 }
 0x71b   :  { %2844 = vsyncpa [#allocation4], 1 }
 0x71c   :  { %2846 = vsyncpa [#allocation4 + $0x1], 1 }
 0x71d   :  { %2847 = vsyncpa [#allocation6], 1 }
 0x71e   :  { %2848 = vsyncpa [#allocation9], 1 }
 0x71f   :  { %2849 = vsyncpa [#allocation12], 1 }

</bundles_post_ra>
